<compile_context>
chip_gen: v7x
topology: tpu7x:2x2x1
jax: 0.10.0
libtpu: 0.0.40
codegen_flags: <defaults>
</compile_context>

<pallas_src>
import math
import jax
import jax.numpy as jnp
from jax import lax
from jax.experimental import pallas as pl
from jax.experimental.pallas import tpu as pltpu

B = 2             # batch
T = 8             # sequence length
D_IN = 32         # args['d'] (== hidden_size so per-layer weights stack)
HID = 32          # args['hidden_size']
DEPTH = 2         # args['depth']  (wavefront below is written for DEPTH == 2)
NUM_CLASSES = 16  # args['num_classes']
G4 = 4 * HID              # 128 gate lanes per (ih / hh) path
NBLK = 4 * G4             # 512 = [ih0 | hh0 | ih1 | hh1]
KCAT = D_IN + 2 * HID     # 96  = [x_t | h0 | h1]
FC_PAD = 128              # lane-dense padded FC width
LN_EPS = 1e-5

assert DEPTH == 2 and D_IN == HID


def _ln(z, gamma, beta):
    mu = jnp.mean(z, axis=-1, keepdims=True)
    var = jnp.mean(jnp.square(z - mu), axis=-1, keepdims=True)
    inv = lax.rsqrt(var + LN_EPS)            # EUP rsqrt (free VLIW slot)
    return (z - mu) * inv * gamma + beta


def lstm_kernel(x_ref,        # (T, B, D_IN)      time-major input
                w_wave_ref,   # (KCAT, NBLK)      block-structured fused weight
                p_ref,        # (4, NBLK)         rows: b_all, gamma_all, beta_all, ho-params
                fc_ref,       # (HID+1, FC_PAD)   rows 0:HID = W_fc (padded), row HID = b_fc
                out_ref,      # (T*B, FC_PAD)     lane-dense padded logits
                hs_ref):      # scratch (T*B, HID) top-layer hidden states
    # Small loop-invariant parameter slices hoisted once (few vregs); the big
    # fused weight is read at its use site so it is never pinned in registers.
    b_all = p_ref[0:1, :]                                        # (1, 512)
    gam = [p_ref[1:2, k * G4:(k + 1) * G4] for k in range(4)]    # 4 x (1, 128)
    bet = [p_ref[2:3, k * G4:(k + 1) * G4] for k in range(4)]
    g_ho = (p_ref[3:4, 0:HID], p_ref[3:4, 2 * HID:3 * HID])      # per-layer LN_ho
    be_ho = (p_ref[3:4, HID:2 * HID], p_ref[3:4, 3 * HID:4 * HID])

    lane = lax.broadcasted_iota(jnp.int32, (B, G4), 1)
    sig_mask = lane < 3 * HID                # gate order [i | f | o | g]

    def cell(gates, c_prev, l):
        # Full-vreg activation: one sigmoid + one tanh push over 128 lanes.
        act = jnp.where(sig_mask, jax.nn.sigmoid(gates), jnp.tanh(gates))
        i_g = act[:, 0:HID]
        f_g = act[:, HID:2 * HID]
        o_g = act[:, 2 * HID:3 * HID]
        g_g = act[:, 3 * HID:]
        c_new = f_g * c_prev + i_g * g_g
        h_new = o_g * jnp.tanh(_ln(c_new, g_ho[l], be_ho[l]))
        return h_new, c_new

    zero_bh = jnp.zeros((B, HID), jnp.float32)
    h0, c0, h1, c1 = zero_bh, zero_bh, zero_bh, zero_bh
    x_pad = jnp.zeros((B, D_IN), jnp.float32)

    # Wavefront over the (time, layer) grid: diagonal d runs cell (t=d, l=0)
    # and cell (t=d-1, l=1) off a single fused matmul.  Boundary diagonals
    # (d=0, d=T) simply skip the inactive cell's state update (static unroll).
    for d in range(T + DEPTH - 1):
        x_d = x_ref[d] if d < T else x_pad
        inp = jnp.concatenate([x_d, h0, h1], axis=-1)            # (B, 96)
        r = jnp.dot(inp, w_wave_ref[...],
                    preferred_element_type=jnp.float32) + b_all  # (B, 512)
        if d < T:        # layer-0 cell at t = d
            gates0 = (_ln(r[:, 0:G4], gam[0], bet[0])
                      + _ln(r[:, G4:2 * G4], gam[1], bet[1]))
        if d >= 1:       # layer-1 cell at t = d - 1
            gates1 = (_ln(r[:, 2 * G4:3 * G4], gam[2], bet[2])
                      + _ln(r[:, 3 * G4:], gam[3], bet[3]))
            h1, c1 = cell(gates1, c1, 1)
            hs_ref[(d - 1) * B:d * B, :] = h1                    # stream top-layer h
        if d < T:
            h0, c0 = cell(gates0, c0, 0)

    # Batched lane-dense FC over all T*B top-layer rows (one matmul).
    out_ref[...] = (jnp.dot(hs_ref[...], fc_ref[0:HID, :],
                            preferred_element_type=jnp.float32)
                    + fc_ref[HID:HID + 1, :])


def _pack_params(params):
    (w_ih, b_ih, g_ih, be_ih, w_hh, b_hh, g_hh, be_hh,
     g_ho, be_ho, w_fc, b_fc) = params
    zx = jnp.zeros((D_IN, G4), jnp.float32)
    zh = jnp.zeros((HID, G4), jnp.float32)
    # Row blocks: [x_t | h0 | h1]; column blocks: [ih0 | hh0 | ih1 | hh1].
    # (h0 feeds both layer-0 hh and layer-1 ih columns in the wavefront.)
    w_wave = jnp.concatenate([
        jnp.concatenate([w_ih[0], zx,      zx,      zx      ], axis=1),
        jnp.concatenate([zh,      w_hh[0], w_ih[1], zh      ], axis=1),
        jnp.concatenate([zh,      zh,      zh,      w_hh[1] ], axis=1),
    ], axis=0)                                                   # (96, 512)
    b_all = jnp.concatenate([b_ih[0], b_hh[0], b_ih[1], b_hh[1]], axis=1)
    g_all = jnp.concatenate([g_ih[0], g_hh[0], g_ih[1], g_hh[1]], axis=1)
    be_all = jnp.concatenate([be_ih[0], be_hh[0], be_ih[1], be_hh[1]], axis=1)
    ho_row = jnp.concatenate(
        [g_ho[0], be_ho[0], g_ho[1], be_ho[1],
         jnp.zeros((1, NBLK - 4 * HID), jnp.float32)], axis=1)
    p_all = jnp.concatenate([b_all, g_all, be_all, ho_row], axis=0)   # (4, 512)
    fc_packed = jnp.concatenate([
        jnp.concatenate([w_fc, jnp.zeros((HID, FC_PAD - NUM_CLASSES), jnp.float32)], axis=1),
        jnp.concatenate([b_fc, jnp.zeros((1, FC_PAD - NUM_CLASSES), jnp.float32)], axis=1),
    ], axis=0)                                                   # (HID+1, 128)
    return w_wave, p_all, fc_packed


def pytorch_lstm_forward(x, params):
    w_wave, p_all, fc_packed = _pack_params(params)
    x_tm = jnp.transpose(x, (1, 0, 2))                           # (T, B, D_IN)
    vmem = pl.BlockSpec(memory_space=pltpu.MemorySpace.VMEM)
    out_tm = pl.pallas_call(
        lstm_kernel,
        out_shape=jax.ShapeDtypeStruct((T * B, FC_PAD), jnp.float32),
        in_specs=[vmem] * 4,
        out_specs=vmem,
        scratch_shapes=[pltpu.VMEM((T * B, HID), jnp.float32)],
    )(x_tm, w_wave, p_all, fc_packed)
    out = out_tm[:, :NUM_CLASSES].reshape(T, B, NUM_CLASSES)
    return jnp.transpose(out, (1, 0, 2))                         # (B, T, NC)


def reference_lstm(x, params):
    """Pure-JAX replica of the PyTorch forward (eval mode)."""
    (w_ih, b_ih, g_ih, be_ih, w_hh, b_hh, g_hh, be_hh,
     g_ho, be_ho, w_fc, b_fc) = params

    def ln(z, gamma, beta):
        mu = jnp.mean(z, axis=-1, keepdims=True)
        var = jnp.mean(jnp.square(z - mu), axis=-1, keepdims=True)
        return (z - mu) / jnp.sqrt(var + LN_EPS) * gamma + beta

    h = [jnp.zeros((B, HID), jnp.float32) for _ in range(DEPTH)]
    c = [jnp.zeros((B, HID), jnp.float32) for _ in range(DEPTH)]
    xs = jnp.transpose(x, (1, 0, 2))                             # (T, B, D_IN)
    outs = []
    for t in range(T):
        xt = xs[t]
        for l in range(DEPTH):
            ih = ln(xt @ w_ih[l] + b_ih[l], g_ih[l], be_ih[l])
            hh = ln(h[l] @ w_hh[l] + b_hh[l], g_hh[l], be_hh[l])
            gates = ih + hh
            i_g = jax.nn.sigmoid(gates[:, :HID])
            f_g = jax.nn.sigmoid(gates[:, HID:2 * HID])
            o_g = jax.nn.sigmoid(gates[:, 2 * HID:3 * HID])
            g_g = jnp.tanh(gates[:, 3 * HID:])
            c_new = f_g * c[l] + i_g * g_g
            h_new = o_g * jnp.tanh(ln(c_new, g_ho[l], be_ho[l]))
            h[l], c[l] = h_new, c_new
            xt = h_new
        outs.append(xt)
    hs = jnp.stack(outs, axis=0)                                 # (T, B, HID)
    hs = jnp.transpose(hs, (1, 0, 2)).reshape(B * T, HID)
    out = hs @ w_fc + b_fc
    return out.reshape(B, T, NUM_CLASSES)


def _uniform(key, shape, bound):
    return jax.random.uniform(key, shape, jnp.float32, -bound, bound)


if __name__ == "__main__":
    root = jax.random.PRNGKey(0)
    k = jax.random.split(root, 7)
    bnd = 1.0 / math.sqrt(HID)

    # Weights stored pre-transposed as [in, 4H] (x @ W == torch's x @ W.T);
    # gate packing order along 4H is [i|f|o|g], matching the module's chunking.
    w_ih = _uniform(k[0], (DEPTH, D_IN, G4), bnd)
    b_ih = _uniform(k[1], (DEPTH, 1, G4), bnd)
    w_hh = _uniform(k[2], (DEPTH, HID, G4), bnd)
    b_hh = _uniform(k[3], (DEPTH, 1, G4), bnd)
    # nn.LayerNorm default init: weight = 1, bias = 0.
    g_ih = jnp.ones((DEPTH, 1, G4), jnp.float32)
    be_ih = jnp.zeros((DEPTH, 1, G4), jnp.float32)
    g_hh = jnp.ones((DEPTH, 1, G4), jnp.float32)
    be_hh = jnp.zeros((DEPTH, 1, G4), jnp.float32)
    g_ho = jnp.ones((DEPTH, 1, HID), jnp.float32)
    be_ho = jnp.zeros((DEPTH, 1, HID), jnp.float32)
    w_fc = _uniform(k[4], (HID, NUM_CLASSES), bnd)
    b_fc = _uniform(k[5], (1, NUM_CLASSES), bnd)

    params = (w_ih, b_ih, g_ih, be_ih, w_hh, b_hh, g_hh, be_hh,
              g_ho, be_ho, w_fc, b_fc)

    x = jax.random.normal(k[6], (B, T, D_IN), jnp.float32)

    out = pytorch_lstm_forward(x, params)
    out = jax.block_until_ready(out)

    ref = reference_lstm(x, params)
    assert out.shape == (B, T, NUM_CLASSES)
    assert jnp.allclose(out, ref, atol=1e-3, rtol=1e-3), "mismatch vs reference"

    print("KERNEL_OK")
</pallas_src>

<mosaic_0001>
module attributes {stable_mosaic.version = 11 : i64} {
  func.func @lstm_kernel(%arg0: memref<8x2x32xf32, #tpu.memory_space<vmem>>, %arg1: memref<96x512xf32, #tpu.memory_space<vmem>>, %arg2: memref<4x512xf32, #tpu.memory_space<vmem>>, %arg3: memref<33x128xf32, #tpu.memory_space<vmem>>, %arg4: memref<16x128xf32, #tpu.memory_space<vmem>>, %arg5: memref<16x32xf32, #tpu.memory_space<vmem>>) attributes {dimension_semantics = [], scalar_prefetch = 0 : i64, scratch_operands = 1 : i64, tpu.core_type = #tpu.core_type<tc>} {
    %c0 = arith.constant 0 : index
    %c0_0 = arith.constant 0 : index
    %0 = vector.load %arg2[%c0, %c0_0] : memref<4x512xf32, #tpu.memory_space<vmem>>, vector<1x512xf32>
    %c1 = arith.constant 1 : index
    %c0_1 = arith.constant 0 : index
    %1 = vector.load %arg2[%c1, %c0_1] : memref<4x512xf32, #tpu.memory_space<vmem>>, vector<1x128xf32>
    %c1_2 = arith.constant 1 : index
    %c128 = arith.constant 128 : index
    %2 = vector.load %arg2[%c1_2, %c128] : memref<4x512xf32, #tpu.memory_space<vmem>>, vector<1x128xf32>
    %c1_3 = arith.constant 1 : index
    %c256 = arith.constant 256 : index
    %3 = vector.load %arg2[%c1_3, %c256] : memref<4x512xf32, #tpu.memory_space<vmem>>, vector<1x128xf32>
    %c1_4 = arith.constant 1 : index
    %c384 = arith.constant 384 : index
    %4 = vector.load %arg2[%c1_4, %c384] : memref<4x512xf32, #tpu.memory_space<vmem>>, vector<1x128xf32>
    %c2 = arith.constant 2 : index
    %c0_5 = arith.constant 0 : index
    %5 = vector.load %arg2[%c2, %c0_5] : memref<4x512xf32, #tpu.memory_space<vmem>>, vector<1x128xf32>
    %c2_6 = arith.constant 2 : index
    %c128_7 = arith.constant 128 : index
    %6 = vector.load %arg2[%c2_6, %c128_7] : memref<4x512xf32, #tpu.memory_space<vmem>>, vector<1x128xf32>
    %c2_8 = arith.constant 2 : index
    %c256_9 = arith.constant 256 : index
    %7 = vector.load %arg2[%c2_8, %c256_9] : memref<4x512xf32, #tpu.memory_space<vmem>>, vector<1x128xf32>
    %c2_10 = arith.constant 2 : index
    %c384_11 = arith.constant 384 : index
    %8 = vector.load %arg2[%c2_10, %c384_11] : memref<4x512xf32, #tpu.memory_space<vmem>>, vector<1x128xf32>
    %c3 = arith.constant 3 : index
    %c0_12 = arith.constant 0 : index
    %9 = vector.load %arg2[%c3, %c0_12] : memref<4x512xf32, #tpu.memory_space<vmem>>, vector<1x32xf32>
    %c3_13 = arith.constant 3 : index
    %c64 = arith.constant 64 : index
    %10 = vector.load %arg2[%c3_13, %c64] : memref<4x512xf32, #tpu.memory_space<vmem>>, vector<1x32xf32>
    %c3_14 = arith.constant 3 : index
    %c32 = arith.constant 32 : index
    %11 = vector.load %arg2[%c3_14, %c32] : memref<4x512xf32, #tpu.memory_space<vmem>>, vector<1x32xf32>
    %c3_15 = arith.constant 3 : index
    %c96 = arith.constant 96 : index
    %12 = vector.load %arg2[%c3_15, %c96] : memref<4x512xf32, #tpu.memory_space<vmem>>, vector<1x32xf32>
    %13 = tpu.iota {dimensions = array<i32: 1>} : vector<2x128xi32>
    %c96_i32 = arith.constant 96 : i32
    %14 = vector.broadcast %c96_i32 : i32 to vector<2x128xi32>
    %15 = arith.cmpi slt, %13, %14 : vector<2x128xi32>
    %cst = arith.constant 0.000000e+00 : f32
    %16 = vector.broadcast %cst : f32 to vector<2x32xf32>
    %cst_16 = arith.constant 0.000000e+00 : f32
    %17 = vector.broadcast %cst_16 : f32 to vector<2x32xf32>
    %c0_17 = arith.constant 0 : index
    %c0_18 = arith.constant 0 : index
    %c0_19 = arith.constant 0 : index
    %18 = vector.load %arg0[%c0_17, %c0_18, %c0_19] : memref<8x2x32xf32, #tpu.memory_space<vmem>>, vector<1x2x32xf32>
    %19 = vector.shape_cast %18 : vector<1x2x32xf32> to vector<2x32xf32>
    %20 = tpu.concatenate %19, %16, %16 in 1 : vector<2x32xf32>, vector<2x32xf32>, vector<2x32xf32> -> vector<2x96xf32>
    %c0_20 = arith.constant 0 : index
    %c0_21 = arith.constant 0 : index
    %21 = vector.load %arg1[%c0_20, %c0_21] : memref<96x512xf32, #tpu.memory_space<vmem>>, vector<96x512xf32>
    %cst_22 = arith.constant dense<0.000000e+00> : vector<2x512xf32>
    %22 = tpu.matmul %20, %21, %cst_22 {dimension_numbers = #tpu.dot_dimension_numbers<[1], [0], [0], [1], [0, 0, 1, 1], [], []>} : vector<2x96xf32>, vector<96x512xf32>, vector<2x512xf32> -> vector<2x512xf32>
    %23 = vector.broadcast %0 : vector<1x512xf32> to vector<2x512xf32>
    %24 = arith.addf %22, %23 : vector<2x512xf32>
    %25 = vector.extract_strided_slice %24 {offsets = [0, 0], sizes = [2, 128], strides = [1, 1]} : vector<2x512xf32> to vector<2x128xf32>
    %cst_23 = arith.constant dense<0.000000e+00> : vector<2xf32>
    %26 = vector.multi_reduction <add>, %25, %cst_23 [1] : vector<2x128xf32> to vector<2xf32>
    %27 = vector.shape_cast %26 : vector<2xf32> to vector<2x1xf32>
    %cst_24 = arith.constant 1.280000e+02 : f32
    %28 = vector.broadcast %cst_24 : f32 to vector<2x1xf32>
    %29 = arith.divf %27, %28 : vector<2x1xf32>
    %30 = vector.broadcast %29 : vector<2x1xf32> to vector<2x128xf32>
    %31 = arith.subf %25, %30 : vector<2x128xf32>
    %32 = arith.mulf %31, %31 : vector<2x128xf32>
    %cst_25 = arith.constant dense<0.000000e+00> : vector<2xf32>
    %33 = vector.multi_reduction <add>, %32, %cst_25 [1] : vector<2x128xf32> to vector<2xf32>
    %34 = vector.shape_cast %33 : vector<2xf32> to vector<2x1xf32>
    %cst_26 = arith.constant 1.280000e+02 : f32
    %35 = vector.broadcast %cst_26 : f32 to vector<2x1xf32>
    %36 = arith.divf %34, %35 : vector<2x1xf32>
    %cst_27 = arith.constant 9.99999974E-6 : f32
    %37 = vector.broadcast %cst_27 : f32 to vector<2x1xf32>
    %38 = arith.addf %36, %37 : vector<2x1xf32>
    %39 = math.rsqrt %38 : vector<2x1xf32>
    %40 = vector.broadcast %29 : vector<2x1xf32> to vector<2x128xf32>
    %41 = arith.subf %25, %40 : vector<2x128xf32>
    %42 = vector.broadcast %39 : vector<2x1xf32> to vector<2x128xf32>
    %43 = arith.mulf %41, %42 : vector<2x128xf32>
    %44 = vector.broadcast %1 : vector<1x128xf32> to vector<2x128xf32>
    %45 = arith.mulf %43, %44 : vector<2x128xf32>
    %46 = vector.broadcast %5 : vector<1x128xf32> to vector<2x128xf32>
    %47 = arith.addf %45, %46 : vector<2x128xf32>
    %48 = vector.extract_strided_slice %24 {offsets = [0, 128], sizes = [2, 128], strides = [1, 1]} : vector<2x512xf32> to vector<2x128xf32>
    %cst_28 = arith.constant dense<0.000000e+00> : vector<2xf32>
    %49 = vector.multi_reduction <add>, %48, %cst_28 [1] : vector<2x128xf32> to vector<2xf32>
    %50 = vector.shape_cast %49 : vector<2xf32> to vector<2x1xf32>
    %cst_29 = arith.constant 1.280000e+02 : f32
    %51 = vector.broadcast %cst_29 : f32 to vector<2x1xf32>
    %52 = arith.divf %50, %51 : vector<2x1xf32>
    %53 = vector.broadcast %52 : vector<2x1xf32> to vector<2x128xf32>
    %54 = arith.subf %48, %53 : vector<2x128xf32>
    %55 = arith.mulf %54, %54 : vector<2x128xf32>
    %cst_30 = arith.constant dense<0.000000e+00> : vector<2xf32>
    %56 = vector.multi_reduction <add>, %55, %cst_30 [1] : vector<2x128xf32> to vector<2xf32>
    %57 = vector.shape_cast %56 : vector<2xf32> to vector<2x1xf32>
    %cst_31 = arith.constant 1.280000e+02 : f32
    %58 = vector.broadcast %cst_31 : f32 to vector<2x1xf32>
    %59 = arith.divf %57, %58 : vector<2x1xf32>
    %cst_32 = arith.constant 9.99999974E-6 : f32
    %60 = vector.broadcast %cst_32 : f32 to vector<2x1xf32>
    %61 = arith.addf %59, %60 : vector<2x1xf32>
    %62 = math.rsqrt %61 : vector<2x1xf32>
    %63 = vector.broadcast %52 : vector<2x1xf32> to vector<2x128xf32>
    %64 = arith.subf %48, %63 : vector<2x128xf32>
    %65 = vector.broadcast %62 : vector<2x1xf32> to vector<2x128xf32>
    %66 = arith.mulf %64, %65 : vector<2x128xf32>
    %67 = vector.broadcast %2 : vector<1x128xf32> to vector<2x128xf32>
    %68 = arith.mulf %66, %67 : vector<2x128xf32>
    %69 = vector.broadcast %6 : vector<1x128xf32> to vector<2x128xf32>
    %70 = arith.addf %68, %69 : vector<2x128xf32>
    %71 = arith.addf %47, %70 : vector<2x128xf32>
    %72 = arith.negf %71 : vector<2x128xf32>
    %73 = math.exp %72 : vector<2x128xf32>
    %cst_33 = arith.constant 1.000000e+00 : f32
    %74 = vector.broadcast %cst_33 : f32 to vector<2x128xf32>
    %75 = arith.addf %74, %73 : vector<2x128xf32>
    %76 = arith.divf %74, %75 : vector<2x128xf32>
    %77 = math.tanh %71 : vector<2x128xf32>
    %78 = arith.select %15, %76, %77 : vector<2x128xi1>, vector<2x128xf32>
    %79 = vector.extract_strided_slice %78 {offsets = [0, 0], sizes = [2, 32], strides = [1, 1]} : vector<2x128xf32> to vector<2x32xf32>
    %80 = vector.extract_strided_slice %78 {offsets = [0, 32], sizes = [2, 32], strides = [1, 1]} : vector<2x128xf32> to vector<2x32xf32>
    %81 = vector.extract_strided_slice %78 {offsets = [0, 64], sizes = [2, 32], strides = [1, 1]} : vector<2x128xf32> to vector<2x32xf32>
    %82 = vector.extract_strided_slice %78 {offsets = [0, 96], sizes = [2, 32], strides = [1, 1]} : vector<2x128xf32> to vector<2x32xf32>
    %83 = arith.mulf %80, %16 : vector<2x32xf32>
    %84 = arith.mulf %79, %82 : vector<2x32xf32>
    %85 = arith.addf %83, %84 : vector<2x32xf32>
    %cst_34 = arith.constant dense<0.000000e+00> : vector<2xf32>
    %86 = vector.multi_reduction <add>, %85, %cst_34 [1] : vector<2x32xf32> to vector<2xf32>
    %87 = vector.shape_cast %86 : vector<2xf32> to vector<2x1xf32>
    %cst_35 = arith.constant 3.200000e+01 : f32
    %88 = vector.broadcast %cst_35 : f32 to vector<2x1xf32>
    %89 = arith.divf %87, %88 : vector<2x1xf32>
    %90 = vector.broadcast %89 : vector<2x1xf32> to vector<2x32xf32>
    %91 = arith.subf %85, %90 : vector<2x32xf32>
    %92 = arith.mulf %91, %91 : vector<2x32xf32>
    %cst_36 = arith.constant dense<0.000000e+00> : vector<2xf32>
    %93 = vector.multi_reduction <add>, %92, %cst_36 [1] : vector<2x32xf32> to vector<2xf32>
    %94 = vector.shape_cast %93 : vector<2xf32> to vector<2x1xf32>
    %cst_37 = arith.constant 3.200000e+01 : f32
    %95 = vector.broadcast %cst_37 : f32 to vector<2x1xf32>
    %96 = arith.divf %94, %95 : vector<2x1xf32>
    %cst_38 = arith.constant 9.99999974E-6 : f32
    %97 = vector.broadcast %cst_38 : f32 to vector<2x1xf32>
    %98 = arith.addf %96, %97 : vector<2x1xf32>
    %99 = math.rsqrt %98 : vector<2x1xf32>
    %100 = vector.broadcast %89 : vector<2x1xf32> to vector<2x32xf32>
    %101 = arith.subf %85, %100 : vector<2x32xf32>
    %102 = vector.broadcast %99 : vector<2x1xf32> to vector<2x32xf32>
    %103 = arith.mulf %101, %102 : vector<2x32xf32>
    %104 = vector.broadcast %9 : vector<1x32xf32> to vector<2x32xf32>
    %105 = arith.mulf %103, %104 : vector<2x32xf32>
    %106 = vector.broadcast %11 : vector<1x32xf32> to vector<2x32xf32>
    %107 = arith.addf %105, %106 : vector<2x32xf32>
    %108 = math.tanh %107 : vector<2x32xf32>
    %109 = arith.mulf %81, %108 : vector<2x32xf32>
    %c1_39 = arith.constant 1 : index
    %c0_40 = arith.constant 0 : index
    %c0_41 = arith.constant 0 : index
    %110 = vector.load %arg0[%c1_39, %c0_40, %c0_41] : memref<8x2x32xf32, #tpu.memory_space<vmem>>, vector<1x2x32xf32>
    %111 = vector.shape_cast %110 : vector<1x2x32xf32> to vector<2x32xf32>
    %112 = tpu.concatenate %111, %109, %16 in 1 : vector<2x32xf32>, vector<2x32xf32>, vector<2x32xf32> -> vector<2x96xf32>
    %c0_42 = arith.constant 0 : index
    %c0_43 = arith.constant 0 : index
    %113 = vector.load %arg1[%c0_42, %c0_43] : memref<96x512xf32, #tpu.memory_space<vmem>>, vector<96x512xf32>
    %cst_44 = arith.constant dense<0.000000e+00> : vector<2x512xf32>
    %114 = tpu.matmul %112, %113, %cst_44 {dimension_numbers = #tpu.dot_dimension_numbers<[1], [0], [0], [1], [0, 0, 1, 1], [], []>} : vector<2x96xf32>, vector<96x512xf32>, vector<2x512xf32> -> vector<2x512xf32>
    %115 = vector.broadcast %0 : vector<1x512xf32> to vector<2x512xf32>
    %116 = arith.addf %114, %115 : vector<2x512xf32>
    %117 = vector.extract_strided_slice %116 {offsets = [0, 0], sizes = [2, 128], strides = [1, 1]} : vector<2x512xf32> to vector<2x128xf32>
    %cst_45 = arith.constant dense<0.000000e+00> : vector<2xf32>
    %118 = vector.multi_reduction <add>, %117, %cst_45 [1] : vector<2x128xf32> to vector<2xf32>
    %119 = vector.shape_cast %118 : vector<2xf32> to vector<2x1xf32>
    %cst_46 = arith.constant 1.280000e+02 : f32
    %120 = vector.broadcast %cst_46 : f32 to vector<2x1xf32>
    %121 = arith.divf %119, %120 : vector<2x1xf32>
    %122 = vector.broadcast %121 : vector<2x1xf32> to vector<2x128xf32>
    %123 = arith.subf %117, %122 : vector<2x128xf32>
    %124 = arith.mulf %123, %123 : vector<2x128xf32>
    %cst_47 = arith.constant dense<0.000000e+00> : vector<2xf32>
    %125 = vector.multi_reduction <add>, %124, %cst_47 [1] : vector<2x128xf32> to vector<2xf32>
    %126 = vector.shape_cast %125 : vector<2xf32> to vector<2x1xf32>
    %cst_48 = arith.constant 1.280000e+02 : f32
    %127 = vector.broadcast %cst_48 : f32 to vector<2x1xf32>
    %128 = arith.divf %126, %127 : vector<2x1xf32>
    %cst_49 = arith.constant 9.99999974E-6 : f32
    %129 = vector.broadcast %cst_49 : f32 to vector<2x1xf32>
    %130 = arith.addf %128, %129 : vector<2x1xf32>
    %131 = math.rsqrt %130 : vector<2x1xf32>
    %132 = vector.broadcast %121 : vector<2x1xf32> to vector<2x128xf32>
    %133 = arith.subf %117, %132 : vector<2x128xf32>
    %134 = vector.broadcast %131 : vector<2x1xf32> to vector<2x128xf32>
    %135 = arith.mulf %133, %134 : vector<2x128xf32>
    %136 = vector.broadcast %1 : vector<1x128xf32> to vector<2x128xf32>
    %137 = arith.mulf %135, %136 : vector<2x128xf32>
    %138 = vector.broadcast %5 : vector<1x128xf32> to vector<2x128xf32>
    %139 = arith.addf %137, %138 : vector<2x128xf32>
    %140 = vector.extract_strided_slice %116 {offsets = [0, 128], sizes = [2, 128], strides = [1, 1]} : vector<2x512xf32> to vector<2x128xf32>
    %cst_50 = arith.constant dense<0.000000e+00> : vector<2xf32>
    %141 = vector.multi_reduction <add>, %140, %cst_50 [1] : vector<2x128xf32> to vector<2xf32>
    %142 = vector.shape_cast %141 : vector<2xf32> to vector<2x1xf32>
    %cst_51 = arith.constant 1.280000e+02 : f32
    %143 = vector.broadcast %cst_51 : f32 to vector<2x1xf32>
    %144 = arith.divf %142, %143 : vector<2x1xf32>
    %145 = vector.broadcast %144 : vector<2x1xf32> to vector<2x128xf32>
    %146 = arith.subf %140, %145 : vector<2x128xf32>
    %147 = arith.mulf %146, %146 : vector<2x128xf32>
    %cst_52 = arith.constant dense<0.000000e+00> : vector<2xf32>
    %148 = vector.multi_reduction <add>, %147, %cst_52 [1] : vector<2x128xf32> to vector<2xf32>
    %149 = vector.shape_cast %148 : vector<2xf32> to vector<2x1xf32>
    %cst_53 = arith.constant 1.280000e+02 : f32
    %150 = vector.broadcast %cst_53 : f32 to vector<2x1xf32>
    %151 = arith.divf %149, %150 : vector<2x1xf32>
    %cst_54 = arith.constant 9.99999974E-6 : f32
    %152 = vector.broadcast %cst_54 : f32 to vector<2x1xf32>
    %153 = arith.addf %151, %152 : vector<2x1xf32>
    %154 = math.rsqrt %153 : vector<2x1xf32>
    %155 = vector.broadcast %144 : vector<2x1xf32> to vector<2x128xf32>
    %156 = arith.subf %140, %155 : vector<2x128xf32>
    %157 = vector.broadcast %154 : vector<2x1xf32> to vector<2x128xf32>
    %158 = arith.mulf %156, %157 : vector<2x128xf32>
    %159 = vector.broadcast %2 : vector<1x128xf32> to vector<2x128xf32>
    %160 = arith.mulf %158, %159 : vector<2x128xf32>
    %161 = vector.broadcast %6 : vector<1x128xf32> to vector<2x128xf32>
    %162 = arith.addf %160, %161 : vector<2x128xf32>
    %163 = arith.addf %139, %162 : vector<2x128xf32>
    %164 = vector.extract_strided_slice %116 {offsets = [0, 256], sizes = [2, 128], strides = [1, 1]} : vector<2x512xf32> to vector<2x128xf32>
    %cst_55 = arith.constant dense<0.000000e+00> : vector<2xf32>
    %165 = vector.multi_reduction <add>, %164, %cst_55 [1] : vector<2x128xf32> to vector<2xf32>
    %166 = vector.shape_cast %165 : vector<2xf32> to vector<2x1xf32>
    %cst_56 = arith.constant 1.280000e+02 : f32
    %167 = vector.broadcast %cst_56 : f32 to vector<2x1xf32>
    %168 = arith.divf %166, %167 : vector<2x1xf32>
    %169 = vector.broadcast %168 : vector<2x1xf32> to vector<2x128xf32>
    %170 = arith.subf %164, %169 : vector<2x128xf32>
    %171 = arith.mulf %170, %170 : vector<2x128xf32>
    %cst_57 = arith.constant dense<0.000000e+00> : vector<2xf32>
    %172 = vector.multi_reduction <add>, %171, %cst_57 [1] : vector<2x128xf32> to vector<2xf32>
    %173 = vector.shape_cast %172 : vector<2xf32> to vector<2x1xf32>
    %cst_58 = arith.constant 1.280000e+02 : f32
    %174 = vector.broadcast %cst_58 : f32 to vector<2x1xf32>
    %175 = arith.divf %173, %174 : vector<2x1xf32>
    %cst_59 = arith.constant 9.99999974E-6 : f32
    %176 = vector.broadcast %cst_59 : f32 to vector<2x1xf32>
    %177 = arith.addf %175, %176 : vector<2x1xf32>
    %178 = math.rsqrt %177 : vector<2x1xf32>
    %179 = vector.broadcast %168 : vector<2x1xf32> to vector<2x128xf32>
    %180 = arith.subf %164, %179 : vector<2x128xf32>
    %181 = vector.broadcast %178 : vector<2x1xf32> to vector<2x128xf32>
    %182 = arith.mulf %180, %181 : vector<2x128xf32>
    %183 = vector.broadcast %3 : vector<1x128xf32> to vector<2x128xf32>
    %184 = arith.mulf %182, %183 : vector<2x128xf32>
    %185 = vector.broadcast %7 : vector<1x128xf32> to vector<2x128xf32>
    %186 = arith.addf %184, %185 : vector<2x128xf32>
    %187 = vector.extract_strided_slice %116 {offsets = [0, 384], sizes = [2, 128], strides = [1, 1]} : vector<2x512xf32> to vector<2x128xf32>
    %cst_60 = arith.constant dense<0.000000e+00> : vector<2xf32>
    %188 = vector.multi_reduction <add>, %187, %cst_60 [1] : vector<2x128xf32> to vector<2xf32>
    %189 = vector.shape_cast %188 : vector<2xf32> to vector<2x1xf32>
    %cst_61 = arith.constant 1.280000e+02 : f32
    %190 = vector.broadcast %cst_61 : f32 to vector<2x1xf32>
    %191 = arith.divf %189, %190 : vector<2x1xf32>
    %192 = vector.broadcast %191 : vector<2x1xf32> to vector<2x128xf32>
    %193 = arith.subf %187, %192 : vector<2x128xf32>
    %194 = arith.mulf %193, %193 : vector<2x128xf32>
    %cst_62 = arith.constant dense<0.000000e+00> : vector<2xf32>
    %195 = vector.multi_reduction <add>, %194, %cst_62 [1] : vector<2x128xf32> to vector<2xf32>
    %196 = vector.shape_cast %195 : vector<2xf32> to vector<2x1xf32>
    %cst_63 = arith.constant 1.280000e+02 : f32
    %197 = vector.broadcast %cst_63 : f32 to vector<2x1xf32>
    %198 = arith.divf %196, %197 : vector<2x1xf32>
    %cst_64 = arith.constant 9.99999974E-6 : f32
    %199 = vector.broadcast %cst_64 : f32 to vector<2x1xf32>
    %200 = arith.addf %198, %199 : vector<2x1xf32>
    %201 = math.rsqrt %200 : vector<2x1xf32>
    %202 = vector.broadcast %191 : vector<2x1xf32> to vector<2x128xf32>
    %203 = arith.subf %187, %202 : vector<2x128xf32>
    %204 = vector.broadcast %201 : vector<2x1xf32> to vector<2x128xf32>
    %205 = arith.mulf %203, %204 : vector<2x128xf32>
    %206 = vector.broadcast %4 : vector<1x128xf32> to vector<2x128xf32>
    %207 = arith.mulf %205, %206 : vector<2x128xf32>
    %208 = vector.broadcast %8 : vector<1x128xf32> to vector<2x128xf32>
    %209 = arith.addf %207, %208 : vector<2x128xf32>
    %210 = arith.addf %186, %209 : vector<2x128xf32>
    %211 = arith.negf %210 : vector<2x128xf32>
    %212 = math.exp %211 : vector<2x128xf32>
    %cst_65 = arith.constant 1.000000e+00 : f32
    %213 = vector.broadcast %cst_65 : f32 to vector<2x128xf32>
    %214 = arith.addf %213, %212 : vector<2x128xf32>
    %215 = arith.divf %213, %214 : vector<2x128xf32>
    %216 = math.tanh %210 : vector<2x128xf32>
    %217 = arith.select %15, %215, %216 : vector<2x128xi1>, vector<2x128xf32>
    %218 = vector.extract_strided_slice %217 {offsets = [0, 0], sizes = [2, 32], strides = [1, 1]} : vector<2x128xf32> to vector<2x32xf32>
    %219 = vector.extract_strided_slice %217 {offsets = [0, 32], sizes = [2, 32], strides = [1, 1]} : vector<2x128xf32> to vector<2x32xf32>
    %220 = vector.extract_strided_slice %217 {offsets = [0, 64], sizes = [2, 32], strides = [1, 1]} : vector<2x128xf32> to vector<2x32xf32>
    %221 = vector.extract_strided_slice %217 {offsets = [0, 96], sizes = [2, 32], strides = [1, 1]} : vector<2x128xf32> to vector<2x32xf32>
    %222 = arith.mulf %219, %16 : vector<2x32xf32>
    %223 = arith.mulf %218, %221 : vector<2x32xf32>
    %224 = arith.addf %222, %223 : vector<2x32xf32>
    %cst_66 = arith.constant dense<0.000000e+00> : vector<2xf32>
    %225 = vector.multi_reduction <add>, %224, %cst_66 [1] : vector<2x32xf32> to vector<2xf32>
    %226 = vector.shape_cast %225 : vector<2xf32> to vector<2x1xf32>
    %cst_67 = arith.constant 3.200000e+01 : f32
    %227 = vector.broadcast %cst_67 : f32 to vector<2x1xf32>
    %228 = arith.divf %226, %227 : vector<2x1xf32>
    %229 = vector.broadcast %228 : vector<2x1xf32> to vector<2x32xf32>
    %230 = arith.subf %224, %229 : vector<2x32xf32>
    %231 = arith.mulf %230, %230 : vector<2x32xf32>
    %cst_68 = arith.constant dense<0.000000e+00> : vector<2xf32>
    %232 = vector.multi_reduction <add>, %231, %cst_68 [1] : vector<2x32xf32> to vector<2xf32>
    %233 = vector.shape_cast %232 : vector<2xf32> to vector<2x1xf32>
    %cst_69 = arith.constant 3.200000e+01 : f32
    %234 = vector.broadcast %cst_69 : f32 to vector<2x1xf32>
    %235 = arith.divf %233, %234 : vector<2x1xf32>
    %cst_70 = arith.constant 9.99999974E-6 : f32
    %236 = vector.broadcast %cst_70 : f32 to vector<2x1xf32>
    %237 = arith.addf %235, %236 : vector<2x1xf32>
    %238 = math.rsqrt %237 : vector<2x1xf32>
    %239 = vector.broadcast %228 : vector<2x1xf32> to vector<2x32xf32>
    %240 = arith.subf %224, %239 : vector<2x32xf32>
    %241 = vector.broadcast %238 : vector<2x1xf32> to vector<2x32xf32>
    %242 = arith.mulf %240, %241 : vector<2x32xf32>
    %243 = vector.broadcast %10 : vector<1x32xf32> to vector<2x32xf32>
    %244 = arith.mulf %242, %243 : vector<2x32xf32>
    %245 = vector.broadcast %12 : vector<1x32xf32> to vector<2x32xf32>
    %246 = arith.addf %244, %245 : vector<2x32xf32>
    %247 = math.tanh %246 : vector<2x32xf32>
    %248 = arith.mulf %220, %247 : vector<2x32xf32>
    %c0_71 = arith.constant 0 : index
    %c0_72 = arith.constant 0 : index
    %249 = vector.load %arg5[%c0_71, %c0_72] : memref<16x32xf32, #tpu.memory_space<vmem>>, vector<2x32xf32>
    tpu.vector_store %arg5[%c0_71, %c0_72], %248 {strides = array<i32>} : memref<16x32xf32, #tpu.memory_space<vmem>>, vector<2x32xf32>,
    %250 = arith.negf %163 : vector<2x128xf32>
    %251 = math.exp %250 : vector<2x128xf32>
    %cst_73 = arith.constant 1.000000e+00 : f32
    %252 = vector.broadcast %cst_73 : f32 to vector<2x128xf32>
    %253 = arith.addf %252, %251 : vector<2x128xf32>
    %254 = arith.divf %252, %253 : vector<2x128xf32>
    %255 = math.tanh %163 : vector<2x128xf32>
    %256 = arith.select %15, %254, %255 : vector<2x128xi1>, vector<2x128xf32>
    %257 = vector.extract_strided_slice %256 {offsets = [0, 0], sizes = [2, 32], strides = [1, 1]} : vector<2x128xf32> to vector<2x32xf32>
    %258 = vector.extract_strided_slice %256 {offsets = [0, 32], sizes = [2, 32], strides = [1, 1]} : vector<2x128xf32> to vector<2x32xf32>
    %259 = vector.extract_strided_slice %256 {offsets = [0, 64], sizes = [2, 32], strides = [1, 1]} : vector<2x128xf32> to vector<2x32xf32>
    %260 = vector.extract_strided_slice %256 {offsets = [0, 96], sizes = [2, 32], strides = [1, 1]} : vector<2x128xf32> to vector<2x32xf32>
    %261 = arith.mulf %258, %85 : vector<2x32xf32>
    %262 = arith.mulf %257, %260 : vector<2x32xf32>
    %263 = arith.addf %261, %262 : vector<2x32xf32>
    %cst_74 = arith.constant dense<0.000000e+00> : vector<2xf32>
    %264 = vector.multi_reduction <add>, %263, %cst_74 [1] : vector<2x32xf32> to vector<2xf32>
    %265 = vector.shape_cast %264 : vector<2xf32> to vector<2x1xf32>
    %cst_75 = arith.constant 3.200000e+01 : f32
    %266 = vector.broadcast %cst_75 : f32 to vector<2x1xf32>
    %267 = arith.divf %265, %266 : vector<2x1xf32>
    %268 = vector.broadcast %267 : vector<2x1xf32> to vector<2x32xf32>
    %269 = arith.subf %263, %268 : vector<2x32xf32>
    %270 = arith.mulf %269, %269 : vector<2x32xf32>
    %cst_76 = arith.constant dense<0.000000e+00> : vector<2xf32>
    %271 = vector.multi_reduction <add>, %270, %cst_76 [1] : vector<2x32xf32> to vector<2xf32>
    %272 = vector.shape_cast %271 : vector<2xf32> to vector<2x1xf32>
    %cst_77 = arith.constant 3.200000e+01 : f32
    %273 = vector.broadcast %cst_77 : f32 to vector<2x1xf32>
    %274 = arith.divf %272, %273 : vector<2x1xf32>
    %cst_78 = arith.constant 9.99999974E-6 : f32
    %275 = vector.broadcast %cst_78 : f32 to vector<2x1xf32>
    %276 = arith.addf %274, %275 : vector<2x1xf32>
    %277 = math.rsqrt %276 : vector<2x1xf32>
    %278 = vector.broadcast %267 : vector<2x1xf32> to vector<2x32xf32>
    %279 = arith.subf %263, %278 : vector<2x32xf32>
    %280 = vector.broadcast %277 : vector<2x1xf32> to vector<2x32xf32>
    %281 = arith.mulf %279, %280 : vector<2x32xf32>
    %282 = vector.broadcast %9 : vector<1x32xf32> to vector<2x32xf32>
    %283 = arith.mulf %281, %282 : vector<2x32xf32>
    %284 = vector.broadcast %11 : vector<1x32xf32> to vector<2x32xf32>
    %285 = arith.addf %283, %284 : vector<2x32xf32>
    %286 = math.tanh %285 : vector<2x32xf32>
    %287 = arith.mulf %259, %286 : vector<2x32xf32>
    %c2_79 = arith.constant 2 : index
    %c0_80 = arith.constant 0 : index
    %c0_81 = arith.constant 0 : index
    %288 = vector.load %arg0[%c2_79, %c0_80, %c0_81] : memref<8x2x32xf32, #tpu.memory_space<vmem>>, vector<1x2x32xf32>
    %289 = vector.shape_cast %288 : vector<1x2x32xf32> to vector<2x32xf32>
    %290 = tpu.concatenate %289, %287, %248 in 1 : vector<2x32xf32>, vector<2x32xf32>, vector<2x32xf32> -> vector<2x96xf32>
    %c0_82 = arith.constant 0 : index
    %c0_83 = arith.constant 0 : index
    %291 = vector.load %arg1[%c0_82, %c0_83] : memref<96x512xf32, #tpu.memory_space<vmem>>, vector<96x512xf32>
    %cst_84 = arith.constant dense<0.000000e+00> : vector<2x512xf32>
    %292 = tpu.matmul %290, %291, %cst_84 {dimension_numbers = #tpu.dot_dimension_numbers<[1], [0], [0], [1], [0, 0, 1, 1], [], []>} : vector<2x96xf32>, vector<96x512xf32>, vector<2x512xf32> -> vector<2x512xf32>
    %293 = vector.broadcast %0 : vector<1x512xf32> to vector<2x512xf32>
    %294 = arith.addf %292, %293 : vector<2x512xf32>
    %295 = vector.extract_strided_slice %294 {offsets = [0, 0], sizes = [2, 128], strides = [1, 1]} : vector<2x512xf32> to vector<2x128xf32>
    %cst_85 = arith.constant dense<0.000000e+00> : vector<2xf32>
    %296 = vector.multi_reduction <add>, %295, %cst_85 [1] : vector<2x128xf32> to vector<2xf32>
    %297 = vector.shape_cast %296 : vector<2xf32> to vector<2x1xf32>
    %cst_86 = arith.constant 1.280000e+02 : f32
    %298 = vector.broadcast %cst_86 : f32 to vector<2x1xf32>
    %299 = arith.divf %297, %298 : vector<2x1xf32>
    %300 = vector.broadcast %299 : vector<2x1xf32> to vector<2x128xf32>
    %301 = arith.subf %295, %300 : vector<2x128xf32>
    %302 = arith.mulf %301, %301 : vector<2x128xf32>
    %cst_87 = arith.constant dense<0.000000e+00> : vector<2xf32>
    %303 = vector.multi_reduction <add>, %302, %cst_87 [1] : vector<2x128xf32> to vector<2xf32>
    %304 = vector.shape_cast %303 : vector<2xf32> to vector<2x1xf32>
    %cst_88 = arith.constant 1.280000e+02 : f32
    %305 = vector.broadcast %cst_88 : f32 to vector<2x1xf32>
    %306 = arith.divf %304, %305 : vector<2x1xf32>
    %cst_89 = arith.constant 9.99999974E-6 : f32
    %307 = vector.broadcast %cst_89 : f32 to vector<2x1xf32>
    %308 = arith.addf %306, %307 : vector<2x1xf32>
    %309 = math.rsqrt %308 : vector<2x1xf32>
    %310 = vector.broadcast %299 : vector<2x1xf32> to vector<2x128xf32>
    %311 = arith.subf %295, %310 : vector<2x128xf32>
    %312 = vector.broadcast %309 : vector<2x1xf32> to vector<2x128xf32>
    %313 = arith.mulf %311, %312 : vector<2x128xf32>
    %314 = vector.broadcast %1 : vector<1x128xf32> to vector<2x128xf32>
    %315 = arith.mulf %313, %314 : vector<2x128xf32>
    %316 = vector.broadcast %5 : vector<1x128xf32> to vector<2x128xf32>
    %317 = arith.addf %315, %316 : vector<2x128xf32>
    %318 = vector.extract_strided_slice %294 {offsets = [0, 128], sizes = [2, 128], strides = [1, 1]} : vector<2x512xf32> to vector<2x128xf32>
    %cst_90 = arith.constant dense<0.000000e+00> : vector<2xf32>
    %319 = vector.multi_reduction <add>, %318, %cst_90 [1] : vector<2x128xf32> to vector<2xf32>
    %320 = vector.shape_cast %319 : vector<2xf32> to vector<2x1xf32>
    %cst_91 = arith.constant 1.280000e+02 : f32
    %321 = vector.broadcast %cst_91 : f32 to vector<2x1xf32>
    %322 = arith.divf %320, %321 : vector<2x1xf32>
    %323 = vector.broadcast %322 : vector<2x1xf32> to vector<2x128xf32>
    %324 = arith.subf %318, %323 : vector<2x128xf32>
    %325 = arith.mulf %324, %324 : vector<2x128xf32>
    %cst_92 = arith.constant dense<0.000000e+00> : vector<2xf32>
    %326 = vector.multi_reduction <add>, %325, %cst_92 [1] : vector<2x128xf32> to vector<2xf32>
    %327 = vector.shape_cast %326 : vector<2xf32> to vector<2x1xf32>
    %cst_93 = arith.constant 1.280000e+02 : f32
    %328 = vector.broadcast %cst_93 : f32 to vector<2x1xf32>
    %329 = arith.divf %327, %328 : vector<2x1xf32>
    %cst_94 = arith.constant 9.99999974E-6 : f32
    %330 = vector.broadcast %cst_94 : f32 to vector<2x1xf32>
    %331 = arith.addf %329, %330 : vector<2x1xf32>
    %332 = math.rsqrt %331 : vector<2x1xf32>
    %333 = vector.broadcast %322 : vector<2x1xf32> to vector<2x128xf32>
    %334 = arith.subf %318, %333 : vector<2x128xf32>
    %335 = vector.broadcast %332 : vector<2x1xf32> to vector<2x128xf32>
    %336 = arith.mulf %334, %335 : vector<2x128xf32>
    %337 = vector.broadcast %2 : vector<1x128xf32> to vector<2x128xf32>
    %338 = arith.mulf %336, %337 : vector<2x128xf32>
    %339 = vector.broadcast %6 : vector<1x128xf32> to vector<2x128xf32>
    %340 = arith.addf %338, %339 : vector<2x128xf32>
    %341 = arith.addf %317, %340 : vector<2x128xf32>
    %342 = vector.extract_strided_slice %294 {offsets = [0, 256], sizes = [2, 128], strides = [1, 1]} : vector<2x512xf32> to vector<2x128xf32>
    %cst_95 = arith.constant dense<0.000000e+00> : vector<2xf32>
    %343 = vector.multi_reduction <add>, %342, %cst_95 [1] : vector<2x128xf32> to vector<2xf32>
    %344 = vector.shape_cast %343 : vector<2xf32> to vector<2x1xf32>
    %cst_96 = arith.constant 1.280000e+02 : f32
    %345 = vector.broadcast %cst_96 : f32 to vector<2x1xf32>
    %346 = arith.divf %344, %345 : vector<2x1xf32>
    %347 = vector.broadcast %346 : vector<2x1xf32> to vector<2x128xf32>
    %348 = arith.subf %342, %347 : vector<2x128xf32>
    %349 = arith.mulf %348, %348 : vector<2x128xf32>
    %cst_97 = arith.constant dense<0.000000e+00> : vector<2xf32>
    %350 = vector.multi_reduction <add>, %349, %cst_97 [1] : vector<2x128xf32> to vector<2xf32>
    %351 = vector.shape_cast %350 : vector<2xf32> to vector<2x1xf32>
    %cst_98 = arith.constant 1.280000e+02 : f32
    %352 = vector.broadcast %cst_98 : f32 to vector<2x1xf32>
    %353 = arith.divf %351, %352 : vector<2x1xf32>
    %cst_99 = arith.constant 9.99999974E-6 : f32
    %354 = vector.broadcast %cst_99 : f32 to vector<2x1xf32>
    %355 = arith.addf %353, %354 : vector<2x1xf32>
    %356 = math.rsqrt %355 : vector<2x1xf32>
    %357 = vector.broadcast %346 : vector<2x1xf32> to vector<2x128xf32>
    %358 = arith.subf %342, %357 : vector<2x128xf32>
    %359 = vector.broadcast %356 : vector<2x1xf32> to vector<2x128xf32>
    %360 = arith.mulf %358, %359 : vector<2x128xf32>
    %361 = vector.broadcast %3 : vector<1x128xf32> to vector<2x128xf32>
    %362 = arith.mulf %360, %361 : vector<2x128xf32>
    %363 = vector.broadcast %7 : vector<1x128xf32> to vector<2x128xf32>
    %364 = arith.addf %362, %363 : vector<2x128xf32>
    %365 = vector.extract_strided_slice %294 {offsets = [0, 384], sizes = [2, 128], strides = [1, 1]} : vector<2x512xf32> to vector<2x128xf32>
    %cst_100 = arith.constant dense<0.000000e+00> : vector<2xf32>
    %366 = vector.multi_reduction <add>, %365, %cst_100 [1] : vector<2x128xf32> to vector<2xf32>
    %367 = vector.shape_cast %366 : vector<2xf32> to vector<2x1xf32>
    %cst_101 = arith.constant 1.280000e+02 : f32
    %368 = vector.broadcast %cst_101 : f32 to vector<2x1xf32>
    %369 = arith.divf %367, %368 : vector<2x1xf32>
    %370 = vector.broadcast %369 : vector<2x1xf32> to vector<2x128xf32>
    %371 = arith.subf %365, %370 : vector<2x128xf32>
    %372 = arith.mulf %371, %371 : vector<2x128xf32>
    %cst_102 = arith.constant dense<0.000000e+00> : vector<2xf32>
    %373 = vector.multi_reduction <add>, %372, %cst_102 [1] : vector<2x128xf32> to vector<2xf32>
    %374 = vector.shape_cast %373 : vector<2xf32> to vector<2x1xf32>
    %cst_103 = arith.constant 1.280000e+02 : f32
    %375 = vector.broadcast %cst_103 : f32 to vector<2x1xf32>
    %376 = arith.divf %374, %375 : vector<2x1xf32>
    %cst_104 = arith.constant 9.99999974E-6 : f32
    %377 = vector.broadcast %cst_104 : f32 to vector<2x1xf32>
    %378 = arith.addf %376, %377 : vector<2x1xf32>
    %379 = math.rsqrt %378 : vector<2x1xf32>
    %380 = vector.broadcast %369 : vector<2x1xf32> to vector<2x128xf32>
    %381 = arith.subf %365, %380 : vector<2x128xf32>
    %382 = vector.broadcast %379 : vector<2x1xf32> to vector<2x128xf32>
    %383 = arith.mulf %381, %382 : vector<2x128xf32>
    %384 = vector.broadcast %4 : vector<1x128xf32> to vector<2x128xf32>
    %385 = arith.mulf %383, %384 : vector<2x128xf32>
    %386 = vector.broadcast %8 : vector<1x128xf32> to vector<2x128xf32>
    %387 = arith.addf %385, %386 : vector<2x128xf32>
    %388 = arith.addf %364, %387 : vector<2x128xf32>
    %389 = arith.negf %388 : vector<2x128xf32>
    %390 = math.exp %389 : vector<2x128xf32>
    %cst_105 = arith.constant 1.000000e+00 : f32
    %391 = vector.broadcast %cst_105 : f32 to vector<2x128xf32>
    %392 = arith.addf %391, %390 : vector<2x128xf32>
    %393 = arith.divf %391, %392 : vector<2x128xf32>
    %394 = math.tanh %388 : vector<2x128xf32>
    %395 = arith.select %15, %393, %394 : vector<2x128xi1>, vector<2x128xf32>
    %396 = vector.extract_strided_slice %395 {offsets = [0, 0], sizes = [2, 32], strides = [1, 1]} : vector<2x128xf32> to vector<2x32xf32>
    %397 = vector.extract_strided_slice %395 {offsets = [0, 32], sizes = [2, 32], strides = [1, 1]} : vector<2x128xf32> to vector<2x32xf32>
    %398 = vector.extract_strided_slice %395 {offsets = [0, 64], sizes = [2, 32], strides = [1, 1]} : vector<2x128xf32> to vector<2x32xf32>
    %399 = vector.extract_strided_slice %395 {offsets = [0, 96], sizes = [2, 32], strides = [1, 1]} : vector<2x128xf32> to vector<2x32xf32>
    %400 = arith.mulf %397, %224 : vector<2x32xf32>
    %401 = arith.mulf %396, %399 : vector<2x32xf32>
    %402 = arith.addf %400, %401 : vector<2x32xf32>
    %cst_106 = arith.constant dense<0.000000e+00> : vector<2xf32>
    %403 = vector.multi_reduction <add>, %402, %cst_106 [1] : vector<2x32xf32> to vector<2xf32>
    %404 = vector.shape_cast %403 : vector<2xf32> to vector<2x1xf32>
    %cst_107 = arith.constant 3.200000e+01 : f32
    %405 = vector.broadcast %cst_107 : f32 to vector<2x1xf32>
    %406 = arith.divf %404, %405 : vector<2x1xf32>
    %407 = vector.broadcast %406 : vector<2x1xf32> to vector<2x32xf32>
    %408 = arith.subf %402, %407 : vector<2x32xf32>
    %409 = arith.mulf %408, %408 : vector<2x32xf32>
    %cst_108 = arith.constant dense<0.000000e+00> : vector<2xf32>
    %410 = vector.multi_reduction <add>, %409, %cst_108 [1] : vector<2x32xf32> to vector<2xf32>
    %411 = vector.shape_cast %410 : vector<2xf32> to vector<2x1xf32>
    %cst_109 = arith.constant 3.200000e+01 : f32
    %412 = vector.broadcast %cst_109 : f32 to vector<2x1xf32>
    %413 = arith.divf %411, %412 : vector<2x1xf32>
    %cst_110 = arith.constant 9.99999974E-6 : f32
    %414 = vector.broadcast %cst_110 : f32 to vector<2x1xf32>
    %415 = arith.addf %413, %414 : vector<2x1xf32>
    %416 = math.rsqrt %415 : vector<2x1xf32>
    %417 = vector.broadcast %406 : vector<2x1xf32> to vector<2x32xf32>
    %418 = arith.subf %402, %417 : vector<2x32xf32>
    %419 = vector.broadcast %416 : vector<2x1xf32> to vector<2x32xf32>
    %420 = arith.mulf %418, %419 : vector<2x32xf32>
    %421 = vector.broadcast %10 : vector<1x32xf32> to vector<2x32xf32>
    %422 = arith.mulf %420, %421 : vector<2x32xf32>
    %423 = vector.broadcast %12 : vector<1x32xf32> to vector<2x32xf32>
    %424 = arith.addf %422, %423 : vector<2x32xf32>
    %425 = math.tanh %424 : vector<2x32xf32>
    %426 = arith.mulf %398, %425 : vector<2x32xf32>
    %c2_111 = arith.constant 2 : index
    %c0_112 = arith.constant 0 : index
    %427 = vector.load %arg5[%c2_111, %c0_112] : memref<16x32xf32, #tpu.memory_space<vmem>>, vector<2x32xf32>
    tpu.vector_store %arg5[%c2_111, %c0_112], %426 {strides = array<i32>} : memref<16x32xf32, #tpu.memory_space<vmem>>, vector<2x32xf32>,
    %428 = arith.negf %341 : vector<2x128xf32>
    %429 = math.exp %428 : vector<2x128xf32>
    %cst_113 = arith.constant 1.000000e+00 : f32
    %430 = vector.broadcast %cst_113 : f32 to vector<2x128xf32>
    %431 = arith.addf %430, %429 : vector<2x128xf32>
    %432 = arith.divf %430, %431 : vector<2x128xf32>
    %433 = math.tanh %341 : vector<2x128xf32>
    %434 = arith.select %15, %432, %433 : vector<2x128xi1>, vector<2x128xf32>
    %435 = vector.extract_strided_slice %434 {offsets = [0, 0], sizes = [2, 32], strides = [1, 1]} : vector<2x128xf32> to vector<2x32xf32>
    %436 = vector.extract_strided_slice %434 {offsets = [0, 32], sizes = [2, 32], strides = [1, 1]} : vector<2x128xf32> to vector<2x32xf32>
    %437 = vector.extract_strided_slice %434 {offsets = [0, 64], sizes = [2, 32], strides = [1, 1]} : vector<2x128xf32> to vector<2x32xf32>
    %438 = vector.extract_strided_slice %434 {offsets = [0, 96], sizes = [2, 32], strides = [1, 1]} : vector<2x128xf32> to vector<2x32xf32>
    %439 = arith.mulf %436, %263 : vector<2x32xf32>
    %440 = arith.mulf %435, %438 : vector<2x32xf32>
    %441 = arith.addf %439, %440 : vector<2x32xf32>
    %cst_114 = arith.constant dense<0.000000e+00> : vector<2xf32>
    %442 = vector.multi_reduction <add>, %441, %cst_114 [1] : vector<2x32xf32> to vector<2xf32>
    %443 = vector.shape_cast %442 : vector<2xf32> to vector<2x1xf32>
    %cst_115 = arith.constant 3.200000e+01 : f32
    %444 = vector.broadcast %cst_115 : f32 to vector<2x1xf32>
    %445 = arith.divf %443, %444 : vector<2x1xf32>
    %446 = vector.broadcast %445 : vector<2x1xf32> to vector<2x32xf32>
    %447 = arith.subf %441, %446 : vector<2x32xf32>
    %448 = arith.mulf %447, %447 : vector<2x32xf32>
    %cst_116 = arith.constant dense<0.000000e+00> : vector<2xf32>
    %449 = vector.multi_reduction <add>, %448, %cst_116 [1] : vector<2x32xf32> to vector<2xf32>
    %450 = vector.shape_cast %449 : vector<2xf32> to vector<2x1xf32>
    %cst_117 = arith.constant 3.200000e+01 : f32
    %451 = vector.broadcast %cst_117 : f32 to vector<2x1xf32>
    %452 = arith.divf %450, %451 : vector<2x1xf32>
    %cst_118 = arith.constant 9.99999974E-6 : f32
    %453 = vector.broadcast %cst_118 : f32 to vector<2x1xf32>
    %454 = arith.addf %452, %453 : vector<2x1xf32>
    %455 = math.rsqrt %454 : vector<2x1xf32>
    %456 = vector.broadcast %445 : vector<2x1xf32> to vector<2x32xf32>
    %457 = arith.subf %441, %456 : vector<2x32xf32>
    %458 = vector.broadcast %455 : vector<2x1xf32> to vector<2x32xf32>
    %459 = arith.mulf %457, %458 : vector<2x32xf32>
    %460 = vector.broadcast %9 : vector<1x32xf32> to vector<2x32xf32>
    %461 = arith.mulf %459, %460 : vector<2x32xf32>
    %462 = vector.broadcast %11 : vector<1x32xf32> to vector<2x32xf32>
    %463 = arith.addf %461, %462 : vector<2x32xf32>
    %464 = math.tanh %463 : vector<2x32xf32>
    %465 = arith.mulf %437, %464 : vector<2x32xf32>
    %c3_119 = arith.constant 3 : index
    %c0_120 = arith.constant 0 : index
    %c0_121 = arith.constant 0 : index
    %466 = vector.load %arg0[%c3_119, %c0_120, %c0_121] : memref<8x2x32xf32, #tpu.memory_space<vmem>>, vector<1x2x32xf32>
    %467 = vector.shape_cast %466 : vector<1x2x32xf32> to vector<2x32xf32>
    %468 = tpu.concatenate %467, %465, %426 in 1 : vector<2x32xf32>, vector<2x32xf32>, vector<2x32xf32> -> vector<2x96xf32>
    %c0_122 = arith.constant 0 : index
    %c0_123 = arith.constant 0 : index
    %469 = vector.load %arg1[%c0_122, %c0_123] : memref<96x512xf32, #tpu.memory_space<vmem>>, vector<96x512xf32>
    %cst_124 = arith.constant dense<0.000000e+00> : vector<2x512xf32>
    %470 = tpu.matmul %468, %469, %cst_124 {dimension_numbers = #tpu.dot_dimension_numbers<[1], [0], [0], [1], [0, 0, 1, 1], [], []>} : vector<2x96xf32>, vector<96x512xf32>, vector<2x512xf32> -> vector<2x512xf32>
    %471 = vector.broadcast %0 : vector<1x512xf32> to vector<2x512xf32>
    %472 = arith.addf %470, %471 : vector<2x512xf32>
    %473 = vector.extract_strided_slice %472 {offsets = [0, 0], sizes = [2, 128], strides = [1, 1]} : vector<2x512xf32> to vector<2x128xf32>
    %cst_125 = arith.constant dense<0.000000e+00> : vector<2xf32>
    %474 = vector.multi_reduction <add>, %473, %cst_125 [1] : vector<2x128xf32> to vector<2xf32>
    %475 = vector.shape_cast %474 : vector<2xf32> to vector<2x1xf32>
    %cst_126 = arith.constant 1.280000e+02 : f32
    %476 = vector.broadcast %cst_126 : f32 to vector<2x1xf32>
    %477 = arith.divf %475, %476 : vector<2x1xf32>
    %478 = vector.broadcast %477 : vector<2x1xf32> to vector<2x128xf32>
    %479 = arith.subf %473, %478 : vector<2x128xf32>
    %480 = arith.mulf %479, %479 : vector<2x128xf32>
    %cst_127 = arith.constant dense<0.000000e+00> : vector<2xf32>
    %481 = vector.multi_reduction <add>, %480, %cst_127 [1] : vector<2x128xf32> to vector<2xf32>
    %482 = vector.shape_cast %481 : vector<2xf32> to vector<2x1xf32>
    %cst_128 = arith.constant 1.280000e+02 : f32
    %483 = vector.broadcast %cst_128 : f32 to vector<2x1xf32>
    %484 = arith.divf %482, %483 : vector<2x1xf32>
    %cst_129 = arith.constant 9.99999974E-6 : f32
    %485 = vector.broadcast %cst_129 : f32 to vector<2x1xf32>
    %486 = arith.addf %484, %485 : vector<2x1xf32>
    %487 = math.rsqrt %486 : vector<2x1xf32>
    %488 = vector.broadcast %477 : vector<2x1xf32> to vector<2x128xf32>
    %489 = arith.subf %473, %488 : vector<2x128xf32>
    %490 = vector.broadcast %487 : vector<2x1xf32> to vector<2x128xf32>
    %491 = arith.mulf %489, %490 : vector<2x128xf32>
    %492 = vector.broadcast %1 : vector<1x128xf32> to vector<2x128xf32>
    %493 = arith.mulf %491, %492 : vector<2x128xf32>
    %494 = vector.broadcast %5 : vector<1x128xf32> to vector<2x128xf32>
    %495 = arith.addf %493, %494 : vector<2x128xf32>
    %496 = vector.extract_strided_slice %472 {offsets = [0, 128], sizes = [2, 128], strides = [1, 1]} : vector<2x512xf32> to vector<2x128xf32>
    %cst_130 = arith.constant dense<0.000000e+00> : vector<2xf32>
    %497 = vector.multi_reduction <add>, %496, %cst_130 [1] : vector<2x128xf32> to vector<2xf32>
    %498 = vector.shape_cast %497 : vector<2xf32> to vector<2x1xf32>
    %cst_131 = arith.constant 1.280000e+02 : f32
    %499 = vector.broadcast %cst_131 : f32 to vector<2x1xf32>
    %500 = arith.divf %498, %499 : vector<2x1xf32>
    %501 = vector.broadcast %500 : vector<2x1xf32> to vector<2x128xf32>
    %502 = arith.subf %496, %501 : vector<2x128xf32>
    %503 = arith.mulf %502, %502 : vector<2x128xf32>
    %cst_132 = arith.constant dense<0.000000e+00> : vector<2xf32>
    %504 = vector.multi_reduction <add>, %503, %cst_132 [1] : vector<2x128xf32> to vector<2xf32>
    %505 = vector.shape_cast %504 : vector<2xf32> to vector<2x1xf32>
    %cst_133 = arith.constant 1.280000e+02 : f32
    %506 = vector.broadcast %cst_133 : f32 to vector<2x1xf32>
    %507 = arith.divf %505, %506 : vector<2x1xf32>
    %cst_134 = arith.constant 9.99999974E-6 : f32
    %508 = vector.broadcast %cst_134 : f32 to vector<2x1xf32>
    %509 = arith.addf %507, %508 : vector<2x1xf32>
    %510 = math.rsqrt %509 : vector<2x1xf32>
    %511 = vector.broadcast %500 : vector<2x1xf32> to vector<2x128xf32>
    %512 = arith.subf %496, %511 : vector<2x128xf32>
    %513 = vector.broadcast %510 : vector<2x1xf32> to vector<2x128xf32>
    %514 = arith.mulf %512, %513 : vector<2x128xf32>
    %515 = vector.broadcast %2 : vector<1x128xf32> to vector<2x128xf32>
    %516 = arith.mulf %514, %515 : vector<2x128xf32>
    %517 = vector.broadcast %6 : vector<1x128xf32> to vector<2x128xf32>
    %518 = arith.addf %516, %517 : vector<2x128xf32>
    %519 = arith.addf %495, %518 : vector<2x128xf32>
    %520 = vector.extract_strided_slice %472 {offsets = [0, 256], sizes = [2, 128], strides = [1, 1]} : vector<2x512xf32> to vector<2x128xf32>
    %cst_135 = arith.constant dense<0.000000e+00> : vector<2xf32>
    %521 = vector.multi_reduction <add>, %520, %cst_135 [1] : vector<2x128xf32> to vector<2xf32>
    %522 = vector.shape_cast %521 : vector<2xf32> to vector<2x1xf32>
    %cst_136 = arith.constant 1.280000e+02 : f32
    %523 = vector.broadcast %cst_136 : f32 to vector<2x1xf32>
    %524 = arith.divf %522, %523 : vector<2x1xf32>
    %525 = vector.broadcast %524 : vector<2x1xf32> to vector<2x128xf32>
    %526 = arith.subf %520, %525 : vector<2x128xf32>
    %527 = arith.mulf %526, %526 : vector<2x128xf32>
    %cst_137 = arith.constant dense<0.000000e+00> : vector<2xf32>
    %528 = vector.multi_reduction <add>, %527, %cst_137 [1] : vector<2x128xf32> to vector<2xf32>
    %529 = vector.shape_cast %528 : vector<2xf32> to vector<2x1xf32>
    %cst_138 = arith.constant 1.280000e+02 : f32
    %530 = vector.broadcast %cst_138 : f32 to vector<2x1xf32>
    %531 = arith.divf %529, %530 : vector<2x1xf32>
    %cst_139 = arith.constant 9.99999974E-6 : f32
    %532 = vector.broadcast %cst_139 : f32 to vector<2x1xf32>
    %533 = arith.addf %531, %532 : vector<2x1xf32>
    %534 = math.rsqrt %533 : vector<2x1xf32>
    %535 = vector.broadcast %524 : vector<2x1xf32> to vector<2x128xf32>
    %536 = arith.subf %520, %535 : vector<2x128xf32>
    %537 = vector.broadcast %534 : vector<2x1xf32> to vector<2x128xf32>
    %538 = arith.mulf %536, %537 : vector<2x128xf32>
    %539 = vector.broadcast %3 : vector<1x128xf32> to vector<2x128xf32>
    %540 = arith.mulf %538, %539 : vector<2x128xf32>
    %541 = vector.broadcast %7 : vector<1x128xf32> to vector<2x128xf32>
    %542 = arith.addf %540, %541 : vector<2x128xf32>
    %543 = vector.extract_strided_slice %472 {offsets = [0, 384], sizes = [2, 128], strides = [1, 1]} : vector<2x512xf32> to vector<2x128xf32>
    %cst_140 = arith.constant dense<0.000000e+00> : vector<2xf32>
    %544 = vector.multi_reduction <add>, %543, %cst_140 [1] : vector<2x128xf32> to vector<2xf32>
    %545 = vector.shape_cast %544 : vector<2xf32> to vector<2x1xf32>
    %cst_141 = arith.constant 1.280000e+02 : f32
    %546 = vector.broadcast %cst_141 : f32 to vector<2x1xf32>
    %547 = arith.divf %545, %546 : vector<2x1xf32>
    %548 = vector.broadcast %547 : vector<2x1xf32> to vector<2x128xf32>
    %549 = arith.subf %543, %548 : vector<2x128xf32>
    %550 = arith.mulf %549, %549 : vector<2x128xf32>
    %cst_142 = arith.constant dense<0.000000e+00> : vector<2xf32>
    %551 = vector.multi_reduction <add>, %550, %cst_142 [1] : vector<2x128xf32> to vector<2xf32>
    %552 = vector.shape_cast %551 : vector<2xf32> to vector<2x1xf32>
    %cst_143 = arith.constant 1.280000e+02 : f32
    %553 = vector.broadcast %cst_143 : f32 to vector<2x1xf32>
    %554 = arith.divf %552, %553 : vector<2x1xf32>
    %cst_144 = arith.constant 9.99999974E-6 : f32
    %555 = vector.broadcast %cst_144 : f32 to vector<2x1xf32>
    %556 = arith.addf %554, %555 : vector<2x1xf32>
    %557 = math.rsqrt %556 : vector<2x1xf32>
    %558 = vector.broadcast %547 : vector<2x1xf32> to vector<2x128xf32>
    %559 = arith.subf %543, %558 : vector<2x128xf32>
    %560 = vector.broadcast %557 : vector<2x1xf32> to vector<2x128xf32>
    %561 = arith.mulf %559, %560 : vector<2x128xf32>
    %562 = vector.broadcast %4 : vector<1x128xf32> to vector<2x128xf32>
    %563 = arith.mulf %561, %562 : vector<2x128xf32>
    %564 = vector.broadcast %8 : vector<1x128xf32> to vector<2x128xf32>
    %565 = arith.addf %563, %564 : vector<2x128xf32>
    %566 = arith.addf %542, %565 : vector<2x128xf32>
    %567 = arith.negf %566 : vector<2x128xf32>
    %568 = math.exp %567 : vector<2x128xf32>
    %cst_145 = arith.constant 1.000000e+00 : f32
    %569 = vector.broadcast %cst_145 : f32 to vector<2x128xf32>
    %570 = arith.addf %569, %568 : vector<2x128xf32>
    %571 = arith.divf %569, %570 : vector<2x128xf32>
    %572 = math.tanh %566 : vector<2x128xf32>
    %573 = arith.select %15, %571, %572 : vector<2x128xi1>, vector<2x128xf32>
    %574 = vector.extract_strided_slice %573 {offsets = [0, 0], sizes = [2, 32], strides = [1, 1]} : vector<2x128xf32> to vector<2x32xf32>
    %575 = vector.extract_strided_slice %573 {offsets = [0, 32], sizes = [2, 32], strides = [1, 1]} : vector<2x128xf32> to vector<2x32xf32>
    %576 = vector.extract_strided_slice %573 {offsets = [0, 64], sizes = [2, 32], strides = [1, 1]} : vector<2x128xf32> to vector<2x32xf32>
    %577 = vector.extract_strided_slice %573 {offsets = [0, 96], sizes = [2, 32], strides = [1, 1]} : vector<2x128xf32> to vector<2x32xf32>
    %578 = arith.mulf %575, %402 : vector<2x32xf32>
    %579 = arith.mulf %574, %577 : vector<2x32xf32>
    %580 = arith.addf %578, %579 : vector<2x32xf32>
    %cst_146 = arith.constant dense<0.000000e+00> : vector<2xf32>
    %581 = vector.multi_reduction <add>, %580, %cst_146 [1] : vector<2x32xf32> to vector<2xf32>
    %582 = vector.shape_cast %581 : vector<2xf32> to vector<2x1xf32>
    %cst_147 = arith.constant 3.200000e+01 : f32
    %583 = vector.broadcast %cst_147 : f32 to vector<2x1xf32>
    %584 = arith.divf %582, %583 : vector<2x1xf32>
    %585 = vector.broadcast %584 : vector<2x1xf32> to vector<2x32xf32>
    %586 = arith.subf %580, %585 : vector<2x32xf32>
    %587 = arith.mulf %586, %586 : vector<2x32xf32>
    %cst_148 = arith.constant dense<0.000000e+00> : vector<2xf32>
    %588 = vector.multi_reduction <add>, %587, %cst_148 [1] : vector<2x32xf32> to vector<2xf32>
    %589 = vector.shape_cast %588 : vector<2xf32> to vector<2x1xf32>
    %cst_149 = arith.constant 3.200000e+01 : f32
    %590 = vector.broadcast %cst_149 : f32 to vector<2x1xf32>
    %591 = arith.divf %589, %590 : vector<2x1xf32>
    %cst_150 = arith.constant 9.99999974E-6 : f32
    %592 = vector.broadcast %cst_150 : f32 to vector<2x1xf32>
    %593 = arith.addf %591, %592 : vector<2x1xf32>
    %594 = math.rsqrt %593 : vector<2x1xf32>
    %595 = vector.broadcast %584 : vector<2x1xf32> to vector<2x32xf32>
    %596 = arith.subf %580, %595 : vector<2x32xf32>
    %597 = vector.broadcast %594 : vector<2x1xf32> to vector<2x32xf32>
    %598 = arith.mulf %596, %597 : vector<2x32xf32>
    %599 = vector.broadcast %10 : vector<1x32xf32> to vector<2x32xf32>
    %600 = arith.mulf %598, %599 : vector<2x32xf32>
    %601 = vector.broadcast %12 : vector<1x32xf32> to vector<2x32xf32>
    %602 = arith.addf %600, %601 : vector<2x32xf32>
    %603 = math.tanh %602 : vector<2x32xf32>
    %604 = arith.mulf %576, %603 : vector<2x32xf32>
    %c4 = arith.constant 4 : index
    %c0_151 = arith.constant 0 : index
    %605 = vector.load %arg5[%c4, %c0_151] : memref<16x32xf32, #tpu.memory_space<vmem>>, vector<2x32xf32>
    tpu.vector_store %arg5[%c4, %c0_151], %604 {strides = array<i32>} : memref<16x32xf32, #tpu.memory_space<vmem>>, vector<2x32xf32>,
    %606 = arith.negf %519 : vector<2x128xf32>
    %607 = math.exp %606 : vector<2x128xf32>
    %cst_152 = arith.constant 1.000000e+00 : f32
    %608 = vector.broadcast %cst_152 : f32 to vector<2x128xf32>
    %609 = arith.addf %608, %607 : vector<2x128xf32>
    %610 = arith.divf %608, %609 : vector<2x128xf32>
    %611 = math.tanh %519 : vector<2x128xf32>
    %612 = arith.select %15, %610, %611 : vector<2x128xi1>, vector<2x128xf32>
    %613 = vector.extract_strided_slice %612 {offsets = [0, 0], sizes = [2, 32], strides = [1, 1]} : vector<2x128xf32> to vector<2x32xf32>
    %614 = vector.extract_strided_slice %612 {offsets = [0, 32], sizes = [2, 32], strides = [1, 1]} : vector<2x128xf32> to vector<2x32xf32>
    %615 = vector.extract_strided_slice %612 {offsets = [0, 64], sizes = [2, 32], strides = [1, 1]} : vector<2x128xf32> to vector<2x32xf32>
    %616 = vector.extract_strided_slice %612 {offsets = [0, 96], sizes = [2, 32], strides = [1, 1]} : vector<2x128xf32> to vector<2x32xf32>
    %617 = arith.mulf %614, %441 : vector<2x32xf32>
    %618 = arith.mulf %613, %616 : vector<2x32xf32>
    %619 = arith.addf %617, %618 : vector<2x32xf32>
    %cst_153 = arith.constant dense<0.000000e+00> : vector<2xf32>
    %620 = vector.multi_reduction <add>, %619, %cst_153 [1] : vector<2x32xf32> to vector<2xf32>
    %621 = vector.shape_cast %620 : vector<2xf32> to vector<2x1xf32>
    %cst_154 = arith.constant 3.200000e+01 : f32
    %622 = vector.broadcast %cst_154 : f32 to vector<2x1xf32>
    %623 = arith.divf %621, %622 : vector<2x1xf32>
    %624 = vector.broadcast %623 : vector<2x1xf32> to vector<2x32xf32>
    %625 = arith.subf %619, %624 : vector<2x32xf32>
    %626 = arith.mulf %625, %625 : vector<2x32xf32>
    %cst_155 = arith.constant dense<0.000000e+00> : vector<2xf32>
    %627 = vector.multi_reduction <add>, %626, %cst_155 [1] : vector<2x32xf32> to vector<2xf32>
    %628 = vector.shape_cast %627 : vector<2xf32> to vector<2x1xf32>
    %cst_156 = arith.constant 3.200000e+01 : f32
    %629 = vector.broadcast %cst_156 : f32 to vector<2x1xf32>
    %630 = arith.divf %628, %629 : vector<2x1xf32>
    %cst_157 = arith.constant 9.99999974E-6 : f32
    %631 = vector.broadcast %cst_157 : f32 to vector<2x1xf32>
    %632 = arith.addf %630, %631 : vector<2x1xf32>
    %633 = math.rsqrt %632 : vector<2x1xf32>
    %634 = vector.broadcast %623 : vector<2x1xf32> to vector<2x32xf32>
    %635 = arith.subf %619, %634 : vector<2x32xf32>
    %636 = vector.broadcast %633 : vector<2x1xf32> to vector<2x32xf32>
    %637 = arith.mulf %635, %636 : vector<2x32xf32>
    %638 = vector.broadcast %9 : vector<1x32xf32> to vector<2x32xf32>
    %639 = arith.mulf %637, %638 : vector<2x32xf32>
    %640 = vector.broadcast %11 : vector<1x32xf32> to vector<2x32xf32>
    %641 = arith.addf %639, %640 : vector<2x32xf32>
    %642 = math.tanh %641 : vector<2x32xf32>
    %643 = arith.mulf %615, %642 : vector<2x32xf32>
    %c4_158 = arith.constant 4 : index
    %c0_159 = arith.constant 0 : index
    %c0_160 = arith.constant 0 : index
    %644 = vector.load %arg0[%c4_158, %c0_159, %c0_160] : memref<8x2x32xf32, #tpu.memory_space<vmem>>, vector<1x2x32xf32>
    %645 = vector.shape_cast %644 : vector<1x2x32xf32> to vector<2x32xf32>
    %646 = tpu.concatenate %645, %643, %604 in 1 : vector<2x32xf32>, vector<2x32xf32>, vector<2x32xf32> -> vector<2x96xf32>
    %c0_161 = arith.constant 0 : index
    %c0_162 = arith.constant 0 : index
    %647 = vector.load %arg1[%c0_161, %c0_162] : memref<96x512xf32, #tpu.memory_space<vmem>>, vector<96x512xf32>
    %cst_163 = arith.constant dense<0.000000e+00> : vector<2x512xf32>
    %648 = tpu.matmul %646, %647, %cst_163 {dimension_numbers = #tpu.dot_dimension_numbers<[1], [0], [0], [1], [0, 0, 1, 1], [], []>} : vector<2x96xf32>, vector<96x512xf32>, vector<2x512xf32> -> vector<2x512xf32>
    %649 = vector.broadcast %0 : vector<1x512xf32> to vector<2x512xf32>
    %650 = arith.addf %648, %649 : vector<2x512xf32>
    %651 = vector.extract_strided_slice %650 {offsets = [0, 0], sizes = [2, 128], strides = [1, 1]} : vector<2x512xf32> to vector<2x128xf32>
    %cst_164 = arith.constant dense<0.000000e+00> : vector<2xf32>
    %652 = vector.multi_reduction <add>, %651, %cst_164 [1] : vector<2x128xf32> to vector<2xf32>
    %653 = vector.shape_cast %652 : vector<2xf32> to vector<2x1xf32>
    %cst_165 = arith.constant 1.280000e+02 : f32
    %654 = vector.broadcast %cst_165 : f32 to vector<2x1xf32>
    %655 = arith.divf %653, %654 : vector<2x1xf32>
    %656 = vector.broadcast %655 : vector<2x1xf32> to vector<2x128xf32>
    %657 = arith.subf %651, %656 : vector<2x128xf32>
    %658 = arith.mulf %657, %657 : vector<2x128xf32>
    %cst_166 = arith.constant dense<0.000000e+00> : vector<2xf32>
    %659 = vector.multi_reduction <add>, %658, %cst_166 [1] : vector<2x128xf32> to vector<2xf32>
    %660 = vector.shape_cast %659 : vector<2xf32> to vector<2x1xf32>
    %cst_167 = arith.constant 1.280000e+02 : f32
    %661 = vector.broadcast %cst_167 : f32 to vector<2x1xf32>
    %662 = arith.divf %660, %661 : vector<2x1xf32>
    %cst_168 = arith.constant 9.99999974E-6 : f32
    %663 = vector.broadcast %cst_168 : f32 to vector<2x1xf32>
    %664 = arith.addf %662, %663 : vector<2x1xf32>
    %665 = math.rsqrt %664 : vector<2x1xf32>
    %666 = vector.broadcast %655 : vector<2x1xf32> to vector<2x128xf32>
    %667 = arith.subf %651, %666 : vector<2x128xf32>
    %668 = vector.broadcast %665 : vector<2x1xf32> to vector<2x128xf32>
    %669 = arith.mulf %667, %668 : vector<2x128xf32>
    %670 = vector.broadcast %1 : vector<1x128xf32> to vector<2x128xf32>
    %671 = arith.mulf %669, %670 : vector<2x128xf32>
    %672 = vector.broadcast %5 : vector<1x128xf32> to vector<2x128xf32>
    %673 = arith.addf %671, %672 : vector<2x128xf32>
    %674 = vector.extract_strided_slice %650 {offsets = [0, 128], sizes = [2, 128], strides = [1, 1]} : vector<2x512xf32> to vector<2x128xf32>
    %cst_169 = arith.constant dense<0.000000e+00> : vector<2xf32>
    %675 = vector.multi_reduction <add>, %674, %cst_169 [1] : vector<2x128xf32> to vector<2xf32>
    %676 = vector.shape_cast %675 : vector<2xf32> to vector<2x1xf32>
    %cst_170 = arith.constant 1.280000e+02 : f32
    %677 = vector.broadcast %cst_170 : f32 to vector<2x1xf32>
    %678 = arith.divf %676, %677 : vector<2x1xf32>
    %679 = vector.broadcast %678 : vector<2x1xf32> to vector<2x128xf32>
    %680 = arith.subf %674, %679 : vector<2x128xf32>
    %681 = arith.mulf %680, %680 : vector<2x128xf32>
    %cst_171 = arith.constant dense<0.000000e+00> : vector<2xf32>
    %682 = vector.multi_reduction <add>, %681, %cst_171 [1] : vector<2x128xf32> to vector<2xf32>
    %683 = vector.shape_cast %682 : vector<2xf32> to vector<2x1xf32>
    %cst_172 = arith.constant 1.280000e+02 : f32
    %684 = vector.broadcast %cst_172 : f32 to vector<2x1xf32>
    %685 = arith.divf %683, %684 : vector<2x1xf32>
    %cst_173 = arith.constant 9.99999974E-6 : f32
    %686 = vector.broadcast %cst_173 : f32 to vector<2x1xf32>
    %687 = arith.addf %685, %686 : vector<2x1xf32>
    %688 = math.rsqrt %687 : vector<2x1xf32>
    %689 = vector.broadcast %678 : vector<2x1xf32> to vector<2x128xf32>
    %690 = arith.subf %674, %689 : vector<2x128xf32>
    %691 = vector.broadcast %688 : vector<2x1xf32> to vector<2x128xf32>
    %692 = arith.mulf %690, %691 : vector<2x128xf32>
    %693 = vector.broadcast %2 : vector<1x128xf32> to vector<2x128xf32>
    %694 = arith.mulf %692, %693 : vector<2x128xf32>
    %695 = vector.broadcast %6 : vector<1x128xf32> to vector<2x128xf32>
    %696 = arith.addf %694, %695 : vector<2x128xf32>
    %697 = arith.addf %673, %696 : vector<2x128xf32>
    %698 = vector.extract_strided_slice %650 {offsets = [0, 256], sizes = [2, 128], strides = [1, 1]} : vector<2x512xf32> to vector<2x128xf32>
    %cst_174 = arith.constant dense<0.000000e+00> : vector<2xf32>
    %699 = vector.multi_reduction <add>, %698, %cst_174 [1] : vector<2x128xf32> to vector<2xf32>
    %700 = vector.shape_cast %699 : vector<2xf32> to vector<2x1xf32>
    %cst_175 = arith.constant 1.280000e+02 : f32
    %701 = vector.broadcast %cst_175 : f32 to vector<2x1xf32>
    %702 = arith.divf %700, %701 : vector<2x1xf32>
    %703 = vector.broadcast %702 : vector<2x1xf32> to vector<2x128xf32>
    %704 = arith.subf %698, %703 : vector<2x128xf32>
    %705 = arith.mulf %704, %704 : vector<2x128xf32>
    %cst_176 = arith.constant dense<0.000000e+00> : vector<2xf32>
    %706 = vector.multi_reduction <add>, %705, %cst_176 [1] : vector<2x128xf32> to vector<2xf32>
    %707 = vector.shape_cast %706 : vector<2xf32> to vector<2x1xf32>
    %cst_177 = arith.constant 1.280000e+02 : f32
    %708 = vector.broadcast %cst_177 : f32 to vector<2x1xf32>
    %709 = arith.divf %707, %708 : vector<2x1xf32>
    %cst_178 = arith.constant 9.99999974E-6 : f32
    %710 = vector.broadcast %cst_178 : f32 to vector<2x1xf32>
    %711 = arith.addf %709, %710 : vector<2x1xf32>
    %712 = math.rsqrt %711 : vector<2x1xf32>
    %713 = vector.broadcast %702 : vector<2x1xf32> to vector<2x128xf32>
    %714 = arith.subf %698, %713 : vector<2x128xf32>
    %715 = vector.broadcast %712 : vector<2x1xf32> to vector<2x128xf32>
    %716 = arith.mulf %714, %715 : vector<2x128xf32>
    %717 = vector.broadcast %3 : vector<1x128xf32> to vector<2x128xf32>
    %718 = arith.mulf %716, %717 : vector<2x128xf32>
    %719 = vector.broadcast %7 : vector<1x128xf32> to vector<2x128xf32>
    %720 = arith.addf %718, %719 : vector<2x128xf32>
    %721 = vector.extract_strided_slice %650 {offsets = [0, 384], sizes = [2, 128], strides = [1, 1]} : vector<2x512xf32> to vector<2x128xf32>
    %cst_179 = arith.constant dense<0.000000e+00> : vector<2xf32>
    %722 = vector.multi_reduction <add>, %721, %cst_179 [1] : vector<2x128xf32> to vector<2xf32>
    %723 = vector.shape_cast %722 : vector<2xf32> to vector<2x1xf32>
    %cst_180 = arith.constant 1.280000e+02 : f32
    %724 = vector.broadcast %cst_180 : f32 to vector<2x1xf32>
    %725 = arith.divf %723, %724 : vector<2x1xf32>
    %726 = vector.broadcast %725 : vector<2x1xf32> to vector<2x128xf32>
    %727 = arith.subf %721, %726 : vector<2x128xf32>
    %728 = arith.mulf %727, %727 : vector<2x128xf32>
    %cst_181 = arith.constant dense<0.000000e+00> : vector<2xf32>
    %729 = vector.multi_reduction <add>, %728, %cst_181 [1] : vector<2x128xf32> to vector<2xf32>
    %730 = vector.shape_cast %729 : vector<2xf32> to vector<2x1xf32>
    %cst_182 = arith.constant 1.280000e+02 : f32
    %731 = vector.broadcast %cst_182 : f32 to vector<2x1xf32>
    %732 = arith.divf %730, %731 : vector<2x1xf32>
    %cst_183 = arith.constant 9.99999974E-6 : f32
    %733 = vector.broadcast %cst_183 : f32 to vector<2x1xf32>
    %734 = arith.addf %732, %733 : vector<2x1xf32>
    %735 = math.rsqrt %734 : vector<2x1xf32>
    %736 = vector.broadcast %725 : vector<2x1xf32> to vector<2x128xf32>
    %737 = arith.subf %721, %736 : vector<2x128xf32>
    %738 = vector.broadcast %735 : vector<2x1xf32> to vector<2x128xf32>
    %739 = arith.mulf %737, %738 : vector<2x128xf32>
    %740 = vector.broadcast %4 : vector<1x128xf32> to vector<2x128xf32>
    %741 = arith.mulf %739, %740 : vector<2x128xf32>
    %742 = vector.broadcast %8 : vector<1x128xf32> to vector<2x128xf32>
    %743 = arith.addf %741, %742 : vector<2x128xf32>
    %744 = arith.addf %720, %743 : vector<2x128xf32>
    %745 = arith.negf %744 : vector<2x128xf32>
    %746 = math.exp %745 : vector<2x128xf32>
    %cst_184 = arith.constant 1.000000e+00 : f32
    %747 = vector.broadcast %cst_184 : f32 to vector<2x128xf32>
    %748 = arith.addf %747, %746 : vector<2x128xf32>
    %749 = arith.divf %747, %748 : vector<2x128xf32>
    %750 = math.tanh %744 : vector<2x128xf32>
    %751 = arith.select %15, %749, %750 : vector<2x128xi1>, vector<2x128xf32>
    %752 = vector.extract_strided_slice %751 {offsets = [0, 0], sizes = [2, 32], strides = [1, 1]} : vector<2x128xf32> to vector<2x32xf32>
    %753 = vector.extract_strided_slice %751 {offsets = [0, 32], sizes = [2, 32], strides = [1, 1]} : vector<2x128xf32> to vector<2x32xf32>
    %754 = vector.extract_strided_slice %751 {offsets = [0, 64], sizes = [2, 32], strides = [1, 1]} : vector<2x128xf32> to vector<2x32xf32>
    %755 = vector.extract_strided_slice %751 {offsets = [0, 96], sizes = [2, 32], strides = [1, 1]} : vector<2x128xf32> to vector<2x32xf32>
    %756 = arith.mulf %753, %580 : vector<2x32xf32>
    %757 = arith.mulf %752, %755 : vector<2x32xf32>
    %758 = arith.addf %756, %757 : vector<2x32xf32>
    %cst_185 = arith.constant dense<0.000000e+00> : vector<2xf32>
    %759 = vector.multi_reduction <add>, %758, %cst_185 [1] : vector<2x32xf32> to vector<2xf32>
    %760 = vector.shape_cast %759 : vector<2xf32> to vector<2x1xf32>
    %cst_186 = arith.constant 3.200000e+01 : f32
    %761 = vector.broadcast %cst_186 : f32 to vector<2x1xf32>
    %762 = arith.divf %760, %761 : vector<2x1xf32>
    %763 = vector.broadcast %762 : vector<2x1xf32> to vector<2x32xf32>
    %764 = arith.subf %758, %763 : vector<2x32xf32>
    %765 = arith.mulf %764, %764 : vector<2x32xf32>
    %cst_187 = arith.constant dense<0.000000e+00> : vector<2xf32>
    %766 = vector.multi_reduction <add>, %765, %cst_187 [1] : vector<2x32xf32> to vector<2xf32>
    %767 = vector.shape_cast %766 : vector<2xf32> to vector<2x1xf32>
    %cst_188 = arith.constant 3.200000e+01 : f32
    %768 = vector.broadcast %cst_188 : f32 to vector<2x1xf32>
    %769 = arith.divf %767, %768 : vector<2x1xf32>
    %cst_189 = arith.constant 9.99999974E-6 : f32
    %770 = vector.broadcast %cst_189 : f32 to vector<2x1xf32>
    %771 = arith.addf %769, %770 : vector<2x1xf32>
    %772 = math.rsqrt %771 : vector<2x1xf32>
    %773 = vector.broadcast %762 : vector<2x1xf32> to vector<2x32xf32>
    %774 = arith.subf %758, %773 : vector<2x32xf32>
    %775 = vector.broadcast %772 : vector<2x1xf32> to vector<2x32xf32>
    %776 = arith.mulf %774, %775 : vector<2x32xf32>
    %777 = vector.broadcast %10 : vector<1x32xf32> to vector<2x32xf32>
    %778 = arith.mulf %776, %777 : vector<2x32xf32>
    %779 = vector.broadcast %12 : vector<1x32xf32> to vector<2x32xf32>
    %780 = arith.addf %778, %779 : vector<2x32xf32>
    %781 = math.tanh %780 : vector<2x32xf32>
    %782 = arith.mulf %754, %781 : vector<2x32xf32>
    %c6 = arith.constant 6 : index
    %c0_190 = arith.constant 0 : index
    %783 = vector.load %arg5[%c6, %c0_190] : memref<16x32xf32, #tpu.memory_space<vmem>>, vector<2x32xf32>
    tpu.vector_store %arg5[%c6, %c0_190], %782 {strides = array<i32>} : memref<16x32xf32, #tpu.memory_space<vmem>>, vector<2x32xf32>,
    %784 = arith.negf %697 : vector<2x128xf32>
    %785 = math.exp %784 : vector<2x128xf32>
    %cst_191 = arith.constant 1.000000e+00 : f32
    %786 = vector.broadcast %cst_191 : f32 to vector<2x128xf32>
    %787 = arith.addf %786, %785 : vector<2x128xf32>
    %788 = arith.divf %786, %787 : vector<2x128xf32>
    %789 = math.tanh %697 : vector<2x128xf32>
    %790 = arith.select %15, %788, %789 : vector<2x128xi1>, vector<2x128xf32>
    %791 = vector.extract_strided_slice %790 {offsets = [0, 0], sizes = [2, 32], strides = [1, 1]} : vector<2x128xf32> to vector<2x32xf32>
    %792 = vector.extract_strided_slice %790 {offsets = [0, 32], sizes = [2, 32], strides = [1, 1]} : vector<2x128xf32> to vector<2x32xf32>
    %793 = vector.extract_strided_slice %790 {offsets = [0, 64], sizes = [2, 32], strides = [1, 1]} : vector<2x128xf32> to vector<2x32xf32>
    %794 = vector.extract_strided_slice %790 {offsets = [0, 96], sizes = [2, 32], strides = [1, 1]} : vector<2x128xf32> to vector<2x32xf32>
    %795 = arith.mulf %792, %619 : vector<2x32xf32>
    %796 = arith.mulf %791, %794 : vector<2x32xf32>
    %797 = arith.addf %795, %796 : vector<2x32xf32>
    %cst_192 = arith.constant dense<0.000000e+00> : vector<2xf32>
    %798 = vector.multi_reduction <add>, %797, %cst_192 [1] : vector<2x32xf32> to vector<2xf32>
    %799 = vector.shape_cast %798 : vector<2xf32> to vector<2x1xf32>
    %cst_193 = arith.constant 3.200000e+01 : f32
    %800 = vector.broadcast %cst_193 : f32 to vector<2x1xf32>
    %801 = arith.divf %799, %800 : vector<2x1xf32>
    %802 = vector.broadcast %801 : vector<2x1xf32> to vector<2x32xf32>
    %803 = arith.subf %797, %802 : vector<2x32xf32>
    %804 = arith.mulf %803, %803 : vector<2x32xf32>
    %cst_194 = arith.constant dense<0.000000e+00> : vector<2xf32>
    %805 = vector.multi_reduction <add>, %804, %cst_194 [1] : vector<2x32xf32> to vector<2xf32>
    %806 = vector.shape_cast %805 : vector<2xf32> to vector<2x1xf32>
    %cst_195 = arith.constant 3.200000e+01 : f32
    %807 = vector.broadcast %cst_195 : f32 to vector<2x1xf32>
    %808 = arith.divf %806, %807 : vector<2x1xf32>
    %cst_196 = arith.constant 9.99999974E-6 : f32
    %809 = vector.broadcast %cst_196 : f32 to vector<2x1xf32>
    %810 = arith.addf %808, %809 : vector<2x1xf32>
    %811 = math.rsqrt %810 : vector<2x1xf32>
    %812 = vector.broadcast %801 : vector<2x1xf32> to vector<2x32xf32>
    %813 = arith.subf %797, %812 : vector<2x32xf32>
    %814 = vector.broadcast %811 : vector<2x1xf32> to vector<2x32xf32>
    %815 = arith.mulf %813, %814 : vector<2x32xf32>
    %816 = vector.broadcast %9 : vector<1x32xf32> to vector<2x32xf32>
    %817 = arith.mulf %815, %816 : vector<2x32xf32>
    %818 = vector.broadcast %11 : vector<1x32xf32> to vector<2x32xf32>
    %819 = arith.addf %817, %818 : vector<2x32xf32>
    %820 = math.tanh %819 : vector<2x32xf32>
    %821 = arith.mulf %793, %820 : vector<2x32xf32>
    %c5 = arith.constant 5 : index
    %c0_197 = arith.constant 0 : index
    %c0_198 = arith.constant 0 : index
    %822 = vector.load %arg0[%c5, %c0_197, %c0_198] : memref<8x2x32xf32, #tpu.memory_space<vmem>>, vector<1x2x32xf32>
    %823 = vector.shape_cast %822 : vector<1x2x32xf32> to vector<2x32xf32>
    %824 = tpu.concatenate %823, %821, %782 in 1 : vector<2x32xf32>, vector<2x32xf32>, vector<2x32xf32> -> vector<2x96xf32>
    %c0_199 = arith.constant 0 : index
    %c0_200 = arith.constant 0 : index
    %825 = vector.load %arg1[%c0_199, %c0_200] : memref<96x512xf32, #tpu.memory_space<vmem>>, vector<96x512xf32>
    %cst_201 = arith.constant dense<0.000000e+00> : vector<2x512xf32>
    %826 = tpu.matmul %824, %825, %cst_201 {dimension_numbers = #tpu.dot_dimension_numbers<[1], [0], [0], [1], [0, 0, 1, 1], [], []>} : vector<2x96xf32>, vector<96x512xf32>, vector<2x512xf32> -> vector<2x512xf32>
    %827 = vector.broadcast %0 : vector<1x512xf32> to vector<2x512xf32>
    %828 = arith.addf %826, %827 : vector<2x512xf32>
    %829 = vector.extract_strided_slice %828 {offsets = [0, 0], sizes = [2, 128], strides = [1, 1]} : vector<2x512xf32> to vector<2x128xf32>
    %cst_202 = arith.constant dense<0.000000e+00> : vector<2xf32>
    %830 = vector.multi_reduction <add>, %829, %cst_202 [1] : vector<2x128xf32> to vector<2xf32>
    %831 = vector.shape_cast %830 : vector<2xf32> to vector<2x1xf32>
    %cst_203 = arith.constant 1.280000e+02 : f32
    %832 = vector.broadcast %cst_203 : f32 to vector<2x1xf32>
    %833 = arith.divf %831, %832 : vector<2x1xf32>
    %834 = vector.broadcast %833 : vector<2x1xf32> to vector<2x128xf32>
    %835 = arith.subf %829, %834 : vector<2x128xf32>
    %836 = arith.mulf %835, %835 : vector<2x128xf32>
    %cst_204 = arith.constant dense<0.000000e+00> : vector<2xf32>
    %837 = vector.multi_reduction <add>, %836, %cst_204 [1] : vector<2x128xf32> to vector<2xf32>
    %838 = vector.shape_cast %837 : vector<2xf32> to vector<2x1xf32>
    %cst_205 = arith.constant 1.280000e+02 : f32
    %839 = vector.broadcast %cst_205 : f32 to vector<2x1xf32>
    %840 = arith.divf %838, %839 : vector<2x1xf32>
    %cst_206 = arith.constant 9.99999974E-6 : f32
    %841 = vector.broadcast %cst_206 : f32 to vector<2x1xf32>
    %842 = arith.addf %840, %841 : vector<2x1xf32>
    %843 = math.rsqrt %842 : vector<2x1xf32>
    %844 = vector.broadcast %833 : vector<2x1xf32> to vector<2x128xf32>
    %845 = arith.subf %829, %844 : vector<2x128xf32>
    %846 = vector.broadcast %843 : vector<2x1xf32> to vector<2x128xf32>
    %847 = arith.mulf %845, %846 : vector<2x128xf32>
    %848 = vector.broadcast %1 : vector<1x128xf32> to vector<2x128xf32>
    %849 = arith.mulf %847, %848 : vector<2x128xf32>
    %850 = vector.broadcast %5 : vector<1x128xf32> to vector<2x128xf32>
    %851 = arith.addf %849, %850 : vector<2x128xf32>
    %852 = vector.extract_strided_slice %828 {offsets = [0, 128], sizes = [2, 128], strides = [1, 1]} : vector<2x512xf32> to vector<2x128xf32>
    %cst_207 = arith.constant dense<0.000000e+00> : vector<2xf32>
    %853 = vector.multi_reduction <add>, %852, %cst_207 [1] : vector<2x128xf32> to vector<2xf32>
    %854 = vector.shape_cast %853 : vector<2xf32> to vector<2x1xf32>
    %cst_208 = arith.constant 1.280000e+02 : f32
    %855 = vector.broadcast %cst_208 : f32 to vector<2x1xf32>
    %856 = arith.divf %854, %855 : vector<2x1xf32>
    %857 = vector.broadcast %856 : vector<2x1xf32> to vector<2x128xf32>
    %858 = arith.subf %852, %857 : vector<2x128xf32>
    %859 = arith.mulf %858, %858 : vector<2x128xf32>
    %cst_209 = arith.constant dense<0.000000e+00> : vector<2xf32>
    %860 = vector.multi_reduction <add>, %859, %cst_209 [1] : vector<2x128xf32> to vector<2xf32>
    %861 = vector.shape_cast %860 : vector<2xf32> to vector<2x1xf32>
    %cst_210 = arith.constant 1.280000e+02 : f32
    %862 = vector.broadcast %cst_210 : f32 to vector<2x1xf32>
    %863 = arith.divf %861, %862 : vector<2x1xf32>
    %cst_211 = arith.constant 9.99999974E-6 : f32
    %864 = vector.broadcast %cst_211 : f32 to vector<2x1xf32>
    %865 = arith.addf %863, %864 : vector<2x1xf32>
    %866 = math.rsqrt %865 : vector<2x1xf32>
    %867 = vector.broadcast %856 : vector<2x1xf32> to vector<2x128xf32>
    %868 = arith.subf %852, %867 : vector<2x128xf32>
    %869 = vector.broadcast %866 : vector<2x1xf32> to vector<2x128xf32>
    %870 = arith.mulf %868, %869 : vector<2x128xf32>
    %871 = vector.broadcast %2 : vector<1x128xf32> to vector<2x128xf32>
    %872 = arith.mulf %870, %871 : vector<2x128xf32>
    %873 = vector.broadcast %6 : vector<1x128xf32> to vector<2x128xf32>
    %874 = arith.addf %872, %873 : vector<2x128xf32>
    %875 = arith.addf %851, %874 : vector<2x128xf32>
    %876 = vector.extract_strided_slice %828 {offsets = [0, 256], sizes = [2, 128], strides = [1, 1]} : vector<2x512xf32> to vector<2x128xf32>
    %cst_212 = arith.constant dense<0.000000e+00> : vector<2xf32>
    %877 = vector.multi_reduction <add>, %876, %cst_212 [1] : vector<2x128xf32> to vector<2xf32>
    %878 = vector.shape_cast %877 : vector<2xf32> to vector<2x1xf32>
    %cst_213 = arith.constant 1.280000e+02 : f32
    %879 = vector.broadcast %cst_213 : f32 to vector<2x1xf32>
    %880 = arith.divf %878, %879 : vector<2x1xf32>
    %881 = vector.broadcast %880 : vector<2x1xf32> to vector<2x128xf32>
    %882 = arith.subf %876, %881 : vector<2x128xf32>
    %883 = arith.mulf %882, %882 : vector<2x128xf32>
    %cst_214 = arith.constant dense<0.000000e+00> : vector<2xf32>
    %884 = vector.multi_reduction <add>, %883, %cst_214 [1] : vector<2x128xf32> to vector<2xf32>
    %885 = vector.shape_cast %884 : vector<2xf32> to vector<2x1xf32>
    %cst_215 = arith.constant 1.280000e+02 : f32
    %886 = vector.broadcast %cst_215 : f32 to vector<2x1xf32>
    %887 = arith.divf %885, %886 : vector<2x1xf32>
    %cst_216 = arith.constant 9.99999974E-6 : f32
    %888 = vector.broadcast %cst_216 : f32 to vector<2x1xf32>
    %889 = arith.addf %887, %888 : vector<2x1xf32>
    %890 = math.rsqrt %889 : vector<2x1xf32>
    %891 = vector.broadcast %880 : vector<2x1xf32> to vector<2x128xf32>
    %892 = arith.subf %876, %891 : vector<2x128xf32>
    %893 = vector.broadcast %890 : vector<2x1xf32> to vector<2x128xf32>
    %894 = arith.mulf %892, %893 : vector<2x128xf32>
    %895 = vector.broadcast %3 : vector<1x128xf32> to vector<2x128xf32>
    %896 = arith.mulf %894, %895 : vector<2x128xf32>
    %897 = vector.broadcast %7 : vector<1x128xf32> to vector<2x128xf32>
    %898 = arith.addf %896, %897 : vector<2x128xf32>
    %899 = vector.extract_strided_slice %828 {offsets = [0, 384], sizes = [2, 128], strides = [1, 1]} : vector<2x512xf32> to vector<2x128xf32>
    %cst_217 = arith.constant dense<0.000000e+00> : vector<2xf32>
    %900 = vector.multi_reduction <add>, %899, %cst_217 [1] : vector<2x128xf32> to vector<2xf32>
    %901 = vector.shape_cast %900 : vector<2xf32> to vector<2x1xf32>
    %cst_218 = arith.constant 1.280000e+02 : f32
    %902 = vector.broadcast %cst_218 : f32 to vector<2x1xf32>
    %903 = arith.divf %901, %902 : vector<2x1xf32>
    %904 = vector.broadcast %903 : vector<2x1xf32> to vector<2x128xf32>
    %905 = arith.subf %899, %904 : vector<2x128xf32>
    %906 = arith.mulf %905, %905 : vector<2x128xf32>
    %cst_219 = arith.constant dense<0.000000e+00> : vector<2xf32>
    %907 = vector.multi_reduction <add>, %906, %cst_219 [1] : vector<2x128xf32> to vector<2xf32>
    %908 = vector.shape_cast %907 : vector<2xf32> to vector<2x1xf32>
    %cst_220 = arith.constant 1.280000e+02 : f32
    %909 = vector.broadcast %cst_220 : f32 to vector<2x1xf32>
    %910 = arith.divf %908, %909 : vector<2x1xf32>
    %cst_221 = arith.constant 9.99999974E-6 : f32
    %911 = vector.broadcast %cst_221 : f32 to vector<2x1xf32>
    %912 = arith.addf %910, %911 : vector<2x1xf32>
    %913 = math.rsqrt %912 : vector<2x1xf32>
    %914 = vector.broadcast %903 : vector<2x1xf32> to vector<2x128xf32>
    %915 = arith.subf %899, %914 : vector<2x128xf32>
    %916 = vector.broadcast %913 : vector<2x1xf32> to vector<2x128xf32>
    %917 = arith.mulf %915, %916 : vector<2x128xf32>
    %918 = vector.broadcast %4 : vector<1x128xf32> to vector<2x128xf32>
    %919 = arith.mulf %917, %918 : vector<2x128xf32>
    %920 = vector.broadcast %8 : vector<1x128xf32> to vector<2x128xf32>
    %921 = arith.addf %919, %920 : vector<2x128xf32>
    %922 = arith.addf %898, %921 : vector<2x128xf32>
    %923 = arith.negf %922 : vector<2x128xf32>
    %924 = math.exp %923 : vector<2x128xf32>
    %cst_222 = arith.constant 1.000000e+00 : f32
    %925 = vector.broadcast %cst_222 : f32 to vector<2x128xf32>
    %926 = arith.addf %925, %924 : vector<2x128xf32>
    %927 = arith.divf %925, %926 : vector<2x128xf32>
    %928 = math.tanh %922 : vector<2x128xf32>
    %929 = arith.select %15, %927, %928 : vector<2x128xi1>, vector<2x128xf32>
    %930 = vector.extract_strided_slice %929 {offsets = [0, 0], sizes = [2, 32], strides = [1, 1]} : vector<2x128xf32> to vector<2x32xf32>
    %931 = vector.extract_strided_slice %929 {offsets = [0, 32], sizes = [2, 32], strides = [1, 1]} : vector<2x128xf32> to vector<2x32xf32>
    %932 = vector.extract_strided_slice %929 {offsets = [0, 64], sizes = [2, 32], strides = [1, 1]} : vector<2x128xf32> to vector<2x32xf32>
    %933 = vector.extract_strided_slice %929 {offsets = [0, 96], sizes = [2, 32], strides = [1, 1]} : vector<2x128xf32> to vector<2x32xf32>
    %934 = arith.mulf %931, %758 : vector<2x32xf32>
    %935 = arith.mulf %930, %933 : vector<2x32xf32>
    %936 = arith.addf %934, %935 : vector<2x32xf32>
    %cst_223 = arith.constant dense<0.000000e+00> : vector<2xf32>
    %937 = vector.multi_reduction <add>, %936, %cst_223 [1] : vector<2x32xf32> to vector<2xf32>
    %938 = vector.shape_cast %937 : vector<2xf32> to vector<2x1xf32>
    %cst_224 = arith.constant 3.200000e+01 : f32
    %939 = vector.broadcast %cst_224 : f32 to vector<2x1xf32>
    %940 = arith.divf %938, %939 : vector<2x1xf32>
    %941 = vector.broadcast %940 : vector<2x1xf32> to vector<2x32xf32>
    %942 = arith.subf %936, %941 : vector<2x32xf32>
    %943 = arith.mulf %942, %942 : vector<2x32xf32>
    %cst_225 = arith.constant dense<0.000000e+00> : vector<2xf32>
    %944 = vector.multi_reduction <add>, %943, %cst_225 [1] : vector<2x32xf32> to vector<2xf32>
    %945 = vector.shape_cast %944 : vector<2xf32> to vector<2x1xf32>
    %cst_226 = arith.constant 3.200000e+01 : f32
    %946 = vector.broadcast %cst_226 : f32 to vector<2x1xf32>
    %947 = arith.divf %945, %946 : vector<2x1xf32>
    %cst_227 = arith.constant 9.99999974E-6 : f32
    %948 = vector.broadcast %cst_227 : f32 to vector<2x1xf32>
    %949 = arith.addf %947, %948 : vector<2x1xf32>
    %950 = math.rsqrt %949 : vector<2x1xf32>
    %951 = vector.broadcast %940 : vector<2x1xf32> to vector<2x32xf32>
    %952 = arith.subf %936, %951 : vector<2x32xf32>
    %953 = vector.broadcast %950 : vector<2x1xf32> to vector<2x32xf32>
    %954 = arith.mulf %952, %953 : vector<2x32xf32>
    %955 = vector.broadcast %10 : vector<1x32xf32> to vector<2x32xf32>
    %956 = arith.mulf %954, %955 : vector<2x32xf32>
    %957 = vector.broadcast %12 : vector<1x32xf32> to vector<2x32xf32>
    %958 = arith.addf %956, %957 : vector<2x32xf32>
    %959 = math.tanh %958 : vector<2x32xf32>
    %960 = arith.mulf %932, %959 : vector<2x32xf32>
    %c8 = arith.constant 8 : index
    %c0_228 = arith.constant 0 : index
    %961 = vector.load %arg5[%c8, %c0_228] : memref<16x32xf32, #tpu.memory_space<vmem>>, vector<2x32xf32>
    tpu.vector_store %arg5[%c8, %c0_228], %960 {strides = array<i32>} : memref<16x32xf32, #tpu.memory_space<vmem>>, vector<2x32xf32>,
    %962 = arith.negf %875 : vector<2x128xf32>
    %963 = math.exp %962 : vector<2x128xf32>
    %cst_229 = arith.constant 1.000000e+00 : f32
    %964 = vector.broadcast %cst_229 : f32 to vector<2x128xf32>
    %965 = arith.addf %964, %963 : vector<2x128xf32>
    %966 = arith.divf %964, %965 : vector<2x128xf32>
    %967 = math.tanh %875 : vector<2x128xf32>
    %968 = arith.select %15, %966, %967 : vector<2x128xi1>, vector<2x128xf32>
    %969 = vector.extract_strided_slice %968 {offsets = [0, 0], sizes = [2, 32], strides = [1, 1]} : vector<2x128xf32> to vector<2x32xf32>
    %970 = vector.extract_strided_slice %968 {offsets = [0, 32], sizes = [2, 32], strides = [1, 1]} : vector<2x128xf32> to vector<2x32xf32>
    %971 = vector.extract_strided_slice %968 {offsets = [0, 64], sizes = [2, 32], strides = [1, 1]} : vector<2x128xf32> to vector<2x32xf32>
    %972 = vector.extract_strided_slice %968 {offsets = [0, 96], sizes = [2, 32], strides = [1, 1]} : vector<2x128xf32> to vector<2x32xf32>
    %973 = arith.mulf %970, %797 : vector<2x32xf32>
    %974 = arith.mulf %969, %972 : vector<2x32xf32>
    %975 = arith.addf %973, %974 : vector<2x32xf32>
    %cst_230 = arith.constant dense<0.000000e+00> : vector<2xf32>
    %976 = vector.multi_reduction <add>, %975, %cst_230 [1] : vector<2x32xf32> to vector<2xf32>
    %977 = vector.shape_cast %976 : vector<2xf32> to vector<2x1xf32>
    %cst_231 = arith.constant 3.200000e+01 : f32
    %978 = vector.broadcast %cst_231 : f32 to vector<2x1xf32>
    %979 = arith.divf %977, %978 : vector<2x1xf32>
    %980 = vector.broadcast %979 : vector<2x1xf32> to vector<2x32xf32>
    %981 = arith.subf %975, %980 : vector<2x32xf32>
    %982 = arith.mulf %981, %981 : vector<2x32xf32>
    %cst_232 = arith.constant dense<0.000000e+00> : vector<2xf32>
    %983 = vector.multi_reduction <add>, %982, %cst_232 [1] : vector<2x32xf32> to vector<2xf32>
    %984 = vector.shape_cast %983 : vector<2xf32> to vector<2x1xf32>
    %cst_233 = arith.constant 3.200000e+01 : f32
    %985 = vector.broadcast %cst_233 : f32 to vector<2x1xf32>
    %986 = arith.divf %984, %985 : vector<2x1xf32>
    %cst_234 = arith.constant 9.99999974E-6 : f32
    %987 = vector.broadcast %cst_234 : f32 to vector<2x1xf32>
    %988 = arith.addf %986, %987 : vector<2x1xf32>
    %989 = math.rsqrt %988 : vector<2x1xf32>
    %990 = vector.broadcast %979 : vector<2x1xf32> to vector<2x32xf32>
    %991 = arith.subf %975, %990 : vector<2x32xf32>
    %992 = vector.broadcast %989 : vector<2x1xf32> to vector<2x32xf32>
    %993 = arith.mulf %991, %992 : vector<2x32xf32>
    %994 = vector.broadcast %9 : vector<1x32xf32> to vector<2x32xf32>
    %995 = arith.mulf %993, %994 : vector<2x32xf32>
    %996 = vector.broadcast %11 : vector<1x32xf32> to vector<2x32xf32>
    %997 = arith.addf %995, %996 : vector<2x32xf32>
    %998 = math.tanh %997 : vector<2x32xf32>
    %999 = arith.mulf %971, %998 : vector<2x32xf32>
    %c6_235 = arith.constant 6 : index
    %c0_236 = arith.constant 0 : index
    %c0_237 = arith.constant 0 : index
    %1000 = vector.load %arg0[%c6_235, %c0_236, %c0_237] : memref<8x2x32xf32, #tpu.memory_space<vmem>>, vector<1x2x32xf32>
    %1001 = vector.shape_cast %1000 : vector<1x2x32xf32> to vector<2x32xf32>
    %1002 = tpu.concatenate %1001, %999, %960 in 1 : vector<2x32xf32>, vector<2x32xf32>, vector<2x32xf32> -> vector<2x96xf32>
    %c0_238 = arith.constant 0 : index
    %c0_239 = arith.constant 0 : index
    %1003 = vector.load %arg1[%c0_238, %c0_239] : memref<96x512xf32, #tpu.memory_space<vmem>>, vector<96x512xf32>
    %cst_240 = arith.constant dense<0.000000e+00> : vector<2x512xf32>
    %1004 = tpu.matmul %1002, %1003, %cst_240 {dimension_numbers = #tpu.dot_dimension_numbers<[1], [0], [0], [1], [0, 0, 1, 1], [], []>} : vector<2x96xf32>, vector<96x512xf32>, vector<2x512xf32> -> vector<2x512xf32>
    %1005 = vector.broadcast %0 : vector<1x512xf32> to vector<2x512xf32>
    %1006 = arith.addf %1004, %1005 : vector<2x512xf32>
    %1007 = vector.extract_strided_slice %1006 {offsets = [0, 0], sizes = [2, 128], strides = [1, 1]} : vector<2x512xf32> to vector<2x128xf32>
    %cst_241 = arith.constant dense<0.000000e+00> : vector<2xf32>
    %1008 = vector.multi_reduction <add>, %1007, %cst_241 [1] : vector<2x128xf32> to vector<2xf32>
    %1009 = vector.shape_cast %1008 : vector<2xf32> to vector<2x1xf32>
    %cst_242 = arith.constant 1.280000e+02 : f32
    %1010 = vector.broadcast %cst_242 : f32 to vector<2x1xf32>
    %1011 = arith.divf %1009, %1010 : vector<2x1xf32>
    %1012 = vector.broadcast %1011 : vector<2x1xf32> to vector<2x128xf32>
    %1013 = arith.subf %1007, %1012 : vector<2x128xf32>
    %1014 = arith.mulf %1013, %1013 : vector<2x128xf32>
    %cst_243 = arith.constant dense<0.000000e+00> : vector<2xf32>
    %1015 = vector.multi_reduction <add>, %1014, %cst_243 [1] : vector<2x128xf32> to vector<2xf32>
    %1016 = vector.shape_cast %1015 : vector<2xf32> to vector<2x1xf32>
    %cst_244 = arith.constant 1.280000e+02 : f32
    %1017 = vector.broadcast %cst_244 : f32 to vector<2x1xf32>
    %1018 = arith.divf %1016, %1017 : vector<2x1xf32>
    %cst_245 = arith.constant 9.99999974E-6 : f32
    %1019 = vector.broadcast %cst_245 : f32 to vector<2x1xf32>
    %1020 = arith.addf %1018, %1019 : vector<2x1xf32>
    %1021 = math.rsqrt %1020 : vector<2x1xf32>
    %1022 = vector.broadcast %1011 : vector<2x1xf32> to vector<2x128xf32>
    %1023 = arith.subf %1007, %1022 : vector<2x128xf32>
    %1024 = vector.broadcast %1021 : vector<2x1xf32> to vector<2x128xf32>
    %1025 = arith.mulf %1023, %1024 : vector<2x128xf32>
    %1026 = vector.broadcast %1 : vector<1x128xf32> to vector<2x128xf32>
    %1027 = arith.mulf %1025, %1026 : vector<2x128xf32>
    %1028 = vector.broadcast %5 : vector<1x128xf32> to vector<2x128xf32>
    %1029 = arith.addf %1027, %1028 : vector<2x128xf32>
    %1030 = vector.extract_strided_slice %1006 {offsets = [0, 128], sizes = [2, 128], strides = [1, 1]} : vector<2x512xf32> to vector<2x128xf32>
    %cst_246 = arith.constant dense<0.000000e+00> : vector<2xf32>
    %1031 = vector.multi_reduction <add>, %1030, %cst_246 [1] : vector<2x128xf32> to vector<2xf32>
    %1032 = vector.shape_cast %1031 : vector<2xf32> to vector<2x1xf32>
    %cst_247 = arith.constant 1.280000e+02 : f32
    %1033 = vector.broadcast %cst_247 : f32 to vector<2x1xf32>
    %1034 = arith.divf %1032, %1033 : vector<2x1xf32>
    %1035 = vector.broadcast %1034 : vector<2x1xf32> to vector<2x128xf32>
    %1036 = arith.subf %1030, %1035 : vector<2x128xf32>
    %1037 = arith.mulf %1036, %1036 : vector<2x128xf32>
    %cst_248 = arith.constant dense<0.000000e+00> : vector<2xf32>
    %1038 = vector.multi_reduction <add>, %1037, %cst_248 [1] : vector<2x128xf32> to vector<2xf32>
    %1039 = vector.shape_cast %1038 : vector<2xf32> to vector<2x1xf32>
    %cst_249 = arith.constant 1.280000e+02 : f32
    %1040 = vector.broadcast %cst_249 : f32 to vector<2x1xf32>
    %1041 = arith.divf %1039, %1040 : vector<2x1xf32>
    %cst_250 = arith.constant 9.99999974E-6 : f32
    %1042 = vector.broadcast %cst_250 : f32 to vector<2x1xf32>
    %1043 = arith.addf %1041, %1042 : vector<2x1xf32>
    %1044 = math.rsqrt %1043 : vector<2x1xf32>
    %1045 = vector.broadcast %1034 : vector<2x1xf32> to vector<2x128xf32>
    %1046 = arith.subf %1030, %1045 : vector<2x128xf32>
    %1047 = vector.broadcast %1044 : vector<2x1xf32> to vector<2x128xf32>
    %1048 = arith.mulf %1046, %1047 : vector<2x128xf32>
    %1049 = vector.broadcast %2 : vector<1x128xf32> to vector<2x128xf32>
    %1050 = arith.mulf %1048, %1049 : vector<2x128xf32>
    %1051 = vector.broadcast %6 : vector<1x128xf32> to vector<2x128xf32>
    %1052 = arith.addf %1050, %1051 : vector<2x128xf32>
    %1053 = arith.addf %1029, %1052 : vector<2x128xf32>
    %1054 = vector.extract_strided_slice %1006 {offsets = [0, 256], sizes = [2, 128], strides = [1, 1]} : vector<2x512xf32> to vector<2x128xf32>
    %cst_251 = arith.constant dense<0.000000e+00> : vector<2xf32>
    %1055 = vector.multi_reduction <add>, %1054, %cst_251 [1] : vector<2x128xf32> to vector<2xf32>
    %1056 = vector.shape_cast %1055 : vector<2xf32> to vector<2x1xf32>
    %cst_252 = arith.constant 1.280000e+02 : f32
    %1057 = vector.broadcast %cst_252 : f32 to vector<2x1xf32>
    %1058 = arith.divf %1056, %1057 : vector<2x1xf32>
    %1059 = vector.broadcast %1058 : vector<2x1xf32> to vector<2x128xf32>
    %1060 = arith.subf %1054, %1059 : vector<2x128xf32>
    %1061 = arith.mulf %1060, %1060 : vector<2x128xf32>
    %cst_253 = arith.constant dense<0.000000e+00> : vector<2xf32>
    %1062 = vector.multi_reduction <add>, %1061, %cst_253 [1] : vector<2x128xf32> to vector<2xf32>
    %1063 = vector.shape_cast %1062 : vector<2xf32> to vector<2x1xf32>
    %cst_254 = arith.constant 1.280000e+02 : f32
    %1064 = vector.broadcast %cst_254 : f32 to vector<2x1xf32>
    %1065 = arith.divf %1063, %1064 : vector<2x1xf32>
    %cst_255 = arith.constant 9.99999974E-6 : f32
    %1066 = vector.broadcast %cst_255 : f32 to vector<2x1xf32>
    %1067 = arith.addf %1065, %1066 : vector<2x1xf32>
    %1068 = math.rsqrt %1067 : vector<2x1xf32>
    %1069 = vector.broadcast %1058 : vector<2x1xf32> to vector<2x128xf32>
    %1070 = arith.subf %1054, %1069 : vector<2x128xf32>
    %1071 = vector.broadcast %1068 : vector<2x1xf32> to vector<2x128xf32>
    %1072 = arith.mulf %1070, %1071 : vector<2x128xf32>
    %1073 = vector.broadcast %3 : vector<1x128xf32> to vector<2x128xf32>
    %1074 = arith.mulf %1072, %1073 : vector<2x128xf32>
    %1075 = vector.broadcast %7 : vector<1x128xf32> to vector<2x128xf32>
    %1076 = arith.addf %1074, %1075 : vector<2x128xf32>
    %1077 = vector.extract_strided_slice %1006 {offsets = [0, 384], sizes = [2, 128], strides = [1, 1]} : vector<2x512xf32> to vector<2x128xf32>
    %cst_256 = arith.constant dense<0.000000e+00> : vector<2xf32>
    %1078 = vector.multi_reduction <add>, %1077, %cst_256 [1] : vector<2x128xf32> to vector<2xf32>
    %1079 = vector.shape_cast %1078 : vector<2xf32> to vector<2x1xf32>
    %cst_257 = arith.constant 1.280000e+02 : f32
    %1080 = vector.broadcast %cst_257 : f32 to vector<2x1xf32>
    %1081 = arith.divf %1079, %1080 : vector<2x1xf32>
    %1082 = vector.broadcast %1081 : vector<2x1xf32> to vector<2x128xf32>
    %1083 = arith.subf %1077, %1082 : vector<2x128xf32>
    %1084 = arith.mulf %1083, %1083 : vector<2x128xf32>
    %cst_258 = arith.constant dense<0.000000e+00> : vector<2xf32>
    %1085 = vector.multi_reduction <add>, %1084, %cst_258 [1] : vector<2x128xf32> to vector<2xf32>
    %1086 = vector.shape_cast %1085 : vector<2xf32> to vector<2x1xf32>
    %cst_259 = arith.constant 1.280000e+02 : f32
    %1087 = vector.broadcast %cst_259 : f32 to vector<2x1xf32>
    %1088 = arith.divf %1086, %1087 : vector<2x1xf32>
    %cst_260 = arith.constant 9.99999974E-6 : f32
    %1089 = vector.broadcast %cst_260 : f32 to vector<2x1xf32>
    %1090 = arith.addf %1088, %1089 : vector<2x1xf32>
    %1091 = math.rsqrt %1090 : vector<2x1xf32>
    %1092 = vector.broadcast %1081 : vector<2x1xf32> to vector<2x128xf32>
    %1093 = arith.subf %1077, %1092 : vector<2x128xf32>
    %1094 = vector.broadcast %1091 : vector<2x1xf32> to vector<2x128xf32>
    %1095 = arith.mulf %1093, %1094 : vector<2x128xf32>
    %1096 = vector.broadcast %4 : vector<1x128xf32> to vector<2x128xf32>
    %1097 = arith.mulf %1095, %1096 : vector<2x128xf32>
    %1098 = vector.broadcast %8 : vector<1x128xf32> to vector<2x128xf32>
    %1099 = arith.addf %1097, %1098 : vector<2x128xf32>
    %1100 = arith.addf %1076, %1099 : vector<2x128xf32>
    %1101 = arith.negf %1100 : vector<2x128xf32>
    %1102 = math.exp %1101 : vector<2x128xf32>
    %cst_261 = arith.constant 1.000000e+00 : f32
    %1103 = vector.broadcast %cst_261 : f32 to vector<2x128xf32>
    %1104 = arith.addf %1103, %1102 : vector<2x128xf32>
    %1105 = arith.divf %1103, %1104 : vector<2x128xf32>
    %1106 = math.tanh %1100 : vector<2x128xf32>
    %1107 = arith.select %15, %1105, %1106 : vector<2x128xi1>, vector<2x128xf32>
    %1108 = vector.extract_strided_slice %1107 {offsets = [0, 0], sizes = [2, 32], strides = [1, 1]} : vector<2x128xf32> to vector<2x32xf32>
    %1109 = vector.extract_strided_slice %1107 {offsets = [0, 32], sizes = [2, 32], strides = [1, 1]} : vector<2x128xf32> to vector<2x32xf32>
    %1110 = vector.extract_strided_slice %1107 {offsets = [0, 64], sizes = [2, 32], strides = [1, 1]} : vector<2x128xf32> to vector<2x32xf32>
    %1111 = vector.extract_strided_slice %1107 {offsets = [0, 96], sizes = [2, 32], strides = [1, 1]} : vector<2x128xf32> to vector<2x32xf32>
    %1112 = arith.mulf %1109, %936 : vector<2x32xf32>
    %1113 = arith.mulf %1108, %1111 : vector<2x32xf32>
    %1114 = arith.addf %1112, %1113 : vector<2x32xf32>
    %cst_262 = arith.constant dense<0.000000e+00> : vector<2xf32>
    %1115 = vector.multi_reduction <add>, %1114, %cst_262 [1] : vector<2x32xf32> to vector<2xf32>
    %1116 = vector.shape_cast %1115 : vector<2xf32> to vector<2x1xf32>
    %cst_263 = arith.constant 3.200000e+01 : f32
    %1117 = vector.broadcast %cst_263 : f32 to vector<2x1xf32>
    %1118 = arith.divf %1116, %1117 : vector<2x1xf32>
    %1119 = vector.broadcast %1118 : vector<2x1xf32> to vector<2x32xf32>
    %1120 = arith.subf %1114, %1119 : vector<2x32xf32>
    %1121 = arith.mulf %1120, %1120 : vector<2x32xf32>
    %cst_264 = arith.constant dense<0.000000e+00> : vector<2xf32>
    %1122 = vector.multi_reduction <add>, %1121, %cst_264 [1] : vector<2x32xf32> to vector<2xf32>
    %1123 = vector.shape_cast %1122 : vector<2xf32> to vector<2x1xf32>
    %cst_265 = arith.constant 3.200000e+01 : f32
    %1124 = vector.broadcast %cst_265 : f32 to vector<2x1xf32>
    %1125 = arith.divf %1123, %1124 : vector<2x1xf32>
    %cst_266 = arith.constant 9.99999974E-6 : f32
    %1126 = vector.broadcast %cst_266 : f32 to vector<2x1xf32>
    %1127 = arith.addf %1125, %1126 : vector<2x1xf32>
    %1128 = math.rsqrt %1127 : vector<2x1xf32>
    %1129 = vector.broadcast %1118 : vector<2x1xf32> to vector<2x32xf32>
    %1130 = arith.subf %1114, %1129 : vector<2x32xf32>
    %1131 = vector.broadcast %1128 : vector<2x1xf32> to vector<2x32xf32>
    %1132 = arith.mulf %1130, %1131 : vector<2x32xf32>
    %1133 = vector.broadcast %10 : vector<1x32xf32> to vector<2x32xf32>
    %1134 = arith.mulf %1132, %1133 : vector<2x32xf32>
    %1135 = vector.broadcast %12 : vector<1x32xf32> to vector<2x32xf32>
    %1136 = arith.addf %1134, %1135 : vector<2x32xf32>
    %1137 = math.tanh %1136 : vector<2x32xf32>
    %1138 = arith.mulf %1110, %1137 : vector<2x32xf32>
    %c10 = arith.constant 10 : index
    %c0_267 = arith.constant 0 : index
    %1139 = vector.load %arg5[%c10, %c0_267] : memref<16x32xf32, #tpu.memory_space<vmem>>, vector<2x32xf32>
    tpu.vector_store %arg5[%c10, %c0_267], %1138 {strides = array<i32>} : memref<16x32xf32, #tpu.memory_space<vmem>>, vector<2x32xf32>,
    %1140 = arith.negf %1053 : vector<2x128xf32>
    %1141 = math.exp %1140 : vector<2x128xf32>
    %cst_268 = arith.constant 1.000000e+00 : f32
    %1142 = vector.broadcast %cst_268 : f32 to vector<2x128xf32>
    %1143 = arith.addf %1142, %1141 : vector<2x128xf32>
    %1144 = arith.divf %1142, %1143 : vector<2x128xf32>
    %1145 = math.tanh %1053 : vector<2x128xf32>
    %1146 = arith.select %15, %1144, %1145 : vector<2x128xi1>, vector<2x128xf32>
    %1147 = vector.extract_strided_slice %1146 {offsets = [0, 0], sizes = [2, 32], strides = [1, 1]} : vector<2x128xf32> to vector<2x32xf32>
    %1148 = vector.extract_strided_slice %1146 {offsets = [0, 32], sizes = [2, 32], strides = [1, 1]} : vector<2x128xf32> to vector<2x32xf32>
    %1149 = vector.extract_strided_slice %1146 {offsets = [0, 64], sizes = [2, 32], strides = [1, 1]} : vector<2x128xf32> to vector<2x32xf32>
    %1150 = vector.extract_strided_slice %1146 {offsets = [0, 96], sizes = [2, 32], strides = [1, 1]} : vector<2x128xf32> to vector<2x32xf32>
    %1151 = arith.mulf %1148, %975 : vector<2x32xf32>
    %1152 = arith.mulf %1147, %1150 : vector<2x32xf32>
    %1153 = arith.addf %1151, %1152 : vector<2x32xf32>
    %cst_269 = arith.constant dense<0.000000e+00> : vector<2xf32>
    %1154 = vector.multi_reduction <add>, %1153, %cst_269 [1] : vector<2x32xf32> to vector<2xf32>
    %1155 = vector.shape_cast %1154 : vector<2xf32> to vector<2x1xf32>
    %cst_270 = arith.constant 3.200000e+01 : f32
    %1156 = vector.broadcast %cst_270 : f32 to vector<2x1xf32>
    %1157 = arith.divf %1155, %1156 : vector<2x1xf32>
    %1158 = vector.broadcast %1157 : vector<2x1xf32> to vector<2x32xf32>
    %1159 = arith.subf %1153, %1158 : vector<2x32xf32>
    %1160 = arith.mulf %1159, %1159 : vector<2x32xf32>
    %cst_271 = arith.constant dense<0.000000e+00> : vector<2xf32>
    %1161 = vector.multi_reduction <add>, %1160, %cst_271 [1] : vector<2x32xf32> to vector<2xf32>
    %1162 = vector.shape_cast %1161 : vector<2xf32> to vector<2x1xf32>
    %cst_272 = arith.constant 3.200000e+01 : f32
    %1163 = vector.broadcast %cst_272 : f32 to vector<2x1xf32>
    %1164 = arith.divf %1162, %1163 : vector<2x1xf32>
    %cst_273 = arith.constant 9.99999974E-6 : f32
    %1165 = vector.broadcast %cst_273 : f32 to vector<2x1xf32>
    %1166 = arith.addf %1164, %1165 : vector<2x1xf32>
    %1167 = math.rsqrt %1166 : vector<2x1xf32>
    %1168 = vector.broadcast %1157 : vector<2x1xf32> to vector<2x32xf32>
    %1169 = arith.subf %1153, %1168 : vector<2x32xf32>
    %1170 = vector.broadcast %1167 : vector<2x1xf32> to vector<2x32xf32>
    %1171 = arith.mulf %1169, %1170 : vector<2x32xf32>
    %1172 = vector.broadcast %9 : vector<1x32xf32> to vector<2x32xf32>
    %1173 = arith.mulf %1171, %1172 : vector<2x32xf32>
    %1174 = vector.broadcast %11 : vector<1x32xf32> to vector<2x32xf32>
    %1175 = arith.addf %1173, %1174 : vector<2x32xf32>
    %1176 = math.tanh %1175 : vector<2x32xf32>
    %1177 = arith.mulf %1149, %1176 : vector<2x32xf32>
    %c7 = arith.constant 7 : index
    %c0_274 = arith.constant 0 : index
    %c0_275 = arith.constant 0 : index
    %1178 = vector.load %arg0[%c7, %c0_274, %c0_275] : memref<8x2x32xf32, #tpu.memory_space<vmem>>, vector<1x2x32xf32>
    %1179 = vector.shape_cast %1178 : vector<1x2x32xf32> to vector<2x32xf32>
    %1180 = tpu.concatenate %1179, %1177, %1138 in 1 : vector<2x32xf32>, vector<2x32xf32>, vector<2x32xf32> -> vector<2x96xf32>
    %c0_276 = arith.constant 0 : index
    %c0_277 = arith.constant 0 : index
    %1181 = vector.load %arg1[%c0_276, %c0_277] : memref<96x512xf32, #tpu.memory_space<vmem>>, vector<96x512xf32>
    %cst_278 = arith.constant dense<0.000000e+00> : vector<2x512xf32>
    %1182 = tpu.matmul %1180, %1181, %cst_278 {dimension_numbers = #tpu.dot_dimension_numbers<[1], [0], [0], [1], [0, 0, 1, 1], [], []>} : vector<2x96xf32>, vector<96x512xf32>, vector<2x512xf32> -> vector<2x512xf32>
    %1183 = vector.broadcast %0 : vector<1x512xf32> to vector<2x512xf32>
    %1184 = arith.addf %1182, %1183 : vector<2x512xf32>
    %1185 = vector.extract_strided_slice %1184 {offsets = [0, 0], sizes = [2, 128], strides = [1, 1]} : vector<2x512xf32> to vector<2x128xf32>
    %cst_279 = arith.constant dense<0.000000e+00> : vector<2xf32>
    %1186 = vector.multi_reduction <add>, %1185, %cst_279 [1] : vector<2x128xf32> to vector<2xf32>
    %1187 = vector.shape_cast %1186 : vector<2xf32> to vector<2x1xf32>
    %cst_280 = arith.constant 1.280000e+02 : f32
    %1188 = vector.broadcast %cst_280 : f32 to vector<2x1xf32>
    %1189 = arith.divf %1187, %1188 : vector<2x1xf32>
    %1190 = vector.broadcast %1189 : vector<2x1xf32> to vector<2x128xf32>
    %1191 = arith.subf %1185, %1190 : vector<2x128xf32>
    %1192 = arith.mulf %1191, %1191 : vector<2x128xf32>
    %cst_281 = arith.constant dense<0.000000e+00> : vector<2xf32>
    %1193 = vector.multi_reduction <add>, %1192, %cst_281 [1] : vector<2x128xf32> to vector<2xf32>
    %1194 = vector.shape_cast %1193 : vector<2xf32> to vector<2x1xf32>
    %cst_282 = arith.constant 1.280000e+02 : f32
    %1195 = vector.broadcast %cst_282 : f32 to vector<2x1xf32>
    %1196 = arith.divf %1194, %1195 : vector<2x1xf32>
    %cst_283 = arith.constant 9.99999974E-6 : f32
    %1197 = vector.broadcast %cst_283 : f32 to vector<2x1xf32>
    %1198 = arith.addf %1196, %1197 : vector<2x1xf32>
    %1199 = math.rsqrt %1198 : vector<2x1xf32>
    %1200 = vector.broadcast %1189 : vector<2x1xf32> to vector<2x128xf32>
    %1201 = arith.subf %1185, %1200 : vector<2x128xf32>
    %1202 = vector.broadcast %1199 : vector<2x1xf32> to vector<2x128xf32>
    %1203 = arith.mulf %1201, %1202 : vector<2x128xf32>
    %1204 = vector.broadcast %1 : vector<1x128xf32> to vector<2x128xf32>
    %1205 = arith.mulf %1203, %1204 : vector<2x128xf32>
    %1206 = vector.broadcast %5 : vector<1x128xf32> to vector<2x128xf32>
    %1207 = arith.addf %1205, %1206 : vector<2x128xf32>
    %1208 = vector.extract_strided_slice %1184 {offsets = [0, 128], sizes = [2, 128], strides = [1, 1]} : vector<2x512xf32> to vector<2x128xf32>
    %cst_284 = arith.constant dense<0.000000e+00> : vector<2xf32>
    %1209 = vector.multi_reduction <add>, %1208, %cst_284 [1] : vector<2x128xf32> to vector<2xf32>
    %1210 = vector.shape_cast %1209 : vector<2xf32> to vector<2x1xf32>
    %cst_285 = arith.constant 1.280000e+02 : f32
    %1211 = vector.broadcast %cst_285 : f32 to vector<2x1xf32>
    %1212 = arith.divf %1210, %1211 : vector<2x1xf32>
    %1213 = vector.broadcast %1212 : vector<2x1xf32> to vector<2x128xf32>
    %1214 = arith.subf %1208, %1213 : vector<2x128xf32>
    %1215 = arith.mulf %1214, %1214 : vector<2x128xf32>
    %cst_286 = arith.constant dense<0.000000e+00> : vector<2xf32>
    %1216 = vector.multi_reduction <add>, %1215, %cst_286 [1] : vector<2x128xf32> to vector<2xf32>
    %1217 = vector.shape_cast %1216 : vector<2xf32> to vector<2x1xf32>
    %cst_287 = arith.constant 1.280000e+02 : f32
    %1218 = vector.broadcast %cst_287 : f32 to vector<2x1xf32>
    %1219 = arith.divf %1217, %1218 : vector<2x1xf32>
    %cst_288 = arith.constant 9.99999974E-6 : f32
    %1220 = vector.broadcast %cst_288 : f32 to vector<2x1xf32>
    %1221 = arith.addf %1219, %1220 : vector<2x1xf32>
    %1222 = math.rsqrt %1221 : vector<2x1xf32>
    %1223 = vector.broadcast %1212 : vector<2x1xf32> to vector<2x128xf32>
    %1224 = arith.subf %1208, %1223 : vector<2x128xf32>
    %1225 = vector.broadcast %1222 : vector<2x1xf32> to vector<2x128xf32>
    %1226 = arith.mulf %1224, %1225 : vector<2x128xf32>
    %1227 = vector.broadcast %2 : vector<1x128xf32> to vector<2x128xf32>
    %1228 = arith.mulf %1226, %1227 : vector<2x128xf32>
    %1229 = vector.broadcast %6 : vector<1x128xf32> to vector<2x128xf32>
    %1230 = arith.addf %1228, %1229 : vector<2x128xf32>
    %1231 = arith.addf %1207, %1230 : vector<2x128xf32>
    %1232 = vector.extract_strided_slice %1184 {offsets = [0, 256], sizes = [2, 128], strides = [1, 1]} : vector<2x512xf32> to vector<2x128xf32>
    %cst_289 = arith.constant dense<0.000000e+00> : vector<2xf32>
    %1233 = vector.multi_reduction <add>, %1232, %cst_289 [1] : vector<2x128xf32> to vector<2xf32>
    %1234 = vector.shape_cast %1233 : vector<2xf32> to vector<2x1xf32>
    %cst_290 = arith.constant 1.280000e+02 : f32
    %1235 = vector.broadcast %cst_290 : f32 to vector<2x1xf32>
    %1236 = arith.divf %1234, %1235 : vector<2x1xf32>
    %1237 = vector.broadcast %1236 : vector<2x1xf32> to vector<2x128xf32>
    %1238 = arith.subf %1232, %1237 : vector<2x128xf32>
    %1239 = arith.mulf %1238, %1238 : vector<2x128xf32>
    %cst_291 = arith.constant dense<0.000000e+00> : vector<2xf32>
    %1240 = vector.multi_reduction <add>, %1239, %cst_291 [1] : vector<2x128xf32> to vector<2xf32>
    %1241 = vector.shape_cast %1240 : vector<2xf32> to vector<2x1xf32>
    %cst_292 = arith.constant 1.280000e+02 : f32
    %1242 = vector.broadcast %cst_292 : f32 to vector<2x1xf32>
    %1243 = arith.divf %1241, %1242 : vector<2x1xf32>
    %cst_293 = arith.constant 9.99999974E-6 : f32
    %1244 = vector.broadcast %cst_293 : f32 to vector<2x1xf32>
    %1245 = arith.addf %1243, %1244 : vector<2x1xf32>
    %1246 = math.rsqrt %1245 : vector<2x1xf32>
    %1247 = vector.broadcast %1236 : vector<2x1xf32> to vector<2x128xf32>
    %1248 = arith.subf %1232, %1247 : vector<2x128xf32>
    %1249 = vector.broadcast %1246 : vector<2x1xf32> to vector<2x128xf32>
    %1250 = arith.mulf %1248, %1249 : vector<2x128xf32>
    %1251 = vector.broadcast %3 : vector<1x128xf32> to vector<2x128xf32>
    %1252 = arith.mulf %1250, %1251 : vector<2x128xf32>
    %1253 = vector.broadcast %7 : vector<1x128xf32> to vector<2x128xf32>
    %1254 = arith.addf %1252, %1253 : vector<2x128xf32>
    %1255 = vector.extract_strided_slice %1184 {offsets = [0, 384], sizes = [2, 128], strides = [1, 1]} : vector<2x512xf32> to vector<2x128xf32>
    %cst_294 = arith.constant dense<0.000000e+00> : vector<2xf32>
    %1256 = vector.multi_reduction <add>, %1255, %cst_294 [1] : vector<2x128xf32> to vector<2xf32>
    %1257 = vector.shape_cast %1256 : vector<2xf32> to vector<2x1xf32>
    %cst_295 = arith.constant 1.280000e+02 : f32
    %1258 = vector.broadcast %cst_295 : f32 to vector<2x1xf32>
    %1259 = arith.divf %1257, %1258 : vector<2x1xf32>
    %1260 = vector.broadcast %1259 : vector<2x1xf32> to vector<2x128xf32>
    %1261 = arith.subf %1255, %1260 : vector<2x128xf32>
    %1262 = arith.mulf %1261, %1261 : vector<2x128xf32>
    %cst_296 = arith.constant dense<0.000000e+00> : vector<2xf32>
    %1263 = vector.multi_reduction <add>, %1262, %cst_296 [1] : vector<2x128xf32> to vector<2xf32>
    %1264 = vector.shape_cast %1263 : vector<2xf32> to vector<2x1xf32>
    %cst_297 = arith.constant 1.280000e+02 : f32
    %1265 = vector.broadcast %cst_297 : f32 to vector<2x1xf32>
    %1266 = arith.divf %1264, %1265 : vector<2x1xf32>
    %cst_298 = arith.constant 9.99999974E-6 : f32
    %1267 = vector.broadcast %cst_298 : f32 to vector<2x1xf32>
    %1268 = arith.addf %1266, %1267 : vector<2x1xf32>
    %1269 = math.rsqrt %1268 : vector<2x1xf32>
    %1270 = vector.broadcast %1259 : vector<2x1xf32> to vector<2x128xf32>
    %1271 = arith.subf %1255, %1270 : vector<2x128xf32>
    %1272 = vector.broadcast %1269 : vector<2x1xf32> to vector<2x128xf32>
    %1273 = arith.mulf %1271, %1272 : vector<2x128xf32>
    %1274 = vector.broadcast %4 : vector<1x128xf32> to vector<2x128xf32>
    %1275 = arith.mulf %1273, %1274 : vector<2x128xf32>
    %1276 = vector.broadcast %8 : vector<1x128xf32> to vector<2x128xf32>
    %1277 = arith.addf %1275, %1276 : vector<2x128xf32>
    %1278 = arith.addf %1254, %1277 : vector<2x128xf32>
    %1279 = arith.negf %1278 : vector<2x128xf32>
    %1280 = math.exp %1279 : vector<2x128xf32>
    %cst_299 = arith.constant 1.000000e+00 : f32
    %1281 = vector.broadcast %cst_299 : f32 to vector<2x128xf32>
    %1282 = arith.addf %1281, %1280 : vector<2x128xf32>
    %1283 = arith.divf %1281, %1282 : vector<2x128xf32>
    %1284 = math.tanh %1278 : vector<2x128xf32>
    %1285 = arith.select %15, %1283, %1284 : vector<2x128xi1>, vector<2x128xf32>
    %1286 = vector.extract_strided_slice %1285 {offsets = [0, 0], sizes = [2, 32], strides = [1, 1]} : vector<2x128xf32> to vector<2x32xf32>
    %1287 = vector.extract_strided_slice %1285 {offsets = [0, 32], sizes = [2, 32], strides = [1, 1]} : vector<2x128xf32> to vector<2x32xf32>
    %1288 = vector.extract_strided_slice %1285 {offsets = [0, 64], sizes = [2, 32], strides = [1, 1]} : vector<2x128xf32> to vector<2x32xf32>
    %1289 = vector.extract_strided_slice %1285 {offsets = [0, 96], sizes = [2, 32], strides = [1, 1]} : vector<2x128xf32> to vector<2x32xf32>
    %1290 = arith.mulf %1287, %1114 : vector<2x32xf32>
    %1291 = arith.mulf %1286, %1289 : vector<2x32xf32>
    %1292 = arith.addf %1290, %1291 : vector<2x32xf32>
    %cst_300 = arith.constant dense<0.000000e+00> : vector<2xf32>
    %1293 = vector.multi_reduction <add>, %1292, %cst_300 [1] : vector<2x32xf32> to vector<2xf32>
    %1294 = vector.shape_cast %1293 : vector<2xf32> to vector<2x1xf32>
    %cst_301 = arith.constant 3.200000e+01 : f32
    %1295 = vector.broadcast %cst_301 : f32 to vector<2x1xf32>
    %1296 = arith.divf %1294, %1295 : vector<2x1xf32>
    %1297 = vector.broadcast %1296 : vector<2x1xf32> to vector<2x32xf32>
    %1298 = arith.subf %1292, %1297 : vector<2x32xf32>
    %1299 = arith.mulf %1298, %1298 : vector<2x32xf32>
    %cst_302 = arith.constant dense<0.000000e+00> : vector<2xf32>
    %1300 = vector.multi_reduction <add>, %1299, %cst_302 [1] : vector<2x32xf32> to vector<2xf32>
    %1301 = vector.shape_cast %1300 : vector<2xf32> to vector<2x1xf32>
    %cst_303 = arith.constant 3.200000e+01 : f32
    %1302 = vector.broadcast %cst_303 : f32 to vector<2x1xf32>
    %1303 = arith.divf %1301, %1302 : vector<2x1xf32>
    %cst_304 = arith.constant 9.99999974E-6 : f32
    %1304 = vector.broadcast %cst_304 : f32 to vector<2x1xf32>
    %1305 = arith.addf %1303, %1304 : vector<2x1xf32>
    %1306 = math.rsqrt %1305 : vector<2x1xf32>
    %1307 = vector.broadcast %1296 : vector<2x1xf32> to vector<2x32xf32>
    %1308 = arith.subf %1292, %1307 : vector<2x32xf32>
    %1309 = vector.broadcast %1306 : vector<2x1xf32> to vector<2x32xf32>
    %1310 = arith.mulf %1308, %1309 : vector<2x32xf32>
    %1311 = vector.broadcast %10 : vector<1x32xf32> to vector<2x32xf32>
    %1312 = arith.mulf %1310, %1311 : vector<2x32xf32>
    %1313 = vector.broadcast %12 : vector<1x32xf32> to vector<2x32xf32>
    %1314 = arith.addf %1312, %1313 : vector<2x32xf32>
    %1315 = math.tanh %1314 : vector<2x32xf32>
    %1316 = arith.mulf %1288, %1315 : vector<2x32xf32>
    %c12 = arith.constant 12 : index
    %c0_305 = arith.constant 0 : index
    %1317 = vector.load %arg5[%c12, %c0_305] : memref<16x32xf32, #tpu.memory_space<vmem>>, vector<2x32xf32>
    tpu.vector_store %arg5[%c12, %c0_305], %1316 {strides = array<i32>} : memref<16x32xf32, #tpu.memory_space<vmem>>, vector<2x32xf32>,
    %1318 = arith.negf %1231 : vector<2x128xf32>
    %1319 = math.exp %1318 : vector<2x128xf32>
    %cst_306 = arith.constant 1.000000e+00 : f32
    %1320 = vector.broadcast %cst_306 : f32 to vector<2x128xf32>
    %1321 = arith.addf %1320, %1319 : vector<2x128xf32>
    %1322 = arith.divf %1320, %1321 : vector<2x128xf32>
    %1323 = math.tanh %1231 : vector<2x128xf32>
    %1324 = arith.select %15, %1322, %1323 : vector<2x128xi1>, vector<2x128xf32>
    %1325 = vector.extract_strided_slice %1324 {offsets = [0, 0], sizes = [2, 32], strides = [1, 1]} : vector<2x128xf32> to vector<2x32xf32>
    %1326 = vector.extract_strided_slice %1324 {offsets = [0, 32], sizes = [2, 32], strides = [1, 1]} : vector<2x128xf32> to vector<2x32xf32>
    %1327 = vector.extract_strided_slice %1324 {offsets = [0, 64], sizes = [2, 32], strides = [1, 1]} : vector<2x128xf32> to vector<2x32xf32>
    %1328 = vector.extract_strided_slice %1324 {offsets = [0, 96], sizes = [2, 32], strides = [1, 1]} : vector<2x128xf32> to vector<2x32xf32>
    %1329 = arith.mulf %1326, %1153 : vector<2x32xf32>
    %1330 = arith.mulf %1325, %1328 : vector<2x32xf32>
    %1331 = arith.addf %1329, %1330 : vector<2x32xf32>
    %cst_307 = arith.constant dense<0.000000e+00> : vector<2xf32>
    %1332 = vector.multi_reduction <add>, %1331, %cst_307 [1] : vector<2x32xf32> to vector<2xf32>
    %1333 = vector.shape_cast %1332 : vector<2xf32> to vector<2x1xf32>
    %cst_308 = arith.constant 3.200000e+01 : f32
    %1334 = vector.broadcast %cst_308 : f32 to vector<2x1xf32>
    %1335 = arith.divf %1333, %1334 : vector<2x1xf32>
    %1336 = vector.broadcast %1335 : vector<2x1xf32> to vector<2x32xf32>
    %1337 = arith.subf %1331, %1336 : vector<2x32xf32>
    %1338 = arith.mulf %1337, %1337 : vector<2x32xf32>
    %cst_309 = arith.constant dense<0.000000e+00> : vector<2xf32>
    %1339 = vector.multi_reduction <add>, %1338, %cst_309 [1] : vector<2x32xf32> to vector<2xf32>
    %1340 = vector.shape_cast %1339 : vector<2xf32> to vector<2x1xf32>
    %cst_310 = arith.constant 3.200000e+01 : f32
    %1341 = vector.broadcast %cst_310 : f32 to vector<2x1xf32>
    %1342 = arith.divf %1340, %1341 : vector<2x1xf32>
    %cst_311 = arith.constant 9.99999974E-6 : f32
    %1343 = vector.broadcast %cst_311 : f32 to vector<2x1xf32>
    %1344 = arith.addf %1342, %1343 : vector<2x1xf32>
    %1345 = math.rsqrt %1344 : vector<2x1xf32>
    %1346 = vector.broadcast %1335 : vector<2x1xf32> to vector<2x32xf32>
    %1347 = arith.subf %1331, %1346 : vector<2x32xf32>
    %1348 = vector.broadcast %1345 : vector<2x1xf32> to vector<2x32xf32>
    %1349 = arith.mulf %1347, %1348 : vector<2x32xf32>
    %1350 = vector.broadcast %9 : vector<1x32xf32> to vector<2x32xf32>
    %1351 = arith.mulf %1349, %1350 : vector<2x32xf32>
    %1352 = vector.broadcast %11 : vector<1x32xf32> to vector<2x32xf32>
    %1353 = arith.addf %1351, %1352 : vector<2x32xf32>
    %1354 = math.tanh %1353 : vector<2x32xf32>
    %1355 = arith.mulf %1327, %1354 : vector<2x32xf32>
    %1356 = tpu.concatenate %17, %1355, %1316 in 1 : vector<2x32xf32>, vector<2x32xf32>, vector<2x32xf32> -> vector<2x96xf32>
    %c0_312 = arith.constant 0 : index
    %c0_313 = arith.constant 0 : index
    %1357 = vector.load %arg1[%c0_312, %c0_313] : memref<96x512xf32, #tpu.memory_space<vmem>>, vector<96x512xf32>
    %cst_314 = arith.constant dense<0.000000e+00> : vector<2x512xf32>
    %1358 = tpu.matmul %1356, %1357, %cst_314 {dimension_numbers = #tpu.dot_dimension_numbers<[1], [0], [0], [1], [0, 0, 1, 1], [], []>} : vector<2x96xf32>, vector<96x512xf32>, vector<2x512xf32> -> vector<2x512xf32>
    %1359 = vector.broadcast %0 : vector<1x512xf32> to vector<2x512xf32>
    %1360 = arith.addf %1358, %1359 : vector<2x512xf32>
    %1361 = vector.extract_strided_slice %1360 {offsets = [0, 256], sizes = [2, 128], strides = [1, 1]} : vector<2x512xf32> to vector<2x128xf32>
    %cst_315 = arith.constant dense<0.000000e+00> : vector<2xf32>
    %1362 = vector.multi_reduction <add>, %1361, %cst_315 [1] : vector<2x128xf32> to vector<2xf32>
    %1363 = vector.shape_cast %1362 : vector<2xf32> to vector<2x1xf32>
    %cst_316 = arith.constant 1.280000e+02 : f32
    %1364 = vector.broadcast %cst_316 : f32 to vector<2x1xf32>
    %1365 = arith.divf %1363, %1364 : vector<2x1xf32>
    %1366 = vector.broadcast %1365 : vector<2x1xf32> to vector<2x128xf32>
    %1367 = arith.subf %1361, %1366 : vector<2x128xf32>
    %1368 = arith.mulf %1367, %1367 : vector<2x128xf32>
    %cst_317 = arith.constant dense<0.000000e+00> : vector<2xf32>
    %1369 = vector.multi_reduction <add>, %1368, %cst_317 [1] : vector<2x128xf32> to vector<2xf32>
    %1370 = vector.shape_cast %1369 : vector<2xf32> to vector<2x1xf32>
    %cst_318 = arith.constant 1.280000e+02 : f32
    %1371 = vector.broadcast %cst_318 : f32 to vector<2x1xf32>
    %1372 = arith.divf %1370, %1371 : vector<2x1xf32>
    %cst_319 = arith.constant 9.99999974E-6 : f32
    %1373 = vector.broadcast %cst_319 : f32 to vector<2x1xf32>
    %1374 = arith.addf %1372, %1373 : vector<2x1xf32>
    %1375 = math.rsqrt %1374 : vector<2x1xf32>
    %1376 = vector.broadcast %1365 : vector<2x1xf32> to vector<2x128xf32>
    %1377 = arith.subf %1361, %1376 : vector<2x128xf32>
    %1378 = vector.broadcast %1375 : vector<2x1xf32> to vector<2x128xf32>
    %1379 = arith.mulf %1377, %1378 : vector<2x128xf32>
    %1380 = vector.broadcast %3 : vector<1x128xf32> to vector<2x128xf32>
    %1381 = arith.mulf %1379, %1380 : vector<2x128xf32>
    %1382 = vector.broadcast %7 : vector<1x128xf32> to vector<2x128xf32>
    %1383 = arith.addf %1381, %1382 : vector<2x128xf32>
    %1384 = vector.extract_strided_slice %1360 {offsets = [0, 384], sizes = [2, 128], strides = [1, 1]} : vector<2x512xf32> to vector<2x128xf32>
    %cst_320 = arith.constant dense<0.000000e+00> : vector<2xf32>
    %1385 = vector.multi_reduction <add>, %1384, %cst_320 [1] : vector<2x128xf32> to vector<2xf32>
    %1386 = vector.shape_cast %1385 : vector<2xf32> to vector<2x1xf32>
    %cst_321 = arith.constant 1.280000e+02 : f32
    %1387 = vector.broadcast %cst_321 : f32 to vector<2x1xf32>
    %1388 = arith.divf %1386, %1387 : vector<2x1xf32>
    %1389 = vector.broadcast %1388 : vector<2x1xf32> to vector<2x128xf32>
    %1390 = arith.subf %1384, %1389 : vector<2x128xf32>
    %1391 = arith.mulf %1390, %1390 : vector<2x128xf32>
    %cst_322 = arith.constant dense<0.000000e+00> : vector<2xf32>
    %1392 = vector.multi_reduction <add>, %1391, %cst_322 [1] : vector<2x128xf32> to vector<2xf32>
    %1393 = vector.shape_cast %1392 : vector<2xf32> to vector<2x1xf32>
    %cst_323 = arith.constant 1.280000e+02 : f32
    %1394 = vector.broadcast %cst_323 : f32 to vector<2x1xf32>
    %1395 = arith.divf %1393, %1394 : vector<2x1xf32>
    %cst_324 = arith.constant 9.99999974E-6 : f32
    %1396 = vector.broadcast %cst_324 : f32 to vector<2x1xf32>
    %1397 = arith.addf %1395, %1396 : vector<2x1xf32>
    %1398 = math.rsqrt %1397 : vector<2x1xf32>
    %1399 = vector.broadcast %1388 : vector<2x1xf32> to vector<2x128xf32>
    %1400 = arith.subf %1384, %1399 : vector<2x128xf32>
    %1401 = vector.broadcast %1398 : vector<2x1xf32> to vector<2x128xf32>
    %1402 = arith.mulf %1400, %1401 : vector<2x128xf32>
    %1403 = vector.broadcast %4 : vector<1x128xf32> to vector<2x128xf32>
    %1404 = arith.mulf %1402, %1403 : vector<2x128xf32>
    %1405 = vector.broadcast %8 : vector<1x128xf32> to vector<2x128xf32>
    %1406 = arith.addf %1404, %1405 : vector<2x128xf32>
    %1407 = arith.addf %1383, %1406 : vector<2x128xf32>
    %1408 = arith.negf %1407 : vector<2x128xf32>
    %1409 = math.exp %1408 : vector<2x128xf32>
    %cst_325 = arith.constant 1.000000e+00 : f32
    %1410 = vector.broadcast %cst_325 : f32 to vector<2x128xf32>
    %1411 = arith.addf %1410, %1409 : vector<2x128xf32>
    %1412 = arith.divf %1410, %1411 : vector<2x128xf32>
    %1413 = math.tanh %1407 : vector<2x128xf32>
    %1414 = arith.select %15, %1412, %1413 : vector<2x128xi1>, vector<2x128xf32>
    %1415 = vector.extract_strided_slice %1414 {offsets = [0, 0], sizes = [2, 32], strides = [1, 1]} : vector<2x128xf32> to vector<2x32xf32>
    %1416 = vector.extract_strided_slice %1414 {offsets = [0, 32], sizes = [2, 32], strides = [1, 1]} : vector<2x128xf32> to vector<2x32xf32>
    %1417 = vector.extract_strided_slice %1414 {offsets = [0, 64], sizes = [2, 32], strides = [1, 1]} : vector<2x128xf32> to vector<2x32xf32>
    %1418 = vector.extract_strided_slice %1414 {offsets = [0, 96], sizes = [2, 32], strides = [1, 1]} : vector<2x128xf32> to vector<2x32xf32>
    %1419 = arith.mulf %1416, %1292 : vector<2x32xf32>
    %1420 = arith.mulf %1415, %1418 : vector<2x32xf32>
    %1421 = arith.addf %1419, %1420 : vector<2x32xf32>
    %cst_326 = arith.constant dense<0.000000e+00> : vector<2xf32>
    %1422 = vector.multi_reduction <add>, %1421, %cst_326 [1] : vector<2x32xf32> to vector<2xf32>
    %1423 = vector.shape_cast %1422 : vector<2xf32> to vector<2x1xf32>
    %cst_327 = arith.constant 3.200000e+01 : f32
    %1424 = vector.broadcast %cst_327 : f32 to vector<2x1xf32>
    %1425 = arith.divf %1423, %1424 : vector<2x1xf32>
    %1426 = vector.broadcast %1425 : vector<2x1xf32> to vector<2x32xf32>
    %1427 = arith.subf %1421, %1426 : vector<2x32xf32>
    %1428 = arith.mulf %1427, %1427 : vector<2x32xf32>
    %cst_328 = arith.constant dense<0.000000e+00> : vector<2xf32>
    %1429 = vector.multi_reduction <add>, %1428, %cst_328 [1] : vector<2x32xf32> to vector<2xf32>
    %1430 = vector.shape_cast %1429 : vector<2xf32> to vector<2x1xf32>
    %cst_329 = arith.constant 3.200000e+01 : f32
    %1431 = vector.broadcast %cst_329 : f32 to vector<2x1xf32>
    %1432 = arith.divf %1430, %1431 : vector<2x1xf32>
    %cst_330 = arith.constant 9.99999974E-6 : f32
    %1433 = vector.broadcast %cst_330 : f32 to vector<2x1xf32>
    %1434 = arith.addf %1432, %1433 : vector<2x1xf32>
    %1435 = math.rsqrt %1434 : vector<2x1xf32>
    %1436 = vector.broadcast %1425 : vector<2x1xf32> to vector<2x32xf32>
    %1437 = arith.subf %1421, %1436 : vector<2x32xf32>
    %1438 = vector.broadcast %1435 : vector<2x1xf32> to vector<2x32xf32>
    %1439 = arith.mulf %1437, %1438 : vector<2x32xf32>
    %1440 = vector.broadcast %10 : vector<1x32xf32> to vector<2x32xf32>
    %1441 = arith.mulf %1439, %1440 : vector<2x32xf32>
    %1442 = vector.broadcast %12 : vector<1x32xf32> to vector<2x32xf32>
    %1443 = arith.addf %1441, %1442 : vector<2x32xf32>
    %1444 = math.tanh %1443 : vector<2x32xf32>
    %1445 = arith.mulf %1417, %1444 : vector<2x32xf32>
    %c14 = arith.constant 14 : index
    %c0_331 = arith.constant 0 : index
    %1446 = vector.load %arg5[%c14, %c0_331] : memref<16x32xf32, #tpu.memory_space<vmem>>, vector<2x32xf32>
    tpu.vector_store %arg5[%c14, %c0_331], %1445 {strides = array<i32>} : memref<16x32xf32, #tpu.memory_space<vmem>>, vector<2x32xf32>,
    %c0_332 = arith.constant 0 : index
    %c0_333 = arith.constant 0 : index
    %1447 = vector.load %arg5[%c0_332, %c0_333] : memref<16x32xf32, #tpu.memory_space<vmem>>, vector<16x32xf32>
    %c0_334 = arith.constant 0 : index
    %c0_335 = arith.constant 0 : index
    %1448 = vector.load %arg3[%c0_334, %c0_335] : memref<33x128xf32, #tpu.memory_space<vmem>>, vector<32x128xf32>
    %cst_336 = arith.constant dense<0.000000e+00> : vector<16x128xf32>
    %1449 = tpu.matmul %1447, %1448, %cst_336 {dimension_numbers = #tpu.dot_dimension_numbers<[1], [0], [0], [1], [0, 0, 1, 1], [], []>} : vector<16x32xf32>, vector<32x128xf32>, vector<16x128xf32> -> vector<16x128xf32>
    %c32_337 = arith.constant 32 : index
    %c0_338 = arith.constant 0 : index
    %1450 = vector.load %arg3[%c32_337, %c0_338] : memref<33x128xf32, #tpu.memory_space<vmem>>, vector<1x128xf32>
    %1451 = vector.broadcast %1450 : vector<1x128xf32> to vector<16x128xf32>
    %1452 = arith.addf %1449, %1451 : vector<16x128xf32>
    %c0_339 = arith.constant 0 : index
    %c0_340 = arith.constant 0 : index
    %1453 = vector.load %arg4[%c0_339, %c0_340] : memref<16x128xf32, #tpu.memory_space<vmem>>, vector<16x128xf32>
    tpu.vector_store %arg4[%c0_339, %c0_340], %1452 {strides = array<i32>} : memref<16x128xf32, #tpu.memory_space<vmem>>, vector<16x128xf32>,
    return
  }
}

</mosaic_0001>

<bundles_post_ra>
// kernel: tpu_custom_call.1
= control target key start
LH: loop header
LB: loop body
LE: loop exit
PB: predicated region body
PF: predicated region fallthrough
CT: control target
= control target key end

     0   :  { %9 = vsyncpa [#allocation4], 0  ;;  %s5020_s0 = inlined_call_operand.hbm [shape: f32[8,2,32], index: 0, kind: input, shape index: {}]   ;;  %s5021_s1 = inlined_call_operand.hbm [shape: f32[96,512], index: 1, kind: input, shape index: {}]   ;;  %s5022_s2 = inlined_call_operand.hbm [shape: f32[4,512], index: 2, kind: input, shape index: {}]   ;;  %s5023_s3 = inlined_call_operand.hbm [shape: f32[33,128], index: 3, kind: input, shape index: {}]   ;;  %s5024_s4 = inlined_call_operand.hbm [shape: f32[16,128], index: 4, kind: output, shape index: {}]  }
   0x1   :  { %10 = vsyncpa [#allocation7], 0 }
   0x2   :  { %11 = vsyncpa [#allocation10], 0 }
   0x3   :  { %12 = vsyncpa [#allocation5], 0  ;;  %s3989_s15 = smov [#allocation6]   ;;  %s3871_s19 = scalar_lea.hbm %s5021_s1, 6144 }
   0x4   :  { %s30_s16 = sshll.u32 %s3989_s15, 4  ;;  %p3872_p0 = scmp.ne.s32.totalorder %s5021_s1, %s3871_s19  ;;  %s31_s16 = int_to_ptr.vmem [resolvable:$true] %s30_s16 }
   0x5   :  { %p3875_p1 = scmp.lt.u32.totalorder %s3871_s19, %s5021_s1 }
   0x7   :  { %p3877_p2 = pnand %p3875_p1, %p3872_p0 }
   0x9   :  { %3880 = shalt.err (!%p3877_p2)
}
   0xa   :  { %s3881_s24 = scalar_lea.vmem %s31_s16, 6144  ;;  %p3886_p4 = scmp.lt.s32.totalorder %s31_s16, %s31_s16 }
   0xb   :  { %p3882_p3 = scmp.ne.s32.totalorder %s31_s16, %s3881_s24  ;;  %p3887_p5 = scmp.lt.s32.totalorder %s3881_s24, %s3881_s24 }
   0xd   :  { %p3888_p6 = por %p3887_p5, %p3886_p4 }
   0xf   :  { %p3889_p7 = pnand %p3888_p6, %p3882_p3 }
  0x11   :  { %3892 = shalt.err (!%p3889_p7)
}
  0x12   :  { %s3990_s25 = smov 512   ;;  %s3991_s26 = smov 32  }
  0x13   :  { %36 = dma.hbm_to_vmem [thread:$0]  %s5021_s1, 6144, %s31_s16, [#allocation7], %s3990_s25, %s3990_s25, %s3991_s26  }
  0x14   :  { %s3992_s29 = smov [#allocation3]   ;;  %s3893_s7 = scalar_lea.hbm %s5020_s0, 256 }
  0x15   :  { %s18_s30 = sshll.u32 %s3992_s29, 4  ;;  %p3894_p8 = scmp.ne.s32.totalorder %s5020_s0, %s3893_s7  ;;  %s19_s30 = int_to_ptr.vmem [resolvable:$true] %s18_s30 }
  0x16   :  { %p3897_p9 = scmp.lt.u32.totalorder %s3893_s7, %s5020_s0 }
  0x18   :  { %p3899_p10 = pnand %p3897_p9, %p3894_p8 }
  0x1a   :  { %3902 = shalt.err (!%p3899_p10)
}
  0x1b   :  { %s3903_s12 = scalar_lea.vmem %s19_s30, 256  ;;  %p3908_p12 = scmp.lt.s32.totalorder %s19_s30, %s19_s30 }
  0x1c   :  { %p3904_p11 = scmp.ne.s32.totalorder %s19_s30, %s3903_s12  ;;  %p3909_p13 = scmp.lt.s32.totalorder %s3903_s12, %s3903_s12 }
  0x1e   :  { %p3910_p0 = por %p3909_p13, %p3908_p12 }
  0x20   :  { %p3911_p1 = pnand %p3910_p0, %p3904_p11 }
  0x22   :  { %3914 = shalt.err (!%p3911_p1)
}
  0x23   :  { %s3993_s1 = smov 2   ;;  %s3994_s15 = smov [#allocation8]  }
  0x24   :  { %24 = dma.hbm_to_vmem [thread:$0]  %s5020_s0, 256, %s19_s30, [#allocation4], %s3991_s26, %s3991_s26, %s3993_s1  }
  0x25   :  { %s43_s16 = sshll.u32 %s3994_s15, 4  ;;  %s3995_s17 = smov [#allocation9]   ;;  %s44_s16 = int_to_ptr.vmem [resolvable:$true] %s43_s16 }
  0x26   :  { %s52_s18 = sshll.u32 %s3995_s17, 4  ;;  %s3915_s21 = scalar_lea.hbm %s5022_s2, 256  ;;  %s53_s18 = int_to_ptr.vmem [resolvable:$true] %s52_s18 }
  0x27   :  { %p3916_p2 = scmp.ne.s32.totalorder %s5022_s2, %s3915_s21  ;;  %p3919_p3 = scmp.lt.u32.totalorder %s3915_s21, %s5022_s2 }
  0x29   :  { %p3921_p4 = pnand %p3919_p3, %p3916_p2 }
  0x2b   :  { %3924 = shalt.err (!%p3921_p4)
}
  0x2c   :  { %s3925_s0 = scalar_lea.vmem %s44_s16, 256  ;;  %p3930_p6 = scmp.lt.s32.totalorder %s44_s16, %s44_s16 }
  0x2d   :  { %p3926_p5 = scmp.ne.s32.totalorder %s44_s16, %s3925_s0  ;;  %p3931_p7 = scmp.lt.s32.totalorder %s3925_s0, %s3925_s0 }
  0x2f   :  { %p3932_p8 = por %p3931_p7, %p3930_p6 }
  0x31   :  { %p3933_p9 = pnand %p3932_p8, %p3926_p5 }
  0x33   :  { %3936 = shalt.err (!%p3933_p9)
}
  0x34   :  { %46 = dma.hbm_to_vmem [thread:$0]  %s5022_s2, 256, %s44_s16, [#allocation7]  }
  0x35   :  { %s3937_s5 = scalar_lea.hbm %s5023_s3, 640 }
  0x36   :  { %p3938_p10 = scmp.ne.s32.totalorder %s5023_s3, %s3937_s5  ;;  %p3941_p11 = scmp.lt.u32.totalorder %s3937_s5, %s5023_s3 }
  0x38   :  { %p3943_p12 = pnand %p3941_p11, %p3938_p10 }
  0x3a   :  { %3946 = shalt.err (!%p3943_p12)
}
  0x3b   :  { %s3947_s10 = scalar_lea.vmem %s53_s18, 640  ;;  %p3952_p0 = scmp.lt.s32.totalorder %s53_s18, %s53_s18 }
  0x3c   :  { %p3948_p13 = scmp.ne.s32.totalorder %s53_s18, %s3947_s10  ;;  %p3953_p1 = scmp.lt.s32.totalorder %s3947_s10, %s3947_s10 }
  0x3e   :  { %p3954_p2 = por %p3953_p1, %p3952_p0 }
  0x40   :  { %p3955_p3 = pnand %p3954_p2, %p3948_p13 }
  0x42   :  { %3958 = shalt.err (!%p3955_p3)
}
  0x43   :  { %s3996_s2 = smov 128   ;;  %s3997_s11 = smov 8  }
  0x44   :  { %58 = dma.hbm_to_vmem [thread:$0]  %s5023_s3, 640, %s53_s18, [#allocation10], %s3996_s2, %s3996_s2, %s3997_s11  }
  0x45   :  { %3981 = dma.done.wait [#allocation4], 256  }
  0x46   :  { %3982 = vsyncadd [#allocation4], 4294967040 }
  0x47   :  { %3983 = dma.done.wait [#allocation7], 6400  }
  0x48   :  { %3984 = vsyncadd [#allocation7], 4294960896 }
  0x49   :  { %3985 = dma.done.wait [#allocation10], 640  }
  0x4a   :  { %3986 = vsyncadd [#allocation10], 4294966656  ;;  %v3998_v0 = vmov 0.0   ;;  %v90_v1 = vld [vmem:[#allocation6 + $0x8] sm:$0xff]  ;;  %v89_v3 = vld [vmem:[#allocation6] sm:$0xff]  ;;  %vm85_vm0 = vcmask 261120   ;;  %v81_v40 = vlaneseq }
  0x4b   :  { %226 = vmatprep.mubr.f32.mxu0 %v3998_v0  ;;  %415 = vmatprep.mubr.f32.mxu1 %v3998_v0  ;;  %v94_v2 = vld [vmem:[#allocation6 + $0x28] sm:$0xff]  ;;  %v93_v5 = vld [vmem:[#allocation6 + $0x20] sm:$0xff]  ;;  %v84_v36 = vld [vmem:[#allocation3] sm:$0x3]  ;;  %vm87_vm1 = vcmask 523264   ;;  %vm158_vm2 = vcmask 785408  }
  0x4c   :  { %v3224_v4 = vpack.c.bf16 %v94_v2, %v90_v1  ;;  %v98_v6 = vld [vmem:[#allocation6 + $0x48] sm:$0xff]  ;;  %v4083_v8 = vpack.c.bf16 %v93_v5, %v89_v3  ;;  %v97_v10 = vld [vmem:[#allocation6 + $0x40] sm:$0xff]  ;;  %v86_v38 = vsel %vm85_vm0, %v84_v36, 0.0  ;;  %v4131_v41 = vshrl.u32 %v81_v40, 7  ;;  %s3999_s3 = smov 96   ;;  %s4000_s13 = smov 64  }
  0x4d   :  { %v102_v7 = vld [vmem:[#allocation6 + $0x68] sm:$0xff]  ;;  %v101_v11 = vld [vmem:[#allocation6 + $0x60] sm:$0xff]  ;;  %v88_v39 = vsel %vm87_vm1, %v86_v38, 0.0  ;;  %vm233_vm3 = vcmask 1041408   ;;  %vm305_vm5 = vcmask 254976  }
  0x4e   :  { %v4085_v9 = vpack.c.bf16 %v102_v7, %v98_v6  ;;  %v106_v12 = vld [vmem:[#allocation6 + $0x88] sm:$0xff]  ;;  %3225 = vmatprep.subr.bf16.mxu0 %v3224_v4  ;;  %3249 = vmatprep.subr.bf16.mxu1 %v3224_v4  ;;  %v4088_v14 = vpack.c.bf16 %v101_v11, %v97_v10  ;;  %v105_v16 = vld [vmem:[#allocation6 + $0x80] sm:$0xff]  ;;  %v140_v42 = vsub.s32 0, %v4131_v41  ;;  %v144_v44 = vsub.s32 1, %v4131_v41 }
  0x4f   :  { %v110_v13 = vld [vmem:[#allocation6 + $0xa8] sm:$0xff]  ;;  %3227 = vmatpush1.bf16.msra.mxu0 %v4083_v8  ;;  %3251 = vmatpush1.bf16.msra.mxu1 %v4083_v8  ;;  %v109_v17 = vld [vmem:[#allocation6 + $0xa0] sm:$0xff] }
  0x50   :  { %3229 = vmatprep.subr.bf16.mxu0 %v4085_v9  ;;  %v4092_v15 = vpack.c.bf16 %v110_v13, %v106_v12  ;;  %3253 = vmatprep.subr.bf16.mxu1 %v4085_v9  ;;  %v114_v18 = vld [vmem:[#allocation6 + $0xc8] sm:$0xff]  ;;  %v4096_v20 = vpack.c.bf16 %v109_v17, %v105_v16  ;;  %v113_v22 = vld [vmem:[#allocation6 + $0xc0] sm:$0xff] }
  0x51   :  { %v118_v19 = vld [vmem:[#allocation6 + $0xe8] sm:$0xff]  ;;  %v117_v23 = vld [vmem:[#allocation6 + $0xe0] sm:$0xff] }
  0x52   :  { %v4100_v21 = vpack.c.bf16 %v118_v19, %v114_v18  ;;  %v122_v24 = vld [vmem:[#allocation6 + $0x108] sm:$0xff]  ;;  %v4104_v26 = vpack.c.bf16 %v117_v23, %v113_v22  ;;  %v121_v28 = vld [vmem:[#allocation6 + $0x100] sm:$0xff] }
  0x53   :  { %3231 = vmatpush1.bf16.msra.mxu0 %v4088_v14  ;;  %3255 = vmatpush1.bf16.msra.mxu1 %v4088_v14  ;;  %v126_v25 = vld [vmem:[#allocation6 + $0x128] sm:$0xff]  ;;  %v125_v29 = vld [vmem:[#allocation6 + $0x120] sm:$0xff] }
  0x54   :  { %3233 = vmatprep.subr.bf16.mxu0 %v4092_v15  ;;  %3257 = vmatprep.subr.bf16.mxu1 %v4092_v15  ;;  %v4108_v27 = vpack.c.bf16 %v126_v25, %v122_v24  ;;  %v130_v30 = vld [vmem:[#allocation6 + $0x148] sm:$0xff]  ;;  %v4112_v32 = vpack.c.bf16 %v125_v29, %v121_v28  ;;  %v129_v34 = vld [vmem:[#allocation6 + $0x140] sm:$0xff] }
  0x55   :  { %v134_v31 = vld [vmem:[#allocation6 + $0x168] sm:$0xff]  ;;  %v133_v35 = vld [vmem:[#allocation6 + $0x160] sm:$0xff] }
  0x56   :  { %v4116_v33 = vpack.c.bf16 %v134_v31, %v130_v30  ;;  %v4120_v37 = vpack.c.bf16 %v133_v35, %v129_v34  ;;  %v4134_v43 = vld [vmem:[#allocation8] ss:$4 sm:$0xf]  ;;  %v4149_v10 = vld [vmem:[#allocation8 + $0x1] ss:$0 sm:$0xff]  ;;  %v4161_v30 = vand.u32 127, %v81_v40 }
  0x57   :  { %3235 = vmatpush1.bf16.msra.mxu0 %v4096_v20  ;;  %3259 = vmatpush1.bf16.msra.mxu1 %v4096_v20  ;;  %v4138_v45 = vrot.slane %v4134_v43, %v140_v42  ;;  %v4141_v46 = vrot.slane %v4134_v43, %v144_v44  ;;  %v4151_v12 = vld [vmem:[#allocation8 + $0x5] ss:$0 sm:$0xff]  ;;  %v4154_v17 = vld [vmem:[#allocation8 + $0x2] ss:$0 sm:$0xff]  ;;  %v4156_v18 = vld [vmem:[#allocation8 + $0x6] ss:$0 sm:$0xff] }
  0x58   :  { %3237 = vmatprep.subr.bf16.mxu0 %v4100_v21  ;;  %3261 = vmatprep.subr.bf16.mxu1 %v4100_v21  ;;  %vm83_vm4 = vcmp.lt.s32.totalorder %v4161_v30, 96 }
  0x5b   :  { %3239 = vmatpush1.bf16.msra.mxu0 %v4104_v26  ;;  %3263 = vmatpush1.bf16.msra.mxu1 %v4104_v26 }
  0x5c   :  { %3241 = vmatprep.subr.bf16.mxu0 %v4108_v27  ;;  %3265 = vmatprep.subr.bf16.mxu1 %v4108_v27 }
  0x5f   :  { %3243 = vmatpush1.bf16.msra.mxu0 %v4112_v32  ;;  %3267 = vmatpush1.bf16.msra.mxu1 %v4112_v32 }
  0x60   :  { %3245 = vmatprep.subr.bf16.mxu0 %v4116_v33  ;;  %3269 = vmatprep.subr.bf16.mxu1 %v4116_v33 }
  0x63   :  { %3247 = vmatpush1.bf16.msra.mxu0 %v4120_v37  ;;  %3271 = vmatpush1.bf16.msra.mxu1 %v4120_v37 }
  0x64   :  { %3297 = vmatprep.subr.bf16.mxu1 %v3224_v4 }
  0x66   :  { %3163 = vmatmul.mubr.msk.f32.vlgmr.msra.gmra.mrb[0].mxu0 %vm158_vm2, %v88_v39 }
  0x67   :  { %486 = vmatprep.mubr.f32.mxu0 %v3998_v0 }
 0x139   :  { %v228_v47 = vpop.f32.mrb[0].mxu0 }
 0x13a   :  { %v229_v48 = vadd.f32 %v228_v47, %v4138_v45  ;;  %v230_v49 = vpop.f32.mrb[1].mxu0 }
 0x13b   :  { %v231_v50 = vadd.f32 %v230_v49, %v4141_v46 }
 0x13c   :  { %v234_v51 = vsel %vm233_vm3, %v229_v48, 0.0 }
 0x13d   :  { %235 = vadd.xlane.f32.xlu0 %v234_v51  ;;  %v258_v52 = vsel %vm233_vm3, %v231_v50, 0.0 }
 0x141   :  { %259 = vadd.xlane.f32.xlu0 %v258_v52 }
 0x1ca   :  { %v236_v53 = vpop.xlane.xlu0 %235 }
 0x1cb   :  { %v238_v54 = vmul.f32 0.0078125, %v236_v53 }
 0x1cd   :  { %v239_v55 = vsub.f32 %v229_v48, %v238_v54  ;;  %v4181_v54 = vld [vmem:[#allocation8 + $0x3] ss:$0 sm:$0xff] }
 0x1ce   :  { %v260_v56 = vpop.xlane.xlu0 %259 }
 0x1cf   :  { %v261_v57 = vmul.f32 0.0078125, %v260_v56  ;;  %v240_v58 = vmul.f32 %v239_v55, %v239_v55 }
 0x1d1   :  { %v262_v59 = vsub.f32 %v231_v50, %v261_v57  ;;  %v241_v60 = vsel %vm233_vm3, %v240_v58, 0.0 }
 0x1d2   :  { %242 = vadd.xlane.f32.xlu1 %v241_v60 }
 0x1d3   :  { %v263_v61 = vmul.f32 %v262_v59, %v262_v59 }
 0x1d5   :  { %v264_v62 = vsel %vm233_vm3, %v263_v61, 0.0 }
 0x1d6   :  { %265 = vadd.xlane.f32.xlu1 %v264_v62 }
 0x25f   :  { %v243_v63 = vpop.xlane.xlu1 %242 }
 0x260   :  { %v244_v1 = vmul.f32 0.0078125, %v243_v63  ;;  %v92_v63 = vld [vmem:[#allocation6 + $0x18] sm:$0xff] }
 0x262   :  { %v245_v2 = vadd.f32 1e-05, %v244_v1  ;;  %v96_v1 = vld [vmem:[#allocation6 + $0x38] sm:$0xff] }
 0x263   :  { %v266_v3 = vpop.xlane.xlu1 %265 }
 0x264   :  { %3629 = vrsqrt.f32 %v245_v2  ;;  %v267_v4 = vmul.f32 0.0078125, %v266_v3  ;;  %v91_v2 = vld [vmem:[#allocation6 + $0x10] sm:$0xff]  ;;  %v4189_v3 = vpack.c.bf16 %v96_v1, %v92_v63 }
 0x265   :  { %v341_v63 = vld [vmem:[#allocation3 + $0x2] sm:$0x3] }
 0x266   :  { %v268_v5 = vadd.f32 1e-05, %v267_v4  ;;  %v95_v4 = vld [vmem:[#allocation6 + $0x30] sm:$0xff]  ;;  %3273 = vmatprep.subr.bf16.mxu0 %v4189_v3 }
 0x268   :  { %3631 = vrsqrt.f32 %v268_v5  ;;  %v100_v5 = vld [vmem:[#allocation6 + $0x58] sm:$0xff] }
 0x26e   :  { %v3630_v6 = vpop.eup %3629 }
 0x26f   :  { %v247_v7 = vmul.f32 %v3630_v6, %v239_v55  ;;  %v104_v6 = vld [vmem:[#allocation6 + $0x78] sm:$0xff] }
 0x271   :  { %v252_v13 = vmul.f32 %v4149_v10, %v247_v7  ;;  %v4191_v7 = vpack.c.bf16 %v95_v4, %v91_v2 }
 0x272   :  { %v3632_v11 = vpop.eup %3631 }
 0x273   :  { %v270_v16 = vmul.f32 %v3632_v11, %v262_v59  ;;  %v257_v22 = vadd.f32 %v4154_v17, %v252_v13  ;;  %v4193_v11 = vpack.c.bf16 %v104_v6, %v100_v5  ;;  %v99_v13 = vld [vmem:[#allocation6 + $0x50] sm:$0xff]  ;;  %3275 = vmatpush1.bf16.msra.mxu0 %v4191_v7 }
 0x275   :  { %v275_v19 = vmul.f32 %v4151_v12, %v270_v16  ;;  %v103_v16 = vld [vmem:[#allocation6 + $0x70] sm:$0xff]  ;;  %3277 = vmatprep.subr.bf16.mxu0 %v4193_v11 }
 0x277   :  { %v280_v23 = vadd.f32 %v4156_v18, %v275_v19  ;;  %v108_v19 = vld [vmem:[#allocation6 + $0x98] sm:$0xff] }
 0x279   :  { %v281_v24 = vadd.f32 %v280_v23, %v257_v22  ;;  %v112_v22 = vld [vmem:[#allocation6 + $0xb8] sm:$0xff]  ;;  %v4197_v23 = vpack.c.bf16 %v103_v16, %v99_v13 }
 0x27b   :  { %v3168_v25 = vmul.f32 -1.442695, %v281_v24  ;;  %3279 = vmatpush1.bf16.msra.mxu0 %v4197_v23 }
 0x27d   :  { %3633 = vpow2.f32 %v3168_v25  ;;  %v107_v25 = vld [vmem:[#allocation6 + $0x90] sm:$0xff] }
 0x27e   :  { %3635 = vtanh.f32 %v281_v24  ;;  %v4200_v24 = vpack.c.bf16 %v112_v22, %v108_v19 }
 0x280   :  { %3281 = vmatprep.subr.bf16.mxu0 %v4200_v24 }
 0x287   :  { %v3634_v28 = vpop.eup %3633 }
 0x288   :  { %v285_v29 = vadd.f32 1.0, %v3634_v28  ;;  %v3636_v31 = vpop.eup %3635  ;;  %v111_v28 = vld [vmem:[#allocation6 + $0xb0] sm:$0xff] }
 0x28a   :  { %3637 = vrcp.f32 %v285_v29  ;;  %v116_v29 = vld [vmem:[#allocation6 + $0xd8] sm:$0xff] }
 0x294   :  { %v3638_v34 = vpop.eup %3637 }
 0x295   :  { %v4166_v35 = vsel %vm83_vm4, %v3638_v34, %v3636_v31  ;;  %v120_v31 = vld [vmem:[#allocation6 + $0xf8] sm:$0xff]  ;;  %v4203_v34 = vpack.c.bf16 %v111_v28, %v107_v25 }
 0x296   :  { %292 = vrot.lane.b32.xlu0 %v4166_v35, %s3991_s26  ;;  %v290_v39 = vmul.f32 0.0, %v4166_v35 }
 0x297   :  { %3283 = vmatpush1.bf16.msra.mxu0 %v4203_v34 }
 0x308   :  { %v293_v36 = vpop.permute.xlu0 %292 }
 0x309   :  { %v295_v38 = vmul.f32 %v293_v36, %v4166_v35  ;;  %v4206_v36 = vpack.c.bf16 %v120_v31, %v116_v29 }
 0x30b   :  { %297 = vrot.lane.b32.xlu1 %v295_v38, %s3991_s26  ;;  %v115_v38 = vld [vmem:[#allocation6 + $0xd0] sm:$0xff]  ;;  %3285 = vmatprep.subr.bf16.mxu0 %v4206_v36 }
 0x37d   :  { %v298_v40 = vpop.permute.xlu1 %297 }
 0x37e   :  { %v4173_v42 = vadd.f32 %v298_v40, %v290_v39  ;;  %v119_v39 = vld [vmem:[#allocation6 + $0xf0] sm:$0xff] }
 0x380   :  { %302 = vrot.lane.b32.xlu1 %v4173_v42, %s3999_s3 }
 0x3f2   :  { %v303_v44 = vpop.permute.xlu1 %302 }
 0x3f3   :  { %v306_v47 = vsel %vm305_vm5, %v303_v44, 0.0  ;;  %v124_v44 = vld [vmem:[#allocation6 + $0x118] sm:$0xff] }
 0x3f4   :  { %307 = vadd.xlane.f32.xlu1 %v306_v47  ;;  %v128_v47 = vld [vmem:[#allocation6 + $0x138] sm:$0xff] }
 0x481   :  { %v308_v48 = vpop.xlane.xlu1 %307 }
 0x482   :  { %v310_v49 = vmul.f32 0.03125, %v308_v48  ;;  %v4210_v48 = vpack.c.bf16 %v119_v39, %v115_v38 }
 0x484   :  { %v311_v50 = vsub.f32 %v4173_v42, %v310_v49  ;;  %v4213_v49 = vpack.c.bf16 %v128_v47, %v124_v44  ;;  %3287 = vmatpush1.bf16.msra.mxu0 %v4210_v48 }
 0x486   :  { %v312_v51 = vmul.f32 %v311_v50, %v311_v50  ;;  %3289 = vmatprep.subr.bf16.mxu0 %v4213_v49 }
 0x488   :  { %314 = vrot.lane.b32.xlu0 %v312_v51, %s3999_s3  ;;  %v127_v51 = vld [vmem:[#allocation6 + $0x130] sm:$0xff] }
 0x4fa   :  { %v315_v52 = vpop.permute.xlu0 %314 }
 0x4fb   :  { %v317_v53 = vsel %vm305_vm5, %v315_v52, 0.0  ;;  %v132_v52 = vld [vmem:[#allocation6 + $0x158] sm:$0xff] }
 0x4fc   :  { %318 = vadd.xlane.f32.xlu0 %v317_v53  ;;  %v136_v53 = vld [vmem:[#allocation6 + $0x178] sm:$0xff] }
 0x512   :  { %329 = vrot.lane.b32.xlu0 %v4181_v54, %s3991_s26 }
 0x589   :  { %v319_v55 = vpop.xlane.xlu0 %318 }
 0x58a   :  { %v320_v56 = vmul.f32 0.03125, %v319_v55 }
 0x58c   :  { %v321_v57 = vadd.f32 1e-05, %v320_v56  ;;  %v4219_v56 = vpack.c.bf16 %v136_v53, %v132_v52 }
 0x58d   :  { %v4185_v59 = vpop.permute.xlu0 %329 }
 0x58e   :  { %3639 = vrsqrt.f32 %v321_v57  ;;  %v131_v57 = vld [vmem:[#allocation6 + $0x150] sm:$0xff] }
 0x598   :  { %v3640_v58 = vpop.eup %3639 }
 0x599   :  { %v323_v60 = vmul.f32 %v3640_v58, %v311_v50  ;;  %v123_v50 = vld [vmem:[#allocation6 + $0x110] sm:$0xff] }
 0x59a   :  { %v4216_v55 = vpack.c.bf16 %v127_v51, %v123_v50  ;;  %v135_v58 = vld [vmem:[#allocation6 + $0x170] sm:$0xff] }
 0x59b   :  { %v332_v61 = vmul.f32 %v4185_v59, %v323_v60  ;;  %v4222_v60 = vpack.c.bf16 %v135_v58, %v131_v57 }
 0x59c   :  { %3291 = vmatpush1.bf16.msra.mxu0 %v4216_v55 }
 0x59d   :  { %v333_v62 = vadd.f32 %v4181_v54, %v332_v61  ;;  %3293 = vmatprep.subr.bf16.mxu0 %v4219_v56 }
 0x59f   :  { %3641 = vtanh.f32 %v333_v62 }
 0x5a0   :  { %3295 = vmatpush1.bf16.msra.mxu0 %v4222_v60 }
 0x5a1   :  { %3321 = vmatprep.subr.bf16.mxu0 %v4189_v3 }
 0x5a9   :  { %v3642_v40 = vpop.eup %3641 }
 0x5aa   :  { %336 = vrot.lane.b32.xlu1 %v3642_v40, %s3991_s26 }
 0x61c   :  { %v337_v61 = vpop.permute.xlu1 %336 }
 0x61d   :  { %v339_v62 = vmul.f32 %v337_v61, %v4166_v35 }
 0x61f   :  { %343 = vrot.lane.b32.xlu1 %v339_v62, %s3999_s3 }
 0x691   :  { %v344_v1 = vpop.permute.xlu1 %343 }
 0x692   :  { %v346_v2 = vsel %vm85_vm0, %v341_v63, %v344_v1 }
 0x693   :  { %v347_v4 = vsel %vm87_vm1, %v346_v2, 0.0 }
 0x694   :  { %3170 = vmatmul.mubr.msk.f32.vlgmr.msra.gmra.mrb[0].mxu1 %vm158_vm2, %v347_v4  ;;  %3171 = vmatmul.mubr.msk.f32.vlgmr.msra.gmra.mrb[2].mxu0 %vm158_vm2, %v347_v4 }
 0x695   :  { %3299 = vmatpush1.bf16.msra.mxu1 %v4083_v8  ;;  %3323 = vmatpush1.bf16.msra.mxu0 %v4191_v7  ;;  %v148_v8 = vsub.s32 2, %v4131_v41 }
 0x696   :  { %3301 = vmatprep.subr.bf16.mxu1 %v4085_v9  ;;  %3325 = vmatprep.subr.bf16.mxu0 %v4193_v11 }
 0x697   :  { %801 = vmatprep.mubr.f32.mxu1 %v3998_v0  ;;  %872 = vmatprep.mubr.f32.mxu0 %v3998_v0 }
 0x699   :  { %3303 = vmatpush1.bf16.msra.mxu1 %v4088_v14  ;;  %3327 = vmatpush1.bf16.msra.mxu0 %v4197_v23  ;;  %v4260_v14 = vrot.slane %v4134_v43, %v148_v8 }
 0x69a   :  { %3305 = vmatprep.subr.bf16.mxu1 %v4092_v15  ;;  %3329 = vmatprep.subr.bf16.mxu0 %v4200_v24 }
 0x69d   :  { %3307 = vmatpush1.bf16.msra.mxu1 %v4096_v20  ;;  %3331 = vmatpush1.bf16.msra.mxu0 %v4203_v34  ;;  %v152_v20 = vsub.s32 3, %v4131_v41 }
 0x69e   :  { %3309 = vmatprep.subr.bf16.mxu1 %v4100_v21  ;;  %3333 = vmatprep.subr.bf16.mxu0 %v4206_v36 }
 0x69f   :  { %v4268_v35 = vrot.slane %v4134_v43, %v152_v20 }
 0x6a1   :  { %3311 = vmatpush1.bf16.msra.mxu1 %v4104_v26  ;;  %3335 = vmatpush1.bf16.msra.mxu0 %v4210_v48 }
 0x6a2   :  { %3313 = vmatprep.subr.bf16.mxu1 %v4108_v27  ;;  %3337 = vmatprep.subr.bf16.mxu0 %v4213_v49 }
 0x6a5   :  { %3315 = vmatpush1.bf16.msra.mxu1 %v4112_v32  ;;  %3339 = vmatpush1.bf16.msra.mxu0 %v4216_v55 }
 0x6a6   :  { %3317 = vmatprep.subr.bf16.mxu1 %v4116_v33  ;;  %3341 = vmatprep.subr.bf16.mxu0 %v4219_v56 }
 0x6a9   :  { %3319 = vmatpush1.bf16.msra.mxu1 %v4120_v37  ;;  %3343 = vmatpush1.bf16.msra.mxu0 %v4222_v60 }
 0x6aa   :  { %3369 = vmatprep.subr.bf16.mxu0 %v4189_v3 }
 0x767   :  { %v417_v9 = vpop.f32.mrb[0].mxu1  ;;  %v488_v15 = vpop.f32.mrb[2].mxu0 }
 0x768   :  { %v418_v21 = vadd.f32 %v417_v9, %v4138_v45  ;;  %v419_v26 = vpop.f32.mrb[1].mxu1  ;;  %v490_v27 = vpop.f32.mrb[3].mxu0  ;;  %v489_v37 = vadd.f32 %v488_v15, %v4260_v14 }
 0x769   :  { %v420_v32 = vadd.f32 %v419_v26, %v4141_v46  ;;  %v491_v5 = vadd.f32 %v490_v27, %v4268_v35 }
 0x76a   :  { %v493_v33 = vsel %vm233_vm3, %v418_v21, 0.0  ;;  %v524_v41 = vsel %vm233_vm3, %v489_v37, 0.0 }
 0x76b   :  { %494 = vadd.xlane.f32.xlu1 %v493_v33  ;;  %v508_v3 = vsel %vm233_vm3, %v420_v32, 0.0  ;;  %v547_v6 = vsel %vm233_vm3, %v491_v5, 0.0 }
 0x76c   :  { %509 = vadd.xlane.f32.xlu0 %v508_v3 }
 0x770   :  { %525 = vadd.xlane.f32.xlu0 %v524_v41 }
 0x774   :  { %548 = vadd.xlane.f32.xlu0 %v547_v6 }
 0x7f8   :  { %v495_v13 = vpop.xlane.xlu1 %494 }
 0x7f9   :  { %v496_v16 = vmul.f32 0.0078125, %v495_v13  ;;  %v510_v19 = vpop.xlane.xlu0 %509 }
 0x7fa   :  { %v511_v22 = vmul.f32 0.0078125, %v510_v19  ;;  %v4282_v19 = vld [vmem:[#allocation8 + $0x9] ss:$0 sm:$0xff] }
 0x7fb   :  { %v497_v25 = vsub.f32 %v418_v21, %v496_v16 }
 0x7fc   :  { %v512_v28 = vsub.f32 %v420_v32, %v511_v22 }
 0x7fd   :  { %v526_v43 = vpop.xlane.xlu0 %525  ;;  %v498_v29 = vmul.f32 %v497_v25, %v497_v25 }
 0x7fe   :  { %v527_v31 = vmul.f32 0.0078125, %v526_v43  ;;  %v513_v38 = vmul.f32 %v512_v28, %v512_v28 }
 0x7ff   :  { %v499_v39 = vsel %vm233_vm3, %v498_v29, 0.0  ;;  %v4284_v29 = vld [vmem:[#allocation8 + $0xd] ss:$0 sm:$0xff] }
 0x800   :  { %v528_v40 = vsub.f32 %v489_v37, %v527_v31  ;;  %500 = vadd.xlane.f32.xlu1 %v499_v39  ;;  %v514_v44 = vsel %vm233_vm3, %v513_v38, 0.0  ;;  %v4287_v38 = vld [vmem:[#allocation8 + $0xa] ss:$0 sm:$0xff]  ;;  %v4289_v39 = vld [vmem:[#allocation8 + $0xe] ss:$0 sm:$0xff] }
 0x801   :  { %515 = vadd.xlane.f32.xlu0 %v514_v44  ;;  %v549_v47 = vpop.xlane.xlu0 %548 }
 0x802   :  { %v550_v50 = vmul.f32 0.0078125, %v549_v47  ;;  %v529_v51 = vmul.f32 %v528_v40, %v528_v40 }
 0x804   :  { %v551_v52 = vsub.f32 %v491_v5, %v550_v50  ;;  %v530_v53 = vsel %vm233_vm3, %v529_v51, 0.0 }
 0x805   :  { %531 = vadd.xlane.f32.xlu1 %v530_v53 }
 0x806   :  { %v552_v57 = vmul.f32 %v551_v52, %v551_v52 }
 0x808   :  { %v553_v58 = vsel %vm233_vm3, %v552_v57, 0.0 }
 0x809   :  { %554 = vadd.xlane.f32.xlu0 %v553_v58 }
 0x88d   :  { %v501_v61 = vpop.xlane.xlu1 %500 }
 0x88e   :  { %v502_v62 = vmul.f32 0.0078125, %v501_v61  ;;  %v516_v63 = vpop.xlane.xlu0 %515 }
 0x88f   :  { %v517_v1 = vmul.f32 0.0078125, %v516_v63 }
 0x890   :  { %v503_v2 = vadd.f32 1e-05, %v502_v62 }
 0x891   :  { %v518_v4 = vadd.f32 1e-05, %v517_v1 }
 0x892   :  { %3643 = vrsqrt.f32 %v503_v2  ;;  %v532_v8 = vpop.xlane.xlu1 %531 }
 0x893   :  { %3645 = vrsqrt.f32 %v518_v4  ;;  %v533_v9 = vmul.f32 0.0078125, %v532_v8 }
 0x895   :  { %v534_v15 = vadd.f32 1e-05, %v533_v9 }
 0x896   :  { %v555_v20 = vpop.xlane.xlu0 %554 }
 0x897   :  { %3647 = vrsqrt.f32 %v534_v15  ;;  %v556_v21 = vmul.f32 0.0078125, %v555_v20 }
 0x899   :  { %v557_v26 = vadd.f32 1e-05, %v556_v21 }
 0x89b   :  { %3649 = vrsqrt.f32 %v557_v26 }
 0x89c   :  { %v3644_v27 = vpop.eup %3643 }
 0x89d   :  { %v3646_v32 = vpop.eup %3645  ;;  %v505_v33 = vmul.f32 %v3644_v27, %v497_v25 }
 0x89e   :  { %v520_v37 = vmul.f32 %v3646_v32, %v512_v28 }
 0x89f   :  { %v506_v3 = vmul.f32 %v4149_v10, %v505_v33 }
 0x8a0   :  { %v521_v5 = vmul.f32 %v4151_v12, %v520_v37 }
 0x8a1   :  { %v3648_v41 = vpop.eup %3647  ;;  %v507_v6 = vadd.f32 %v4154_v17, %v506_v3 }
 0x8a2   :  { %v522_v13 = vadd.f32 %v4156_v18, %v521_v5  ;;  %v536_v16 = vmul.f32 %v3648_v41, %v528_v40 }
 0x8a4   :  { %v523_v22 = vadd.f32 %v522_v13, %v507_v6  ;;  %v541_v25 = vmul.f32 %v4282_v19, %v536_v16 }
 0x8a5   :  { %v3650_v43 = vpop.eup %3649 }
 0x8a6   :  { %v3177_v31 = vmul.f32 -1.442695, %v523_v22  ;;  %v559_v28 = vmul.f32 %v3650_v43, %v551_v52  ;;  %v546_v47 = vadd.f32 %v4287_v38, %v541_v25 }
 0x8a8   :  { %3651 = vpow2.f32 %v3177_v31  ;;  %v564_v44 = vmul.f32 %v4284_v29, %v559_v28 }
 0x8aa   :  { %v569_v40 = vadd.f32 %v4289_v39, %v564_v44 }
 0x8ac   :  { %v570_v50 = vadd.f32 %v569_v40, %v546_v47 }
 0x8ae   :  { %v3176_v51 = vmul.f32 -1.442695, %v570_v50 }
 0x8b0   :  { %3653 = vpow2.f32 %v3176_v51 }
 0x8b1   :  { %3655 = vtanh.f32 %v523_v22 }
 0x8b2   :  { %v3652_v53 = vpop.eup %3651 }
 0x8b3   :  { %v633_v57 = vadd.f32 1.0, %v3652_v53 }
 0x8b5   :  { %3657 = vrcp.f32 %v633_v57 }
 0x8b6   :  { %3659 = vtanh.f32 %v570_v50 }
 0x8ba   :  { %v3654_v58 = vpop.eup %3653 }
 0x8bb   :  { %v574_v52 = vadd.f32 1.0, %v3654_v58  ;;  %v3656_v61 = vpop.eup %3655 }
 0x8bd   :  { %3661 = vrcp.f32 %v574_v52 }
 0x8bf   :  { %v3658_v62 = vpop.eup %3657 }
 0x8c0   :  { %v4296_v63 = vsel %vm83_vm4, %v3658_v62, %v3656_v61  ;;  %v3660_v1 = vpop.eup %3659 }
 0x8c1   :  { %640 = vrot.lane.b32.xlu1 %v4296_v63, %s3991_s26  ;;  %v638_v21 = vmul.f32 %v4296_v63, %v4173_v42 }
 0x8c7   :  { %v3662_v2 = vpop.eup %3661 }
 0x8c8   :  { %v4302_v4 = vsel %vm83_vm4, %v3662_v2, %v3660_v1 }
 0x8c9   :  { %581 = vrot.lane.b32.xlu0 %v4302_v4, %s3991_s26  ;;  %v579_v32 = vmul.f32 0.0, %v4302_v4 }
 0x933   :  { %v641_v8 = vpop.permute.xlu1 %640 }
 0x934   :  { %v643_v9 = vmul.f32 %v641_v8, %v4296_v63 }
 0x936   :  { %645 = vrot.lane.b32.xlu1 %v643_v9, %s3991_s26 }
 0x93b   :  { %v582_v15 = vpop.permute.xlu0 %581 }
 0x93c   :  { %v584_v20 = vmul.f32 %v582_v15, %v4302_v4 }
 0x93e   :  { %586 = vrot.lane.b32.xlu1 %v584_v20, %s3991_s26 }
 0x9a8   :  { %v646_v26 = vpop.permute.xlu1 %645 }
 0x9a9   :  { %v4312_v27 = vadd.f32 %v646_v26, %v638_v21 }
 0x9ab   :  { %650 = vrot.lane.b32.xlu1 %v4312_v27, %s3999_s3 }
 0x9b0   :  { %v587_v33 = vpop.permute.xlu1 %586 }
 0x9b1   :  { %v4317_v37 = vadd.f32 %v587_v33, %v579_v32 }
 0x9b3   :  { %591 = vrot.lane.b32.xlu0 %v4317_v37, %s3999_s3 }
 0xa1d   :  { %v651_v3 = vpop.permute.xlu1 %650 }
 0xa1e   :  { %v653_v5 = vsel %vm305_vm5, %v651_v3, 0.0 }
 0xa1f   :  { %654 = vadd.xlane.f32.xlu1 %v653_v5 }
 0xa25   :  { %v592_v41 = vpop.permute.xlu0 %591 }
 0xa26   :  { %v594_v42 = vsel %vm305_vm5, %v592_v41, 0.0 }
 0xa27   :  { %595 = vadd.xlane.f32.xlu0 %v594_v42 }
 0xaac   :  { %v655_v6 = vpop.xlane.xlu1 %654 }
 0xaad   :  { %v656_v13 = vmul.f32 0.03125, %v655_v6  ;;  %v679_v6 = vld [vmem:[#allocation3 + $0x4] sm:$0x3] }
 0xaaf   :  { %v657_v16 = vsub.f32 %v4312_v27, %v656_v13 }
 0xab1   :  { %v658_v22 = vmul.f32 %v657_v16, %v657_v16 }
 0xab3   :  { %660 = vrot.lane.b32.xlu0 %v658_v22, %s3999_s3 }
 0xab4   :  { %v596_v43 = vpop.xlane.xlu0 %595 }
 0xab5   :  { %v597_v31 = vmul.f32 0.03125, %v596_v43 }
 0xab7   :  { %v598_v25 = vsub.f32 %v4317_v37, %v597_v31 }
 0xab9   :  { %v599_v28 = vmul.f32 %v598_v25, %v598_v25 }
 0xabb   :  { %601 = vrot.lane.b32.xlu1 %v599_v28, %s3999_s3 }
 0xb25   :  { %v661_v44 = vpop.permute.xlu0 %660 }
 0xb26   :  { %v663_v47 = vsel %vm305_vm5, %v661_v44, 0.0 }
 0xb27   :  { %664 = vadd.xlane.f32.xlu1 %v663_v47 }
 0xb2d   :  { %v602_v40 = vpop.permute.xlu1 %601 }
 0xb2e   :  { %v604_v50 = vsel %vm305_vm5, %v602_v40, 0.0 }
 0xb2f   :  { %605 = vadd.xlane.f32.xlu0 %v604_v50 }
 0xb38   :  { %615 = vrot.lane.b32.xlu1 %v4181_v54, %s4000_s13 }
 0xb45   :  { %611 = vrot.lane.b32.xlu0 %v4181_v54, %s3999_s3 }
 0xbb4   :  { %v665_v51 = vpop.xlane.xlu1 %664 }
 0xbb5   :  { %v666_v53 = vmul.f32 0.03125, %v665_v51 }
 0xbb7   :  { %v667_v57 = vadd.f32 1e-05, %v666_v53 }
 0xbb8   :  { %v4337_v21 = vpop.permute.xlu1 %615 }
 0xbb9   :  { %3663 = vrsqrt.f32 %v667_v57 }
 0xbbc   :  { %v606_v58 = vpop.xlane.xlu0 %605 }
 0xbbd   :  { %v607_v52 = vmul.f32 0.03125, %v606_v58 }
 0xbbf   :  { %v608_v61 = vadd.f32 1e-05, %v607_v52 }
 0xbc0   :  { %v4335_v15 = vpop.permute.xlu0 %611 }
 0xbc1   :  { %3665 = vrsqrt.f32 %v608_v61 }
 0xbc3   :  { %v3664_v62 = vpop.eup %3663 }
 0xbc4   :  { %v669_v1 = vmul.f32 %v3664_v62, %v657_v16 }
 0xbc6   :  { %v670_v2 = vmul.f32 %v669_v1, %v4185_v59 }
 0xbc8   :  { %v671_v8 = vadd.f32 %v4181_v54, %v670_v2 }
 0xbca   :  { %3667 = vtanh.f32 %v671_v8 }
 0xbcb   :  { %v3666_v9 = vpop.eup %3665 }
 0xbcc   :  { %v610_v20 = vmul.f32 %v3666_v9, %v598_v25 }
 0xbce   :  { %v614_v26 = vmul.f32 %v4335_v15, %v610_v20 }
 0xbd0   :  { %v618_v32 = vadd.f32 %v4337_v21, %v614_v26 }
 0xbd2   :  { %3669 = vtanh.f32 %v618_v32 }
 0xbd4   :  { %v3668_v33 = vpop.eup %3667 }
 0xbd5   :  { %674 = vrot.lane.b32.xlu1 %v3668_v33, %s3991_s26 }
 0xbdc   :  { %v3670_v3 = vpop.eup %3669 }
 0xbdd   :  { %621 = vrot.lane.b32.xlu0 %v3670_v3, %s3991_s26 }
 0xc47   :  { %v675_v5 = vpop.permute.xlu1 %674 }
 0xc48   :  { %v677_v41 = vmul.f32 %v675_v5, %v4296_v63 }
 0xc4a   :  { %681 = vrot.lane.b32.xlu1 %v677_v41, %s3999_s3 }
 0xc4f   :  { %v622_v42 = vpop.permute.xlu0 %621 }
 0xc50   :  { %v4346_v13 = vmul.f32 %v622_v42, %v4302_v4 }
 0xcbc   :  { %v682_v16 = vpop.permute.xlu1 %681 }
 0xcbd   :  { %v684_v22 = vsel %vm85_vm0, %v679_v6, %v682_v16 }
 0xcbe   :  { %v685_v43 = vsel %vm87_vm1, %v684_v22, %v4346_v13 }
 0xcbf   :  { %3178 = vmatmul.mubr.msk.f32.vlgmr.msra.gmra.mrb[2].mxu1 %vm158_vm2, %v685_v43  ;;  %3179 = vmatmul.mubr.msk.f32.vlgmr.msra.gmra.mrb[4].mxu0 %vm158_vm2, %v685_v43 }
 0xcc0   :  { %3371 = vmatpush1.bf16.msra.mxu0 %v4191_v7  ;;  %1165 = vmatprep.mubr.f32.mxu1 %v3998_v0 }
 0xcc1   :  { %3373 = vmatprep.subr.bf16.mxu0 %v4193_v11  ;;  %1236 = vmatprep.mubr.f32.mxu0 %v3998_v0 }
 0xcc4   :  { %3375 = vmatpush1.bf16.msra.mxu0 %v4197_v23 }
 0xcc5   :  { %3377 = vmatprep.subr.bf16.mxu0 %v4200_v24 }
 0xcc8   :  { %3379 = vmatpush1.bf16.msra.mxu0 %v4203_v34 }
 0xcc9   :  { %3381 = vmatprep.subr.bf16.mxu0 %v4206_v36 }
 0xccc   :  { %3383 = vmatpush1.bf16.msra.mxu0 %v4210_v48 }
 0xccd   :  { %3385 = vmatprep.subr.bf16.mxu0 %v4213_v49 }
 0xcd0   :  { %3387 = vmatpush1.bf16.msra.mxu0 %v4216_v55 }
 0xcd1   :  { %3389 = vmatprep.subr.bf16.mxu0 %v4219_v56 }
 0xcd4   :  { %3391 = vmatpush1.bf16.msra.mxu0 %v4222_v60 }
 0xd92   :  { %v803_v7 = vpop.f32.mrb[2].mxu1  ;;  %v874_v11 = vpop.f32.mrb[4].mxu0 }
 0xd93   :  { %v804_v23 = vadd.f32 %v803_v7, %v4138_v45  ;;  %v805_v63 = vpop.f32.mrb[3].mxu1  ;;  %v876_v24 = vpop.f32.mrb[5].mxu0  ;;  %v875_v36 = vadd.f32 %v874_v11, %v4260_v14 }
 0xd94   :  { %v806_v34 = vadd.f32 %v805_v63, %v4141_v46  ;;  %v877_v55 = vadd.f32 %v876_v24, %v4268_v35 }
 0xd95   :  { %v879_v48 = vsel %vm233_vm3, %v804_v23, 0.0  ;;  %v910_v56 = vsel %vm233_vm3, %v875_v36, 0.0 }
 0xd96   :  { %880 = vadd.xlane.f32.xlu0 %v879_v48  ;;  %v894_v49 = vsel %vm233_vm3, %v806_v34, 0.0  ;;  %v925_v60 = vsel %vm233_vm3, %v877_v55, 0.0 }
 0xd97   :  { %895 = vadd.xlane.f32.xlu1 %v894_v49 }
 0xd9a   :  { %911 = vadd.xlane.f32.xlu0 %v910_v56 }
 0xd9e   :  { %926 = vadd.xlane.f32.xlu0 %v925_v60 }
 0xe23   :  { %v881_v4 = vpop.xlane.xlu0 %880 }
 0xe24   :  { %v882_v31 = vmul.f32 0.0078125, %v881_v4  ;;  %v896_v25 = vpop.xlane.xlu1 %895 }
 0xe25   :  { %v897_v28 = vmul.f32 0.0078125, %v896_v25 }
 0xe26   :  { %v883_v44 = vsub.f32 %v804_v23, %v882_v31 }
 0xe27   :  { %v898_v47 = vsub.f32 %v806_v34, %v897_v28  ;;  %v912_v40 = vpop.xlane.xlu0 %911 }
 0xe28   :  { %v913_v50 = vmul.f32 0.0078125, %v912_v40  ;;  %v884_v51 = vmul.f32 %v883_v44, %v883_v44 }
 0xe29   :  { %v899_v53 = vmul.f32 %v898_v47, %v898_v47 }
 0xe2a   :  { %v914_v57 = vsub.f32 %v875_v36, %v913_v50  ;;  %v885_v58 = vsel %vm233_vm3, %v884_v51, 0.0 }
 0xe2b   :  { %886 = vadd.xlane.f32.xlu0 %v885_v58  ;;  %v927_v52 = vpop.xlane.xlu0 %926  ;;  %v900_v61 = vsel %vm233_vm3, %v899_v53, 0.0 }
 0xe2c   :  { %v928_v62 = vmul.f32 0.0078125, %v927_v52  ;;  %901 = vadd.xlane.f32.xlu1 %v900_v61  ;;  %v915_v1 = vmul.f32 %v914_v57, %v914_v57 }
 0xe2e   :  { %v929_v2 = vsub.f32 %v877_v55, %v928_v62  ;;  %v916_v8 = vsel %vm233_vm3, %v915_v1, 0.0 }
 0xe2f   :  { %917 = vadd.xlane.f32.xlu0 %v916_v8 }
 0xe30   :  { %v930_v9 = vmul.f32 %v929_v2, %v929_v2 }
 0xe32   :  { %v931_v20 = vsel %vm233_vm3, %v930_v9, 0.0 }
 0xe33   :  { %932 = vadd.xlane.f32.xlu1 %v931_v20 }
 0xeb8   :  { %v887_v26 = vpop.xlane.xlu0 %886 }
 0xeb9   :  { %v888_v32 = vmul.f32 0.0078125, %v887_v26  ;;  %v902_v33 = vpop.xlane.xlu1 %901 }
 0xeba   :  { %v903_v3 = vmul.f32 0.0078125, %v902_v33 }
 0xebb   :  { %v889_v5 = vadd.f32 1e-05, %v888_v32 }
 0xebc   :  { %v904_v41 = vadd.f32 1e-05, %v903_v3  ;;  %v918_v42 = vpop.xlane.xlu0 %917 }
 0xebd   :  { %3671 = vrsqrt.f32 %v889_v5  ;;  %v919_v6 = vmul.f32 0.0078125, %v918_v42 }
 0xebe   :  { %3673 = vrsqrt.f32 %v904_v41 }
 0xebf   :  { %v920_v16 = vadd.f32 1e-05, %v919_v6 }
 0xec0   :  { %v933_v22 = vpop.xlane.xlu1 %932 }
 0xec1   :  { %3675 = vrsqrt.f32 %v920_v16  ;;  %v934_v43 = vmul.f32 0.0078125, %v933_v22 }
 0xec3   :  { %v935_v7 = vadd.f32 1e-05, %v934_v43 }
 0xec5   :  { %3677 = vrsqrt.f32 %v935_v7 }
 0xec7   :  { %v3672_v11 = vpop.eup %3671 }
 0xec8   :  { %v3674_v23 = vpop.eup %3673  ;;  %v891_v63 = vmul.f32 %v3672_v11, %v883_v44 }
 0xec9   :  { %v906_v24 = vmul.f32 %v3674_v23, %v898_v47 }
 0xeca   :  { %v892_v34 = vmul.f32 %v4149_v10, %v891_v63 }
 0xecb   :  { %v3676_v36 = vpop.eup %3675  ;;  %v907_v48 = vmul.f32 %v4151_v12, %v906_v24 }
 0xecc   :  { %v893_v49 = vadd.f32 %v4154_v17, %v892_v34  ;;  %v922_v55 = vmul.f32 %v3676_v36, %v914_v57 }
 0xecd   :  { %v908_v56 = vadd.f32 %v4156_v18, %v907_v48 }
 0xece   :  { %v923_v31 = vmul.f32 %v4282_v19, %v922_v55 }
 0xecf   :  { %v3678_v60 = vpop.eup %3677  ;;  %v909_v4 = vadd.f32 %v908_v56, %v893_v49 }
 0xed0   :  { %v937_v25 = vmul.f32 %v3678_v60, %v929_v2  ;;  %v924_v44 = vadd.f32 %v4287_v38, %v923_v31 }
 0xed1   :  { %v3181_v28 = vmul.f32 -1.442695, %v909_v4 }
 0xed2   :  { %v938_v40 = vmul.f32 %v4284_v29, %v937_v25 }
 0xed3   :  { %3679 = vpow2.f32 %v3181_v28 }
 0xed4   :  { %v939_v10 = vadd.f32 %v4289_v39, %v938_v40 }
 0xed6   :  { %v940_v47 = vadd.f32 %v939_v10, %v924_v44 }
 0xed8   :  { %v3180_v12 = vmul.f32 -1.442695, %v940_v47 }
 0xeda   :  { %3681 = vpow2.f32 %v3180_v12 }
 0xedb   :  { %3683 = vtanh.f32 %v909_v4 }
 0xedd   :  { %v3680_v17 = vpop.eup %3679 }
 0xede   :  { %v997_v50 = vadd.f32 1.0, %v3680_v17 }
 0xee0   :  { %3685 = vrcp.f32 %v997_v50  ;;  %v1051_v50 = vld [vmem:[#allocation6 + $0x8] sm:$0xff] }
 0xee1   :  { %3687 = vtanh.f32 %v940_v47 }
 0xee4   :  { %v3682_v18 = vpop.eup %3681 }
 0xee5   :  { %v944_v51 = vadd.f32 1.0, %v3682_v18  ;;  %v3684_v53 = vpop.eup %3683  ;;  %v1055_v18 = vld [vmem:[#allocation6 + $0x28] sm:$0xff] }
 0xee7   :  { %3689 = vrcp.f32 %v944_v51  ;;  %v1050_v51 = vld [vmem:[#allocation6] sm:$0xff] }
 0xeea   :  { %v3686_v57 = vpop.eup %3685 }
 0xeeb   :  { %v4388_v58 = vsel %vm83_vm4, %v3686_v57, %v3684_v53  ;;  %v3688_v52 = vpop.eup %3687  ;;  %v4426_v53 = vpack.c.bf16 %v1055_v18, %v1051_v50  ;;  %v1054_v57 = vld [vmem:[#allocation6 + $0x20] sm:$0xff] }
 0xeec   :  { %1004 = vrot.lane.b32.xlu0 %v4388_v58, %s3991_s26  ;;  %v1002_v20 = vmul.f32 %v4388_v58, %v4312_v27 }
 0xeed   :  { %3345 = vmatprep.subr.bf16.mxu1 %v4426_v53 }
 0xef1   :  { %v3690_v61 = vpop.eup %3689 }
 0xef2   :  { %v4394_v62 = vsel %vm83_vm4, %v3690_v61, %v3688_v52  ;;  %v1059_v52 = vld [vmem:[#allocation6 + $0x48] sm:$0xff] }
 0xef3   :  { %951 = vrot.lane.b32.xlu1 %v4394_v62, %s3991_s26  ;;  %v949_v33 = vmul.f32 %v4394_v62, %v4317_v37  ;;  %v1063_v61 = vld [vmem:[#allocation6 + $0x68] sm:$0xff] }
 0xf5e   :  { %v1005_v1 = vpop.permute.xlu0 %1004 }
 0xf5f   :  { %v1007_v2 = vmul.f32 %v1005_v1, %v4388_v58  ;;  %v4428_v1 = vpack.c.bf16 %v1054_v57, %v1050_v51 }
 0xf61   :  { %1009 = vrot.lane.b32.xlu1 %v1007_v2, %s3991_s26  ;;  %v4430_v2 = vpack.c.bf16 %v1063_v61, %v1059_v52  ;;  %3347 = vmatpush1.bf16.msra.mxu1 %v4428_v1 }
 0xf63   :  { %3349 = vmatprep.subr.bf16.mxu1 %v4430_v2 }
 0xf65   :  { %v952_v8 = vpop.permute.xlu1 %951 }
 0xf66   :  { %v954_v9 = vmul.f32 %v952_v8, %v4394_v62  ;;  %v1062_v8 = vld [vmem:[#allocation6 + $0x60] sm:$0xff] }
 0xf68   :  { %956 = vrot.lane.b32.xlu1 %v954_v9, %s3991_s26  ;;  %v1067_v9 = vld [vmem:[#allocation6 + $0x88] sm:$0xff] }
 0xfd3   :  { %v1010_v26 = vpop.permute.xlu1 %1009 }
 0xfd4   :  { %v4404_v32 = vadd.f32 %v1010_v26, %v1002_v20  ;;  %v1071_v20 = vld [vmem:[#allocation6 + $0xa8] sm:$0xff] }
 0xfd6   :  { %1014 = vrot.lane.b32.xlu0 %v4404_v32, %s3999_s3 }
 0xfda   :  { %v957_v3 = vpop.permute.xlu1 %956 }
 0xfdb   :  { %v4410_v5 = vadd.f32 %v957_v3, %v949_v33  ;;  %v4437_v3 = vpack.c.bf16 %v1071_v20, %v1067_v9 }
 0xfdd   :  { %961 = vrot.lane.b32.xlu1 %v4410_v5, %s3999_s3 }
0x1048   :  { %v1015_v41 = vpop.permute.xlu0 %1014 }
0x1049   :  { %v1017_v42 = vsel %vm305_vm5, %v1015_v41, 0.0  ;;  %v1066_v41 = vld [vmem:[#allocation6 + $0x80] sm:$0xff] }
0x104a   :  { %1018 = vadd.xlane.f32.xlu0 %v1017_v42  ;;  %v1070_v42 = vld [vmem:[#allocation6 + $0xa0] sm:$0xff] }
0x104f   :  { %v962_v27 = vpop.permute.xlu1 %961 }
0x1050   :  { %v964_v6 = vsel %vm305_vm5, %v962_v27, 0.0  ;;  %v1075_v27 = vld [vmem:[#allocation6 + $0xc8] sm:$0xff] }
0x1051   :  { %965 = vadd.xlane.f32.xlu1 %v964_v6  ;;  %v1079_v6 = vld [vmem:[#allocation6 + $0xe8] sm:$0xff] }
0x10d7   :  { %v1019_v16 = vpop.xlane.xlu0 %1018 }
0x10d8   :  { %v1020_v22 = vmul.f32 0.03125, %v1019_v16  ;;  %v4441_v16 = vpack.c.bf16 %v1070_v42, %v1066_v41 }
0x10da   :  { %v1021_v43 = vsub.f32 %v4404_v32, %v1020_v22  ;;  %v4444_v22 = vpack.c.bf16 %v1079_v6, %v1075_v27 }
0x10dc   :  { %v1022_v7 = vmul.f32 %v1021_v43, %v1021_v43 }
0x10de   :  { %1024 = vrot.lane.b32.xlu0 %v1022_v7, %s3999_s3  ;;  %v966_v37 = vpop.xlane.xlu1 %965  ;;  %v1078_v7 = vld [vmem:[#allocation6 + $0xe0] sm:$0xff] }
0x10df   :  { %v967_v11 = vmul.f32 0.03125, %v966_v37  ;;  %v1083_v37 = vld [vmem:[#allocation6 + $0x108] sm:$0xff] }
0x10e1   :  { %v968_v23 = vsub.f32 %v4410_v5, %v967_v11  ;;  %v1087_v11 = vld [vmem:[#allocation6 + $0x128] sm:$0xff] }
0x10e3   :  { %v969_v63 = vmul.f32 %v968_v23, %v968_v23 }
0x10e5   :  { %971 = vrot.lane.b32.xlu1 %v969_v63, %s3999_s3 }
0x1150   :  { %v1025_v24 = vpop.permute.xlu0 %1024 }
0x1151   :  { %v1027_v34 = vsel %vm305_vm5, %v1025_v24, 0.0  ;;  %v4451_v24 = vpack.c.bf16 %v1087_v11, %v1083_v37 }
0x1152   :  { %1028 = vadd.xlane.f32.xlu0 %v1027_v34  ;;  %v1082_v34 = vld [vmem:[#allocation6 + $0x100] sm:$0xff] }
0x1157   :  { %v972_v36 = vpop.permute.xlu1 %971 }
0x1158   :  { %v974_v48 = vsel %vm305_vm5, %v972_v36, 0.0  ;;  %v1086_v36 = vld [vmem:[#allocation6 + $0x120] sm:$0xff] }
0x1159   :  { %975 = vadd.xlane.f32.xlu1 %v974_v48  ;;  %v1091_v48 = vld [vmem:[#allocation6 + $0x148] sm:$0xff] }
0x11df   :  { %v1029_v49 = vpop.xlane.xlu0 %1028 }
0x11e0   :  { %v1030_v55 = vmul.f32 0.03125, %v1029_v49  ;;  %v1095_v49 = vld [vmem:[#allocation6 + $0x168] sm:$0xff] }
0x11e2   :  { %v1031_v56 = vadd.f32 1e-05, %v1030_v55  ;;  %v4454_v55 = vpack.c.bf16 %v1086_v36, %v1082_v34 }
0x11e4   :  { %3691 = vrsqrt.f32 %v1031_v56  ;;  %v4457_v56 = vpack.c.bf16 %v1095_v49, %v1091_v48 }
0x11e6   :  { %v976_v60 = vpop.xlane.xlu1 %975 }
0x11e7   :  { %v977_v4 = vmul.f32 0.03125, %v976_v60  ;;  %v1090_v60 = vld [vmem:[#allocation6 + $0x140] sm:$0xff] }
0x11e9   :  { %v978_v31 = vadd.f32 1e-05, %v977_v4  ;;  %v1094_v4 = vld [vmem:[#allocation6 + $0x160] sm:$0xff] }
0x11eb   :  { %3693 = vrsqrt.f32 %v978_v31  ;;  %v4460_v31 = vpack.c.bf16 %v1094_v4, %v1090_v60 }
0x11ee   :  { %v3692_v25 = vpop.eup %3691 }
0x11ef   :  { %v1033_v28 = vmul.f32 %v3692_v25, %v1021_v43  ;;  %v1074_v43 = vld [vmem:[#allocation6 + $0xc0] sm:$0xff] }
0x11f0   :  { %v4447_v63 = vpack.c.bf16 %v1078_v7, %v1074_v43 }
0x11f1   :  { %v1034_v40 = vmul.f32 %v1033_v28, %v4185_v59 }
0x11f3   :  { %v1035_v44 = vadd.f32 %v4181_v54, %v1034_v40  ;;  %v1058_v54 = vld [vmem:[#allocation6 + $0x40] sm:$0xff] }
0x11f4   :  { %v4434_v26 = vpack.c.bf16 %v1062_v8, %v1058_v54 }
0x11f5   :  { %v3694_v10 = vpop.eup %3693  ;;  %3695 = vtanh.f32 %v1035_v44  ;;  %v1043_v44 = vld [vmem:[#allocation3 + $0x6] sm:$0x3] }
0x11f6   :  { %v980_v47 = vmul.f32 %v3694_v10, %v968_v23  ;;  %3351 = vmatpush1.bf16.msra.mxu1 %v4434_v26 }
0x11f7   :  { %3353 = vmatprep.subr.bf16.mxu1 %v4437_v3 }
0x11f8   :  { %v981_v12 = vmul.f32 %v980_v47, %v4335_v15 }
0x11fa   :  { %v982_v17 = vadd.f32 %v981_v12, %v4337_v21  ;;  %3355 = vmatpush1.bf16.msra.mxu1 %v4441_v16 }
0x11fb   :  { %3357 = vmatprep.subr.bf16.mxu1 %v4444_v22 }
0x11fc   :  { %3697 = vtanh.f32 %v982_v17 }
0x11fe   :  { %3359 = vmatpush1.bf16.msra.mxu1 %v4447_v63 }
0x11ff   :  { %v3696_v33 = vpop.eup %3695  ;;  %3361 = vmatprep.subr.bf16.mxu1 %v4451_v24 }
0x1200   :  { %1038 = vrot.lane.b32.xlu0 %v3696_v33, %s3991_s26 }
0x1202   :  { %3363 = vmatpush1.bf16.msra.mxu1 %v4454_v55 }
0x1203   :  { %3365 = vmatprep.subr.bf16.mxu1 %v4457_v56 }
0x1206   :  { %v3698_v23 = vpop.eup %3697  ;;  %3367 = vmatpush1.bf16.msra.mxu1 %v4460_v31 }
0x1207   :  { %985 = vrot.lane.b32.xlu1 %v3698_v23, %s3991_s26  ;;  %3393 = vmatprep.subr.bf16.mxu1 %v4426_v53 }
0x1272   :  { %v1039_v25 = vpop.permute.xlu0 %1038 }
0x1273   :  { %v1041_v28 = vmul.f32 %v1039_v25, %v4388_v58 }
0x1275   :  { %1045 = vrot.lane.b32.xlu0 %v1041_v28, %s3999_s3 }
0x1279   :  { %v986_v40 = vpop.permute.xlu1 %985 }
0x127a   :  { %v4468_v10 = vmul.f32 %v986_v40, %v4394_v62 }
0x12e7   :  { %v1046_v47 = vpop.permute.xlu0 %1045 }
0x12e8   :  { %v1048_v12 = vsel %vm85_vm0, %v1043_v44, %v1046_v47 }
0x12e9   :  { %v1049_v17 = vsel %vm87_vm1, %v1048_v12, %v4468_v10 }
0x12ea   :  { %3182 = vmatmul.mubr.msk.f32.vlgmr.msra.gmra.mrb[4].mxu1 %vm158_vm2, %v1049_v17  ;;  %3183 = vmatmul.mubr.msk.f32.vlgmr.msra.gmra.mrb[6].mxu0 %vm158_vm2, %v1049_v17 }
0x12eb   :  { %3395 = vmatpush1.bf16.msra.mxu1 %v4428_v1  ;;  %1529 = vmatprep.mubr.f32.mxu1 %v3998_v0 }
0x12ec   :  { %3397 = vmatprep.subr.bf16.mxu1 %v4430_v2  ;;  %1600 = vmatprep.mubr.f32.mxu0 %v3998_v0 }
0x12ef   :  { %3399 = vmatpush1.bf16.msra.mxu1 %v4434_v26 }
0x12f0   :  { %3401 = vmatprep.subr.bf16.mxu1 %v4437_v3 }
0x12f3   :  { %3403 = vmatpush1.bf16.msra.mxu1 %v4441_v16 }
0x12f4   :  { %3405 = vmatprep.subr.bf16.mxu1 %v4444_v22 }
0x12f7   :  { %3407 = vmatpush1.bf16.msra.mxu1 %v4447_v63 }
0x12f8   :  { %3409 = vmatprep.subr.bf16.mxu1 %v4451_v24 }
0x12fb   :  { %3411 = vmatpush1.bf16.msra.mxu1 %v4454_v55 }
0x12fc   :  { %3413 = vmatprep.subr.bf16.mxu1 %v4457_v56 }
0x12ff   :  { %3415 = vmatpush1.bf16.msra.mxu1 %v4460_v31 }
0x1300   :  { %3441 = vmatprep.subr.bf16.mxu1 %v4426_v53 }
0x13bd   :  { %v1167_v58 = vpop.f32.mrb[4].mxu1  ;;  %v1238_v62 = vpop.f32.mrb[6].mxu0 }
0x13be   :  { %v1168_v50 = vadd.f32 %v1167_v58, %v4138_v45  ;;  %v1169_v18 = vpop.f32.mrb[5].mxu1  ;;  %v1240_v51 = vpop.f32.mrb[7].mxu0  ;;  %v1239_v61 = vadd.f32 %v1238_v62, %v4260_v14 }
0x13bf   :  { %v1170_v57 = vadd.f32 %v1169_v18, %v4141_v46  ;;  %v1241_v8 = vadd.f32 %v1240_v51, %v4268_v35 }
0x13c0   :  { %v1243_v52 = vsel %vm233_vm3, %v1168_v50, 0.0  ;;  %v1274_v53 = vsel %vm233_vm3, %v1239_v61, 0.0 }
0x13c1   :  { %1244 = vadd.xlane.f32.xlu1 %v1243_v52  ;;  %v1258_v54 = vsel %vm233_vm3, %v1170_v57, 0.0  ;;  %v1289_v9 = vsel %vm233_vm3, %v1241_v8, 0.0 }
0x13c2   :  { %1259 = vadd.xlane.f32.xlu0 %v1258_v54 }
0x13c6   :  { %1275 = vadd.xlane.f32.xlu0 %v1274_v53 }
0x13ca   :  { %1290 = vadd.xlane.f32.xlu0 %v1289_v9 }
0x144e   :  { %v1245_v20 = vpop.xlane.xlu1 %1244 }
0x144f   :  { %v1246_v33 = vmul.f32 0.0078125, %v1245_v20  ;;  %v1260_v41 = vpop.xlane.xlu0 %1259  ;;  %v4501_v20 = vld [vmem:[#allocation8 + $0x1] ss:$0 sm:$0xff] }
0x1450   :  { %v1261_v42 = vmul.f32 0.0078125, %v1260_v41  ;;  %v4504_v41 = vld [vmem:[#allocation8 + $0x5] ss:$0 sm:$0xff] }
0x1451   :  { %v1247_v27 = vsub.f32 %v1168_v50, %v1246_v33 }
0x1452   :  { %v1262_v6 = vsub.f32 %v1170_v57, %v1261_v42 }
0x1453   :  { %v1276_v43 = vpop.xlane.xlu0 %1275  ;;  %v1248_v7 = vmul.f32 %v1247_v27, %v1247_v27 }
0x1454   :  { %v1277_v37 = vmul.f32 0.0078125, %v1276_v43  ;;  %v1263_v11 = vmul.f32 %v1262_v6, %v1262_v6 }
0x1455   :  { %v1249_v23 = vsel %vm233_vm3, %v1248_v7, 0.0  ;;  %v4507_v7 = vld [vmem:[#allocation8 + $0x2] ss:$0 sm:$0xff] }
0x1456   :  { %v1278_v34 = vsub.f32 %v1239_v61, %v1277_v37  ;;  %1250 = vadd.xlane.f32.xlu1 %v1249_v23  ;;  %v1264_v36 = vsel %vm233_vm3, %v1263_v11, 0.0  ;;  %v4510_v11 = vld [vmem:[#allocation8 + $0x6] ss:$0 sm:$0xff] }
0x1457   :  { %1265 = vadd.xlane.f32.xlu0 %v1264_v36  ;;  %v1291_v48 = vpop.xlane.xlu0 %1290 }
0x1458   :  { %v1292_v49 = vmul.f32 0.0078125, %v1291_v48  ;;  %v1279_v60 = vmul.f32 %v1278_v34, %v1278_v34 }
0x145a   :  { %v1293_v4 = vsub.f32 %v1241_v8, %v1292_v49  ;;  %v1280_v25 = vsel %vm233_vm3, %v1279_v60, 0.0 }
0x145b   :  { %1281 = vadd.xlane.f32.xlu1 %v1280_v25 }
0x145c   :  { %v1294_v28 = vmul.f32 %v1293_v4, %v1293_v4 }
0x145e   :  { %v1295_v40 = vsel %vm233_vm3, %v1294_v28, 0.0 }
0x145f   :  { %1296 = vadd.xlane.f32.xlu0 %v1295_v40 }
0x14e3   :  { %v1251_v44 = vpop.xlane.xlu1 %1250 }
0x14e4   :  { %v1252_v47 = vmul.f32 0.0078125, %v1251_v44  ;;  %v1266_v12 = vpop.xlane.xlu0 %1265 }
0x14e5   :  { %v1267_v17 = vmul.f32 0.0078125, %v1266_v12 }
0x14e6   :  { %v1253_v58 = vadd.f32 1e-05, %v1252_v47 }
0x14e7   :  { %v1268_v62 = vadd.f32 1e-05, %v1267_v17 }
0x14e8   :  { %3699 = vrsqrt.f32 %v1253_v58  ;;  %v1282_v50 = vpop.xlane.xlu1 %1281 }
0x14e9   :  { %3701 = vrsqrt.f32 %v1268_v62  ;;  %v1283_v18 = vmul.f32 0.0078125, %v1282_v50 }
0x14eb   :  { %v1284_v51 = vadd.f32 1e-05, %v1283_v18 }
0x14ec   :  { %v1297_v57 = vpop.xlane.xlu0 %1296 }
0x14ed   :  { %3703 = vrsqrt.f32 %v1284_v51  ;;  %v1298_v52 = vmul.f32 0.0078125, %v1297_v57 }
0x14ef   :  { %v1299_v61 = vadd.f32 1e-05, %v1298_v52 }
0x14f1   :  { %3705 = vrsqrt.f32 %v1299_v61 }
0x14f2   :  { %v3700_v54 = vpop.eup %3699 }
0x14f3   :  { %v3702_v8 = vpop.eup %3701  ;;  %v1255_v53 = vmul.f32 %v3700_v54, %v1247_v27 }
0x14f4   :  { %v1270_v9 = vmul.f32 %v3702_v8, %v1262_v6 }
0x14f5   :  { %v1256_v33 = vmul.f32 %v4501_v20, %v1255_v53 }
0x14f6   :  { %v1271_v42 = vmul.f32 %v4504_v41, %v1270_v9 }
0x14f7   :  { %v3704_v43 = vpop.eup %3703  ;;  %v1257_v37 = vadd.f32 %v4507_v7, %v1256_v33 }
0x14f8   :  { %v1272_v23 = vadd.f32 %v4510_v11, %v1271_v42  ;;  %v1286_v36 = vmul.f32 %v3704_v43, %v1278_v34 }
0x14fa   :  { %v1273_v27 = vadd.f32 %v1272_v23, %v1257_v37  ;;  %v1287_v49 = vmul.f32 %v4282_v19, %v1286_v36 }
0x14fb   :  { %v3706_v6 = vpop.eup %3705 }
0x14fc   :  { %v3185_v48 = vmul.f32 -1.442695, %v1273_v27  ;;  %v1301_v60 = vmul.f32 %v3706_v6, %v1293_v4  ;;  %v1288_v28 = vadd.f32 %v4287_v38, %v1287_v49 }
0x14fe   :  { %3707 = vpow2.f32 %v3185_v48  ;;  %v1302_v25 = vmul.f32 %v4284_v29, %v1301_v60 }
0x1500   :  { %v1303_v40 = vadd.f32 %v4289_v39, %v1302_v25 }
0x1502   :  { %v1304_v44 = vadd.f32 %v1303_v40, %v1288_v28 }
0x1504   :  { %v3184_v47 = vmul.f32 -1.442695, %v1304_v44 }
0x1506   :  { %3709 = vpow2.f32 %v3184_v47 }
0x1507   :  { %3711 = vtanh.f32 %v1273_v27 }
0x1508   :  { %v3708_v12 = vpop.eup %3707 }
0x1509   :  { %v1361_v17 = vadd.f32 1.0, %v3708_v12 }
0x150b   :  { %3713 = vrcp.f32 %v1361_v17 }
0x150c   :  { %3715 = vtanh.f32 %v1304_v44 }
0x1510   :  { %v3710_v34 = vpop.eup %3709 }
0x1511   :  { %v1308_v58 = vadd.f32 1.0, %v3710_v34  ;;  %v3712_v19 = vpop.eup %3711 }
0x1513   :  { %3717 = vrcp.f32 %v1308_v58 }
0x1515   :  { %v3714_v4 = vpop.eup %3713 }
0x1516   :  { %v4519_v29 = vsel %vm83_vm4, %v3714_v4, %v3712_v19  ;;  %v3716_v38 = vpop.eup %3715 }
0x1517   :  { %1368 = vrot.lane.b32.xlu1 %v4519_v29, %s3991_s26  ;;  %v1366_v52 = vmul.f32 %v4519_v29, %v4404_v32 }
0x151d   :  { %v3718_v39 = vpop.eup %3717 }
0x151e   :  { %v4525_v62 = vsel %vm83_vm4, %v3718_v39, %v3716_v38  ;;  %v4554_v39 = vld [vmem:[#allocation8 + $0x3] ss:$0 sm:$0xff] }
0x151f   :  { %1315 = vrot.lane.b32.xlu0 %v4525_v62, %s3991_s26  ;;  %v1313_v8 = vmul.f32 %v4525_v62, %v4410_v5 }
0x1589   :  { %v1369_v50 = vpop.permute.xlu1 %1368 }
0x158a   :  { %v1371_v18 = vmul.f32 %v1369_v50, %v4519_v29 }
0x158c   :  { %1373 = vrot.lane.b32.xlu1 %v1371_v18, %s3991_s26 }
0x1591   :  { %v1316_v51 = vpop.permute.xlu0 %1315 }
0x1592   :  { %v1318_v57 = vmul.f32 %v1316_v51, %v4525_v62 }
0x1594   :  { %1320 = vrot.lane.b32.xlu1 %v1318_v57, %s3991_s26 }
0x15fe   :  { %v1374_v61 = vpop.permute.xlu1 %1373 }
0x15ff   :  { %v4535_v54 = vadd.f32 %v1374_v61, %v1366_v52  ;;  %v1417_v61 = vld [vmem:[#allocation6 + $0x18] sm:$0xff] }
0x1601   :  { %1378 = vrot.lane.b32.xlu1 %v4535_v54, %s3999_s3 }
0x1606   :  { %v1321_v53 = vpop.permute.xlu1 %1320 }
0x1607   :  { %v4541_v9 = vadd.f32 %v1321_v53, %v1313_v8  ;;  %v1421_v8 = vld [vmem:[#allocation6 + $0x38] sm:$0xff]  ;;  %v1416_v53 = vld [vmem:[#allocation6 + $0x10] sm:$0xff] }
0x1609   :  { %1325 = vrot.lane.b32.xlu0 %v4541_v9, %s3999_s3 }
0x1673   :  { %v1379_v33 = vpop.permute.xlu1 %1378 }
0x1674   :  { %v1381_v42 = vsel %vm305_vm5, %v1379_v33, 0.0  ;;  %v4559_v33 = vpack.c.bf16 %v1421_v8, %v1417_v61 }
0x1675   :  { %1382 = vadd.xlane.f32.xlu1 %v1381_v42  ;;  %v1420_v42 = vld [vmem:[#allocation6 + $0x30] sm:$0xff] }
0x1676   :  { %3417 = vmatprep.subr.bf16.mxu0 %v4559_v33 }
0x167b   :  { %v1326_v32 = vpop.permute.xlu0 %1325 }
0x167c   :  { %v1328_v43 = vsel %vm305_vm5, %v1326_v32, 0.0  ;;  %v1425_v32 = vld [vmem:[#allocation6 + $0x58] sm:$0xff] }
0x167d   :  { %1329 = vadd.xlane.f32.xlu0 %v1328_v43  ;;  %v1429_v43 = vld [vmem:[#allocation6 + $0x78] sm:$0xff] }
0x1702   :  { %v1383_v37 = vpop.xlane.xlu1 %1382 }
0x1703   :  { %v1384_v23 = vmul.f32 0.03125, %v1383_v37  ;;  %v4561_v37 = vpack.c.bf16 %v1420_v42, %v1416_v53  ;;  %v1456_v53 = vld [vmem:[#allocation6 + $0x150] sm:$0xff] }
0x1704   :  { %v1460_v42 = vld [vmem:[#allocation6 + $0x170] sm:$0xff] }
0x1705   :  { %v1385_v36 = vsub.f32 %v4535_v54, %v1384_v23  ;;  %v4563_v23 = vpack.c.bf16 %v1429_v43, %v1425_v32  ;;  %3419 = vmatpush1.bf16.msra.mxu0 %v4561_v37  ;;  %v4593_v32 = vpack.c.bf16 %v1460_v42, %v1456_v53 }
0x1707   :  { %v1386_v27 = vmul.f32 %v1385_v36, %v1385_v36  ;;  %3421 = vmatprep.subr.bf16.mxu0 %v4563_v23 }
0x1709   :  { %1388 = vrot.lane.b32.xlu0 %v1386_v27, %s3999_s3  ;;  %v1428_v27 = vld [vmem:[#allocation6 + $0x70] sm:$0xff] }
0x170a   :  { %v1330_v5 = vpop.xlane.xlu0 %1329 }
0x170b   :  { %v1331_v6 = vmul.f32 0.03125, %v1330_v5  ;;  %v1433_v5 = vld [vmem:[#allocation6 + $0x98] sm:$0xff] }
0x170d   :  { %v1332_v48 = vsub.f32 %v4541_v9, %v1331_v6  ;;  %v1437_v6 = vld [vmem:[#allocation6 + $0xb8] sm:$0xff] }
0x170f   :  { %v1333_v49 = vmul.f32 %v1332_v48, %v1332_v48 }
0x1711   :  { %1335 = vrot.lane.b32.xlu1 %v1333_v49, %s3999_s3 }
0x177b   :  { %v1389_v60 = vpop.permute.xlu0 %1388 }
0x177c   :  { %v1391_v25 = vsel %vm305_vm5, %v1389_v60, 0.0  ;;  %v4571_v60 = vpack.c.bf16 %v1437_v6, %v1433_v5  ;;  %v1407_v5 = vld [vmem:[#allocation3 + $0x8] sm:$0x3] }
0x177d   :  { %1392 = vadd.xlane.f32.xlu1 %v1391_v25  ;;  %v1432_v25 = vld [vmem:[#allocation6 + $0x90] sm:$0xff] }
0x1783   :  { %v1336_v28 = vpop.permute.xlu1 %1335 }
0x1784   :  { %v1338_v40 = vsel %vm305_vm5, %v1336_v28, 0.0  ;;  %v1436_v28 = vld [vmem:[#allocation6 + $0xb0] sm:$0xff] }
0x1785   :  { %1339 = vadd.xlane.f32.xlu0 %v1338_v40  ;;  %v1441_v40 = vld [vmem:[#allocation6 + $0xd8] sm:$0xff] }
0x180a   :  { %v1393_v44 = vpop.xlane.xlu1 %1392 }
0x180b   :  { %v1394_v47 = vmul.f32 0.03125, %v1393_v44  ;;  %v1445_v44 = vld [vmem:[#allocation6 + $0xf8] sm:$0xff] }
0x180d   :  { %v1395_v12 = vadd.f32 1e-05, %v1394_v47  ;;  %v4574_v47 = vpack.c.bf16 %v1436_v28, %v1432_v25 }
0x180f   :  { %3719 = vrsqrt.f32 %v1395_v12  ;;  %v4577_v12 = vpack.c.bf16 %v1445_v44, %v1441_v40 }
0x1812   :  { %v1340_v17 = vpop.xlane.xlu0 %1339 }
0x1813   :  { %v1341_v34 = vmul.f32 0.03125, %v1340_v17  ;;  %v1440_v17 = vld [vmem:[#allocation6 + $0xd0] sm:$0xff] }
0x1815   :  { %v1342_v58 = vadd.f32 1e-05, %v1341_v34  ;;  %v1444_v34 = vld [vmem:[#allocation6 + $0xf0] sm:$0xff] }
0x1817   :  { %3721 = vrsqrt.f32 %v1342_v58  ;;  %v1449_v58 = vld [vmem:[#allocation6 + $0x118] sm:$0xff] }
0x1819   :  { %v3720_v19 = vpop.eup %3719 }
0x181a   :  { %v1397_v4 = vmul.f32 %v3720_v19, %v1385_v36  ;;  %v1424_v36 = vld [vmem:[#allocation6 + $0x50] sm:$0xff]  ;;  %v1453_v19 = vld [vmem:[#allocation6 + $0x138] sm:$0xff] }
0x181b   :  { %v4567_v49 = vpack.c.bf16 %v1428_v27, %v1424_v36 }
0x181c   :  { %v1398_v38 = vmul.f32 %v1397_v4, %v4185_v59 }
0x181d   :  { %3423 = vmatpush1.bf16.msra.mxu0 %v4567_v49 }
0x181e   :  { %v1399_v50 = vadd.f32 %v4554_v39, %v1398_v38  ;;  %3425 = vmatprep.subr.bf16.mxu0 %v4571_v60  ;;  %v4580_v38 = vpack.c.bf16 %v1444_v34, %v1440_v17 }
0x1820   :  { %3723 = vtanh.f32 %v1399_v50  ;;  %v4584_v50 = vpack.c.bf16 %v1453_v19, %v1449_v58 }
0x1821   :  { %v3722_v18 = vpop.eup %3721  ;;  %3427 = vmatpush1.bf16.msra.mxu0 %v4574_v47 }
0x1822   :  { %v1344_v51 = vmul.f32 %v3722_v18, %v1332_v48  ;;  %3429 = vmatprep.subr.bf16.mxu0 %v4577_v12  ;;  %v1448_v18 = vld [vmem:[#allocation6 + $0x110] sm:$0xff] }
0x1824   :  { %v1345_v57 = vmul.f32 %v1344_v51, %v4335_v15  ;;  %v1452_v51 = vld [vmem:[#allocation6 + $0x130] sm:$0xff] }
0x1825   :  { %3431 = vmatpush1.bf16.msra.mxu0 %v4580_v38  ;;  %v4587_v61 = vpack.c.bf16 %v1452_v51, %v1448_v18 }
0x1826   :  { %v1346_v52 = vadd.f32 %v1345_v57, %v4337_v21  ;;  %v1457_v57 = vld [vmem:[#allocation6 + $0x158] sm:$0xff]  ;;  %3433 = vmatprep.subr.bf16.mxu0 %v4584_v50 }
0x1828   :  { %3725 = vtanh.f32 %v1346_v52  ;;  %v1461_v52 = vld [vmem:[#allocation6 + $0x178] sm:$0xff] }
0x1829   :  { %v4590_v8 = vpack.c.bf16 %v1461_v52, %v1457_v57  ;;  %3435 = vmatpush1.bf16.msra.mxu0 %v4587_v61 }
0x182a   :  { %v3724_v48 = vpop.eup %3723 }
0x182b   :  { %1402 = vrot.lane.b32.xlu0 %v3724_v48, %s3991_s26  ;;  %3437 = vmatprep.subr.bf16.mxu0 %v4590_v8 }
0x182d   :  { %3439 = vmatpush1.bf16.msra.mxu0 %v4593_v32 }
0x182e   :  { %3465 = vmatprep.subr.bf16.mxu0 %v4559_v33 }
0x1832   :  { %v3726_v4 = vpop.eup %3725 }
0x1833   :  { %1349 = vrot.lane.b32.xlu1 %v3726_v4, %s3991_s26 }
0x189d   :  { %v1403_v43 = vpop.permute.xlu0 %1402 }
0x189e   :  { %v1405_v36 = vmul.f32 %v1403_v43, %v4519_v29 }
0x18a0   :  { %1409 = vrot.lane.b32.xlu1 %v1405_v36, %s3999_s3 }
0x18a5   :  { %v1350_v27 = vpop.permute.xlu1 %1349 }
0x18a6   :  { %v4601_v6 = vmul.f32 %v1350_v27, %v4525_v62 }
0x1912   :  { %v1410_v48 = vpop.permute.xlu1 %1409 }
0x1913   :  { %v1412_v25 = vsel %vm85_vm0, %v1407_v5, %v1410_v48 }
0x1914   :  { %v1413_v28 = vsel %vm87_vm1, %v1412_v25, %v4601_v6 }
0x1915   :  { %3186 = vmatmul.mubr.msk.f32.vlgmr.msra.gmra.mrb[6].mxu1 %vm158_vm2, %v1413_v28  ;;  %3187 = vmatmul.mubr.msk.f32.vlgmr.msra.gmra.mrb[8].mxu0 %vm158_vm2, %v1413_v28 }
0x1916   :  { %3443 = vmatpush1.bf16.msra.mxu1 %v4428_v1  ;;  %3467 = vmatpush1.bf16.msra.mxu0 %v4561_v37 }
0x1917   :  { %3445 = vmatprep.subr.bf16.mxu1 %v4430_v2  ;;  %3469 = vmatprep.subr.bf16.mxu0 %v4563_v23 }
0x1918   :  { %1893 = vmatprep.mubr.f32.mxu1 %v3998_v0  ;;  %1964 = vmatprep.mubr.f32.mxu0 %v3998_v0 }
0x191a   :  { %3447 = vmatpush1.bf16.msra.mxu1 %v4434_v26  ;;  %3471 = vmatpush1.bf16.msra.mxu0 %v4567_v49 }
0x191b   :  { %3449 = vmatprep.subr.bf16.mxu1 %v4437_v3  ;;  %3473 = vmatprep.subr.bf16.mxu0 %v4571_v60 }
0x191e   :  { %3451 = vmatpush1.bf16.msra.mxu1 %v4441_v16  ;;  %3475 = vmatpush1.bf16.msra.mxu0 %v4574_v47 }
0x191f   :  { %3453 = vmatprep.subr.bf16.mxu1 %v4444_v22  ;;  %3477 = vmatprep.subr.bf16.mxu0 %v4577_v12 }
0x1922   :  { %3455 = vmatpush1.bf16.msra.mxu1 %v4447_v63  ;;  %3479 = vmatpush1.bf16.msra.mxu0 %v4580_v38 }
0x1923   :  { %3457 = vmatprep.subr.bf16.mxu1 %v4451_v24  ;;  %3481 = vmatprep.subr.bf16.mxu0 %v4584_v50 }
0x1926   :  { %3459 = vmatpush1.bf16.msra.mxu1 %v4454_v55  ;;  %3483 = vmatpush1.bf16.msra.mxu0 %v4587_v61 }
0x1927   :  { %3461 = vmatprep.subr.bf16.mxu1 %v4457_v56  ;;  %3485 = vmatprep.subr.bf16.mxu0 %v4590_v8 }
0x192a   :  { %3463 = vmatpush1.bf16.msra.mxu1 %v4460_v31  ;;  %3487 = vmatpush1.bf16.msra.mxu0 %v4593_v32 }
0x192b   :  { %3513 = vmatprep.subr.bf16.mxu0 %v4559_v33 }
0x19e8   :  { %v1531_v1 = vpop.f32.mrb[6].mxu1  ;;  %v1602_v2 = vpop.f32.mrb[8].mxu0 }
0x19e9   :  { %v1532_v26 = vadd.f32 %v1531_v1, %v4138_v45  ;;  %v1533_v3 = vpop.f32.mrb[7].mxu1  ;;  %v1604_v16 = vpop.f32.mrb[9].mxu0  ;;  %v1603_v63 = vadd.f32 %v1602_v2, %v4260_v14 }
0x19ea   :  { %v1534_v22 = vadd.f32 %v1533_v3, %v4141_v46  ;;  %v1605_v56 = vadd.f32 %v1604_v16, %v4268_v35 }
0x19eb   :  { %v1607_v24 = vsel %vm233_vm3, %v1532_v26, 0.0  ;;  %v1638_v31 = vsel %vm233_vm3, %v1603_v63, 0.0 }
0x19ec   :  { %1608 = vadd.xlane.f32.xlu0 %v1607_v24  ;;  %v1622_v55 = vsel %vm233_vm3, %v1534_v22, 0.0  ;;  %v1653_v29 = vsel %vm233_vm3, %v1605_v56, 0.0 }
0x19ed   :  { %1623 = vadd.xlane.f32.xlu1 %v1622_v55 }
0x19f0   :  { %1639 = vadd.xlane.f32.xlu0 %v1638_v31 }
0x19f4   :  { %1654 = vadd.xlane.f32.xlu0 %v1653_v29 }
0x1a79   :  { %v1609_v62 = vpop.xlane.xlu0 %1608 }
0x1a7a   :  { %v1610_v33 = vmul.f32 0.0078125, %v1609_v62  ;;  %v1624_v40 = vpop.xlane.xlu1 %1623 }
0x1a7b   :  { %v1625_v44 = vmul.f32 0.0078125, %v1624_v40 }
0x1a7c   :  { %v1611_v17 = vsub.f32 %v1532_v26, %v1610_v33 }
0x1a7d   :  { %v1626_v34 = vsub.f32 %v1534_v22, %v1625_v44  ;;  %v1640_v58 = vpop.xlane.xlu0 %1639 }
0x1a7e   :  { %v1641_v19 = vmul.f32 0.0078125, %v1640_v58  ;;  %v1612_v4 = vmul.f32 %v1611_v17, %v1611_v17 }
0x1a7f   :  { %v1627_v18 = vmul.f32 %v1626_v34, %v1626_v34 }
0x1a80   :  { %v1642_v51 = vsub.f32 %v1603_v63, %v1641_v19  ;;  %v1613_v57 = vsel %vm233_vm3, %v1612_v4, 0.0 }
0x1a81   :  { %1614 = vadd.xlane.f32.xlu0 %v1613_v57  ;;  %v1655_v52 = vpop.xlane.xlu0 %1654  ;;  %v1628_v53 = vsel %vm233_vm3, %v1627_v18, 0.0 }
0x1a82   :  { %v1656_v42 = vmul.f32 0.0078125, %v1655_v52  ;;  %1629 = vadd.xlane.f32.xlu1 %v1628_v53  ;;  %v1643_v43 = vmul.f32 %v1642_v51, %v1642_v51  ;;  %v4649_v53 = vld [vmem:[#allocation8 + $0x9] ss:$0 sm:$0xff] }
0x1a84   :  { %v1657_v36 = vsub.f32 %v1605_v56, %v1656_v42  ;;  %v1644_v27 = vsel %vm233_vm3, %v1643_v43, 0.0 }
0x1a85   :  { %1645 = vadd.xlane.f32.xlu0 %v1644_v27 }
0x1a86   :  { %v1658_v5 = vmul.f32 %v1657_v36, %v1657_v36 }
0x1a88   :  { %v1659_v48 = vsel %vm233_vm3, %v1658_v5, 0.0  ;;  %v4655_v5 = vld [vmem:[#allocation8 + $0xa] ss:$0 sm:$0xff] }
0x1a89   :  { %1660 = vadd.xlane.f32.xlu1 %v1659_v48 }
0x1b0e   :  { %v1615_v25 = vpop.xlane.xlu0 %1614 }
0x1b0f   :  { %v1616_v28 = vmul.f32 0.0078125, %v1615_v25  ;;  %v1630_v1 = vpop.xlane.xlu1 %1629 }
0x1b10   :  { %v1631_v2 = vmul.f32 0.0078125, %v1630_v1 }
0x1b11   :  { %v1617_v26 = vadd.f32 1e-05, %v1616_v28 }
0x1b12   :  { %v1632_v3 = vadd.f32 1e-05, %v1631_v2  ;;  %v1646_v16 = vpop.xlane.xlu0 %1645 }
0x1b13   :  { %3727 = vrsqrt.f32 %v1617_v26  ;;  %v1647_v22 = vmul.f32 0.0078125, %v1646_v16 }
0x1b14   :  { %3729 = vrsqrt.f32 %v1632_v3 }
0x1b15   :  { %v1648_v63 = vadd.f32 1e-05, %v1647_v22 }
0x1b16   :  { %v1661_v24 = vpop.xlane.xlu1 %1660 }
0x1b17   :  { %3731 = vrsqrt.f32 %v1648_v63  ;;  %v1662_v55 = vmul.f32 0.0078125, %v1661_v24 }
0x1b19   :  { %v1663_v56 = vadd.f32 1e-05, %v1662_v55 }
0x1b1b   :  { %3733 = vrsqrt.f32 %v1663_v56 }
0x1b1d   :  { %v3728_v31 = vpop.eup %3727 }
0x1b1e   :  { %v3730_v29 = vpop.eup %3729  ;;  %v1619_v62 = vmul.f32 %v3728_v31, %v1611_v17  ;;  %v4652_v17 = vld [vmem:[#allocation8 + $0xd] ss:$0 sm:$0xff] }
0x1b1f   :  { %v1634_v33 = vmul.f32 %v3730_v29, %v1626_v34 }
0x1b20   :  { %v1620_v40 = vmul.f32 %v4501_v20, %v1619_v62 }
0x1b21   :  { %v3732_v44 = vpop.eup %3731  ;;  %v1635_v58 = vmul.f32 %v4504_v41, %v1634_v33 }
0x1b22   :  { %v1621_v19 = vadd.f32 %v4507_v7, %v1620_v40  ;;  %v1650_v4 = vmul.f32 %v3732_v44, %v1642_v51  ;;  %v4658_v51 = vld [vmem:[#allocation8 + $0xe] ss:$0 sm:$0xff] }
0x1b23   :  { %v1636_v18 = vadd.f32 %v4510_v11, %v1635_v58 }
0x1b24   :  { %v1651_v42 = vmul.f32 %v4649_v53, %v1650_v4 }
0x1b25   :  { %v3734_v57 = vpop.eup %3733  ;;  %v1637_v52 = vadd.f32 %v1636_v18, %v1621_v19 }
0x1b26   :  { %v1665_v43 = vmul.f32 %v3734_v57, %v1657_v36  ;;  %v1652_v48 = vadd.f32 %v4655_v5, %v1651_v42 }
0x1b27   :  { %v3189_v27 = vmul.f32 -1.442695, %v1637_v52 }
0x1b28   :  { %v1666_v34 = vmul.f32 %v4652_v17, %v1665_v43 }
0x1b29   :  { %3735 = vpow2.f32 %v3189_v27 }
0x1b2a   :  { %v1667_v25 = vadd.f32 %v4658_v51, %v1666_v34 }
0x1b2c   :  { %v1668_v28 = vadd.f32 %v1667_v25, %v1652_v48 }
0x1b2e   :  { %v3188_v1 = vmul.f32 -1.442695, %v1668_v28 }
0x1b30   :  { %3737 = vpow2.f32 %v3188_v1 }
0x1b31   :  { %3739 = vtanh.f32 %v1637_v52 }
0x1b33   :  { %v3736_v2 = vpop.eup %3735 }
0x1b34   :  { %v1725_v26 = vadd.f32 1.0, %v3736_v2 }
0x1b36   :  { %3741 = vrcp.f32 %v1725_v26 }
0x1b37   :  { %3743 = vtanh.f32 %v1668_v28 }
0x1b3a   :  { %v3738_v36 = vpop.eup %3737 }
0x1b3b   :  { %v1672_v3 = vadd.f32 1.0, %v3738_v36  ;;  %v3740_v16 = vpop.eup %3739 }
0x1b3d   :  { %3745 = vrcp.f32 %v1672_v3 }
0x1b40   :  { %v3742_v22 = vpop.eup %3741 }
0x1b41   :  { %v4663_v63 = vsel %vm83_vm4, %v3742_v22, %v3740_v16  ;;  %v3744_v24 = vpop.eup %3743 }
0x1b42   :  { %1732 = vrot.lane.b32.xlu0 %v4663_v63, %s3991_s26  ;;  %v1730_v40 = vmul.f32 %v4663_v63, %v4535_v54 }
0x1b47   :  { %v3746_v55 = vpop.eup %3745 }
0x1b48   :  { %v4669_v56 = vsel %vm83_vm4, %v3746_v55, %v3744_v24 }
0x1b49   :  { %1679 = vrot.lane.b32.xlu1 %v4669_v56, %s3991_s26  ;;  %v1677_v19 = vmul.f32 %v4669_v56, %v4541_v9 }
0x1bb4   :  { %v1733_v31 = vpop.permute.xlu0 %1732 }
0x1bb5   :  { %v1735_v29 = vmul.f32 %v1733_v31, %v4663_v63 }
0x1bb7   :  { %1737 = vrot.lane.b32.xlu1 %v1735_v29, %s3991_s26 }
0x1bbb   :  { %v1680_v62 = vpop.permute.xlu1 %1679 }
0x1bbc   :  { %v1682_v33 = vmul.f32 %v1680_v62, %v4669_v56 }
0x1bbe   :  { %1684 = vrot.lane.b32.xlu1 %v1682_v33, %s3991_s26 }
0x1c29   :  { %v1738_v44 = vpop.permute.xlu1 %1737 }
0x1c2a   :  { %v4679_v58 = vadd.f32 %v1738_v44, %v1730_v40 }
0x1c2c   :  { %1742 = vrot.lane.b32.xlu0 %v4679_v58, %s3999_s3 }
0x1c30   :  { %v1685_v4 = vpop.permute.xlu1 %1684 }
0x1c31   :  { %v4685_v18 = vadd.f32 %v1685_v4, %v1677_v19 }
0x1c33   :  { %1689 = vrot.lane.b32.xlu1 %v4685_v18, %s3999_s3 }
0x1c9e   :  { %v1743_v57 = vpop.permute.xlu0 %1742 }
0x1c9f   :  { %v1745_v52 = vsel %vm305_vm5, %v1743_v57, 0.0 }
0x1ca0   :  { %1746 = vadd.xlane.f32.xlu0 %v1745_v52 }
0x1ca5   :  { %v1690_v54 = vpop.permute.xlu1 %1689 }
0x1ca6   :  { %v1692_v42 = vsel %vm305_vm5, %v1690_v54, 0.0 }
0x1ca7   :  { %1693 = vadd.xlane.f32.xlu1 %v1692_v42 }
0x1d2d   :  { %v1747_v43 = vpop.xlane.xlu0 %1746 }
0x1d2e   :  { %v1748_v27 = vmul.f32 0.03125, %v1747_v43 }
0x1d30   :  { %v1749_v34 = vsub.f32 %v4679_v58, %v1748_v27 }
0x1d32   :  { %v1750_v48 = vmul.f32 %v1749_v34, %v1749_v34 }
0x1d34   :  { %1752 = vrot.lane.b32.xlu0 %v1750_v48, %s3999_s3  ;;  %v1694_v9 = vpop.xlane.xlu1 %1693  ;;  %v1771_v48 = vld [vmem:[#allocation3 + $0xa] sm:$0x3] }
0x1d35   :  { %v1695_v25 = vmul.f32 0.03125, %v1694_v9 }
0x1d37   :  { %v1696_v28 = vsub.f32 %v4685_v18, %v1695_v25 }
0x1d39   :  { %v1697_v1 = vmul.f32 %v1696_v28, %v1696_v28 }
0x1d3b   :  { %1699 = vrot.lane.b32.xlu1 %v1697_v1, %s3999_s3 }
0x1da6   :  { %v1753_v2 = vpop.permute.xlu0 %1752 }
0x1da7   :  { %v1755_v26 = vsel %vm305_vm5, %v1753_v2, 0.0 }
0x1da8   :  { %1756 = vadd.xlane.f32.xlu0 %v1755_v26 }
0x1dad   :  { %v1700_v36 = vpop.permute.xlu1 %1699 }
0x1dae   :  { %v1702_v3 = vsel %vm305_vm5, %v1700_v36, 0.0 }
0x1daf   :  { %1703 = vadd.xlane.f32.xlu1 %v1702_v3 }
0x1e35   :  { %v1757_v16 = vpop.xlane.xlu0 %1756 }
0x1e36   :  { %v1758_v22 = vmul.f32 0.03125, %v1757_v16 }
0x1e38   :  { %v1759_v24 = vadd.f32 1e-05, %v1758_v22 }
0x1e3a   :  { %3747 = vrsqrt.f32 %v1759_v24 }
0x1e3c   :  { %v1704_v55 = vpop.xlane.xlu1 %1703 }
0x1e3d   :  { %v1705_v31 = vmul.f32 0.03125, %v1704_v55 }
0x1e3f   :  { %v1706_v29 = vadd.f32 1e-05, %v1705_v31 }
0x1e41   :  { %3749 = vrsqrt.f32 %v1706_v29 }
0x1e44   :  { %v3748_v62 = vpop.eup %3747 }
0x1e45   :  { %v1761_v33 = vmul.f32 %v3748_v62, %v1749_v34 }
0x1e47   :  { %v1762_v40 = vmul.f32 %v1761_v33, %v4185_v59 }
0x1e49   :  { %v1763_v44 = vadd.f32 %v4554_v39, %v1762_v40 }
0x1e4b   :  { %v3750_v19 = vpop.eup %3749  ;;  %3751 = vtanh.f32 %v1763_v44 }
0x1e4c   :  { %v1708_v4 = vmul.f32 %v3750_v19, %v1696_v28 }
0x1e4e   :  { %v1709_v57 = vmul.f32 %v1708_v4, %v4335_v15 }
0x1e50   :  { %v1710_v52 = vadd.f32 %v1709_v57, %v4337_v21 }
0x1e52   :  { %3753 = vtanh.f32 %v1710_v52 }
0x1e55   :  { %v3752_v54 = vpop.eup %3751 }
0x1e56   :  { %1766 = vrot.lane.b32.xlu0 %v3752_v54, %s3991_s26 }
0x1e5c   :  { %v3754_v42 = vpop.eup %3753 }
0x1e5d   :  { %1713 = vrot.lane.b32.xlu1 %v3754_v42, %s3991_s26 }
0x1ec8   :  { %v1767_v43 = vpop.permute.xlu0 %1766 }
0x1ec9   :  { %v1769_v27 = vmul.f32 %v1767_v43, %v4663_v63 }
0x1ecb   :  { %1773 = vrot.lane.b32.xlu0 %v1769_v27, %s3999_s3 }
0x1ecf   :  { %v1714_v34 = vpop.permute.xlu1 %1713 }
0x1ed0   :  { %v4706_v9 = vmul.f32 %v1714_v34, %v4669_v56 }
0x1f3d   :  { %v1774_v25 = vpop.permute.xlu0 %1773 }
0x1f3e   :  { %v1776_v28 = vsel %vm85_vm0, %v1771_v48, %v1774_v25 }
0x1f3f   :  { %v1777_v1 = vsel %vm87_vm1, %v1776_v28, %v4706_v9 }
0x1f40   :  { %3190 = vmatmul.mubr.msk.f32.vlgmr.msra.gmra.mrb[8].mxu1 %vm158_vm2, %v1777_v1  ;;  %3191 = vmatmul.mubr.msk.f32.vlgmr.msra.gmra.mrb[10].mxu0 %vm158_vm2, %v1777_v1 }
0x1f41   :  { %3515 = vmatpush1.bf16.msra.mxu0 %v4561_v37  ;;  %2257 = vmatprep.mubr.f32.mxu1 %v3998_v0 }
0x1f42   :  { %3517 = vmatprep.subr.bf16.mxu0 %v4563_v23  ;;  %2328 = vmatprep.mubr.f32.mxu0 %v3998_v0 }
0x1f45   :  { %3519 = vmatpush1.bf16.msra.mxu0 %v4567_v49 }
0x1f46   :  { %3521 = vmatprep.subr.bf16.mxu0 %v4571_v60 }
0x1f49   :  { %3523 = vmatpush1.bf16.msra.mxu0 %v4574_v47 }
0x1f4a   :  { %3525 = vmatprep.subr.bf16.mxu0 %v4577_v12 }
0x1f4d   :  { %3527 = vmatpush1.bf16.msra.mxu0 %v4580_v38 }
0x1f4e   :  { %3529 = vmatprep.subr.bf16.mxu0 %v4584_v50 }
0x1f51   :  { %3531 = vmatpush1.bf16.msra.mxu0 %v4587_v61 }
0x1f52   :  { %3533 = vmatprep.subr.bf16.mxu0 %v4590_v8 }
0x1f55   :  { %3535 = vmatpush1.bf16.msra.mxu0 %v4593_v32 }
0x2013   :  { %v1895_v37 = vpop.f32.mrb[8].mxu1  ;;  %v1966_v23 = vpop.f32.mrb[10].mxu0 }
0x2014   :  { %v1896_v49 = vadd.f32 %v1895_v37, %v4138_v45  ;;  %v1897_v63 = vpop.f32.mrb[9].mxu1  ;;  %v1968_v60 = vpop.f32.mrb[11].mxu0  ;;  %v1967_v38 = vadd.f32 %v1966_v23, %v4260_v14 }
0x2015   :  { %v1898_v47 = vadd.f32 %v1897_v63, %v4141_v46  ;;  %v1969_v61 = vadd.f32 %v1968_v60, %v4268_v35 }
0x2016   :  { %v1971_v12 = vsel %vm233_vm3, %v1896_v49, 0.0  ;;  %v2002_v8 = vsel %vm233_vm3, %v1967_v38, 0.0 }
0x2017   :  { %1972 = vadd.xlane.f32.xlu1 %v1971_v12  ;;  %v1986_v50 = vsel %vm233_vm3, %v1898_v47, 0.0  ;;  %v2017_v32 = vsel %vm233_vm3, %v1969_v61, 0.0 }
0x2018   :  { %1987 = vadd.xlane.f32.xlu0 %v1986_v50 }
0x201c   :  { %2003 = vadd.xlane.f32.xlu0 %v2002_v8 }
0x2020   :  { %2018 = vadd.xlane.f32.xlu0 %v2017_v32 }
0x20a4   :  { %v1973_v56 = vpop.xlane.xlu1 %1972 }
0x20a5   :  { %v1974_v2 = vmul.f32 0.0078125, %v1973_v56  ;;  %v1988_v26 = vpop.xlane.xlu0 %1987 }
0x20a6   :  { %v1989_v36 = vmul.f32 0.0078125, %v1988_v26 }
0x20a7   :  { %v1975_v3 = vsub.f32 %v1896_v49, %v1974_v2 }
0x20a8   :  { %v1990_v16 = vsub.f32 %v1898_v47, %v1989_v36 }
0x20a9   :  { %v2004_v22 = vpop.xlane.xlu0 %2003  ;;  %v1976_v24 = vmul.f32 %v1975_v3, %v1975_v3 }
0x20aa   :  { %v2005_v55 = vmul.f32 0.0078125, %v2004_v22  ;;  %v1991_v31 = vmul.f32 %v1990_v16, %v1990_v16 }
0x20ab   :  { %v1977_v29 = vsel %vm233_vm3, %v1976_v24, 0.0 }
0x20ac   :  { %v2006_v62 = vsub.f32 %v1967_v38, %v2005_v55  ;;  %1978 = vadd.xlane.f32.xlu1 %v1977_v29  ;;  %v1992_v33 = vsel %vm233_vm3, %v1991_v31, 0.0 }
0x20ad   :  { %1993 = vadd.xlane.f32.xlu0 %v1992_v33  ;;  %v2019_v40 = vpop.xlane.xlu0 %2018 }
0x20ae   :  { %v2020_v44 = vmul.f32 0.0078125, %v2019_v40  ;;  %v2007_v19 = vmul.f32 %v2006_v62, %v2006_v62 }
0x20b0   :  { %v2021_v4 = vsub.f32 %v1969_v61, %v2020_v44  ;;  %v2008_v57 = vsel %vm233_vm3, %v2007_v19, 0.0 }
0x20b1   :  { %2009 = vadd.xlane.f32.xlu1 %v2008_v57 }
0x20b2   :  { %v2022_v52 = vmul.f32 %v2021_v4, %v2021_v4 }
0x20b4   :  { %v2023_v54 = vsel %vm233_vm3, %v2022_v52, 0.0 }
0x20b5   :  { %2024 = vadd.xlane.f32.xlu0 %v2023_v54 }
0x2139   :  { %v1979_v42 = vpop.xlane.xlu1 %1978 }
0x213a   :  { %v1980_v43 = vmul.f32 0.0078125, %v1979_v42  ;;  %v1994_v27 = vpop.xlane.xlu0 %1993 }
0x213b   :  { %v1995_v34 = vmul.f32 0.0078125, %v1994_v27 }
0x213c   :  { %v1981_v48 = vadd.f32 1e-05, %v1980_v43 }
0x213d   :  { %v1996_v25 = vadd.f32 1e-05, %v1995_v34 }
0x213e   :  { %3755 = vrsqrt.f32 %v1981_v48  ;;  %v2010_v28 = vpop.xlane.xlu1 %2009 }
0x213f   :  { %3757 = vrsqrt.f32 %v1996_v25  ;;  %v2011_v1 = vmul.f32 0.0078125, %v2010_v28 }
0x2141   :  { %v2012_v37 = vadd.f32 1e-05, %v2011_v1 }
0x2142   :  { %v2025_v23 = vpop.xlane.xlu0 %2024 }
0x2143   :  { %3759 = vrsqrt.f32 %v2012_v37  ;;  %v2026_v49 = vmul.f32 0.0078125, %v2025_v23 }
0x2145   :  { %v2027_v63 = vadd.f32 1e-05, %v2026_v49 }
0x2147   :  { %3761 = vrsqrt.f32 %v2027_v63 }
0x2148   :  { %v3756_v60 = vpop.eup %3755 }
0x2149   :  { %v3758_v47 = vpop.eup %3757  ;;  %v1983_v12 = vmul.f32 %v3756_v60, %v1975_v3 }
0x214a   :  { %v1998_v38 = vmul.f32 %v3758_v47, %v1990_v16 }
0x214b   :  { %v1984_v50 = vmul.f32 %v4501_v20, %v1983_v12 }
0x214c   :  { %v1999_v61 = vmul.f32 %v4504_v41, %v1998_v38 }
0x214d   :  { %v3760_v8 = vpop.eup %3759  ;;  %v1985_v32 = vadd.f32 %v4507_v7, %v1984_v50 }
0x214e   :  { %v2000_v56 = vadd.f32 %v4510_v11, %v1999_v61  ;;  %v2014_v2 = vmul.f32 %v3760_v8, %v2006_v62 }
0x2150   :  { %v2001_v26 = vadd.f32 %v2000_v56, %v1985_v32  ;;  %v2015_v24 = vmul.f32 %v4649_v53, %v2014_v2 }
0x2151   :  { %v3762_v36 = vpop.eup %3761 }
0x2152   :  { %v3193_v22 = vmul.f32 -1.442695, %v2001_v26  ;;  %v2029_v55 = vmul.f32 %v3762_v36, %v2021_v4  ;;  %v2016_v16 = vadd.f32 %v4655_v5, %v2015_v24 }
0x2154   :  { %3763 = vpow2.f32 %v3193_v22  ;;  %v2030_v3 = vmul.f32 %v4652_v17, %v2029_v55 }
0x2156   :  { %v2031_v20 = vadd.f32 %v4658_v51, %v2030_v3 }
0x2158   :  { %v2032_v41 = vadd.f32 %v2031_v20, %v2016_v16 }
0x215a   :  { %v3192_v31 = vmul.f32 -1.442695, %v2032_v41 }
0x215c   :  { %3765 = vpow2.f32 %v3192_v31 }
0x215d   :  { %3767 = vtanh.f32 %v2001_v26 }
0x215e   :  { %v3764_v7 = vpop.eup %3763 }
0x215f   :  { %v2089_v29 = vadd.f32 1.0, %v3764_v7 }
0x2161   :  { %3769 = vrcp.f32 %v2089_v29 }
0x2162   :  { %3771 = vtanh.f32 %v2032_v41 }
0x2166   :  { %v3766_v11 = vpop.eup %3765 }
0x2167   :  { %v2036_v62 = vadd.f32 1.0, %v3766_v11  ;;  %v3768_v33 = vpop.eup %3767 }
0x2169   :  { %3773 = vrcp.f32 %v2036_v62 }
0x216b   :  { %v3770_v40 = vpop.eup %3769 }
0x216c   :  { %v4748_v44 = vsel %vm83_vm4, %v3770_v40, %v3768_v33  ;;  %v3772_v19 = vpop.eup %3771  ;;  %v2143_v33 = vld [vmem:[#allocation6 + $0x8] sm:$0xff] }
0x216d   :  { %2096 = vrot.lane.b32.xlu1 %v4748_v44, %s3991_s26  ;;  %v2094_v27 = vmul.f32 %v4748_v44, %v4679_v58  ;;  %v2147_v40 = vld [vmem:[#allocation6 + $0x28] sm:$0xff] }
0x2173   :  { %v3774_v4 = vpop.eup %3773 }
0x2174   :  { %v4754_v57 = vsel %vm83_vm4, %v3774_v4, %v3772_v19  ;;  %v2142_v19 = vld [vmem:[#allocation6] sm:$0xff]  ;;  %v3488_v4 = vpack.c.bf16 %v2147_v40, %v2143_v33 }
0x2175   :  { %2043 = vrot.lane.b32.xlu0 %v4754_v57, %s3991_s26  ;;  %v2041_v25 = vmul.f32 %v4754_v57, %v4685_v18 }
0x2176   :  { %3489 = vmatprep.subr.bf16.mxu1 %v3488_v4 }
0x21df   :  { %v2097_v52 = vpop.permute.xlu1 %2096 }
0x21e0   :  { %v2099_v54 = vmul.f32 %v2097_v52, %v4748_v44  ;;  %v2146_v52 = vld [vmem:[#allocation6 + $0x20] sm:$0xff] }
0x21e2   :  { %2101 = vrot.lane.b32.xlu1 %v2099_v54, %s3991_s26  ;;  %v2151_v54 = vld [vmem:[#allocation6 + $0x48] sm:$0xff] }
0x21e7   :  { %v2044_v42 = vpop.permute.xlu0 %2043 }
0x21e8   :  { %v2046_v43 = vmul.f32 %v2044_v42, %v4754_v57  ;;  %v2155_v42 = vld [vmem:[#allocation6 + $0x68] sm:$0xff] }
0x21ea   :  { %2048 = vrot.lane.b32.xlu1 %v2046_v43, %s3991_s26  ;;  %v3490_v43 = vpack.c.bf16 %v2146_v52, %v2142_v19 }
0x21ec   :  { %3491 = vmatpush1.bf16.msra.mxu1 %v3490_v43 }
0x2254   :  { %v2102_v34 = vpop.permute.xlu1 %2101 }
0x2255   :  { %v4764_v48 = vadd.f32 %v2102_v34, %v2094_v27  ;;  %v3492_v27 = vpack.c.bf16 %v2155_v42, %v2151_v54  ;;  %v2150_v34 = vld [vmem:[#allocation6 + $0x40] sm:$0xff] }
0x2257   :  { %2106 = vrot.lane.b32.xlu1 %v4764_v48, %s3999_s3  ;;  %3493 = vmatprep.subr.bf16.mxu1 %v3492_v27 }
0x225c   :  { %v2049_v28 = vpop.permute.xlu1 %2048 }
0x225d   :  { %v4770_v1 = vadd.f32 %v2049_v28, %v2041_v25  ;;  %v2154_v25 = vld [vmem:[#allocation6 + $0x60] sm:$0xff]  ;;  %v2163_v28 = vld [vmem:[#allocation6 + $0xa8] sm:$0xff] }
0x225f   :  { %2053 = vrot.lane.b32.xlu0 %v4770_v1, %s3999_s3 }
0x22c9   :  { %v2107_v37 = vpop.permute.xlu1 %2106 }
0x22ca   :  { %v2109_v23 = vsel %vm305_vm5, %v2107_v37, 0.0 }
0x22cb   :  { %2110 = vadd.xlane.f32.xlu1 %v2109_v23  ;;  %v3494_v23 = vpack.c.bf16 %v2154_v25, %v2150_v34 }
0x22cd   :  { %3495 = vmatpush1.bf16.msra.mxu1 %v3494_v23 }
0x22d1   :  { %v2054_v58 = vpop.permute.xlu0 %2053 }
0x22d2   :  { %v2056_v49 = vsel %vm305_vm5, %v2054_v58, 0.0 }
0x22d3   :  { %2057 = vadd.xlane.f32.xlu0 %v2056_v49  ;;  %v2158_v49 = vld [vmem:[#allocation6 + $0x80] sm:$0xff] }
0x2358   :  { %v2111_v63 = vpop.xlane.xlu1 %2110 }
0x2359   :  { %v2112_v60 = vmul.f32 0.03125, %v2111_v63  ;;  %v2162_v63 = vld [vmem:[#allocation6 + $0xa0] sm:$0xff] }
0x235b   :  { %v2113_v47 = vsub.f32 %v4764_v48, %v2112_v60  ;;  %v2167_v60 = vld [vmem:[#allocation6 + $0xc8] sm:$0xff] }
0x235d   :  { %v2114_v12 = vmul.f32 %v2113_v47, %v2113_v47 }
0x235f   :  { %2116 = vrot.lane.b32.xlu0 %v2114_v12, %s3999_s3  ;;  %v3498_v12 = vpack.c.bf16 %v2162_v63, %v2158_v49 }
0x2360   :  { %v2058_v18 = vpop.xlane.xlu0 %2057 }
0x2361   :  { %v2059_v38 = vmul.f32 0.03125, %v2058_v18 }
0x2363   :  { %v2060_v50 = vsub.f32 %v4770_v1, %v2059_v38  ;;  %v2166_v38 = vld [vmem:[#allocation6 + $0xc0] sm:$0xff] }
0x2365   :  { %v2061_v61 = vmul.f32 %v2060_v50, %v2060_v50 }
0x2367   :  { %2063 = vrot.lane.b32.xlu1 %v2061_v61, %s3999_s3  ;;  %v2175_v61 = vld [vmem:[#allocation6 + $0x108] sm:$0xff] }
0x23d1   :  { %v2117_v8 = vpop.permute.xlu0 %2116 }
0x23d2   :  { %v2119_v32 = vsel %vm305_vm5, %v2117_v8, 0.0  ;;  %v2179_v8 = vld [vmem:[#allocation6 + $0x128] sm:$0xff] }
0x23d3   :  { %2120 = vadd.xlane.f32.xlu1 %v2119_v32 }
0x23d9   :  { %v2064_v56 = vpop.permute.xlu1 %2063 }
0x23da   :  { %v2066_v2 = vsel %vm305_vm5, %v2064_v56, 0.0 }
0x23db   :  { %2067 = vadd.xlane.f32.xlu0 %v2066_v2  ;;  %v3504_v2 = vpack.c.bf16 %v2179_v8, %v2175_v61 }
0x2460   :  { %v2121_v26 = vpop.xlane.xlu1 %2120 }
0x2461   :  { %v2122_v36 = vmul.f32 0.03125, %v2121_v26  ;;  %v2174_v26 = vld [vmem:[#allocation6 + $0x100] sm:$0xff] }
0x2463   :  { %v2123_v22 = vadd.f32 1e-05, %v2122_v36  ;;  %v2178_v36 = vld [vmem:[#allocation6 + $0x120] sm:$0xff] }
0x2465   :  { %3775 = vrsqrt.f32 %v2123_v22  ;;  %v2183_v22 = vld [vmem:[#allocation6 + $0x148] sm:$0xff] }
0x2468   :  { %v2068_v24 = vpop.xlane.xlu0 %2067 }
0x2469   :  { %v2069_v55 = vmul.f32 0.03125, %v2068_v24  ;;  %v2187_v24 = vld [vmem:[#allocation6 + $0x168] sm:$0xff] }
0x246b   :  { %v2070_v3 = vadd.f32 1e-05, %v2069_v55  ;;  %v3506_v55 = vpack.c.bf16 %v2178_v36, %v2174_v26 }
0x246d   :  { %3777 = vrsqrt.f32 %v2070_v3  ;;  %v3508_v3 = vpack.c.bf16 %v2187_v24, %v2183_v22 }
0x246f   :  { %v3776_v16 = vpop.eup %3775 }
0x2470   :  { %v2125_v20 = vmul.f32 %v3776_v16, %v2113_v47  ;;  %v2171_v47 = vld [vmem:[#allocation6 + $0xe8] sm:$0xff]  ;;  %v2182_v16 = vld [vmem:[#allocation6 + $0x140] sm:$0xff] }
0x2471   :  { %v3500_v18 = vpack.c.bf16 %v2171_v47, %v2167_v60 }
0x2472   :  { %v2126_v41 = vmul.f32 %v2125_v20, %v4185_v59  ;;  %v2186_v20 = vld [vmem:[#allocation6 + $0x160] sm:$0xff] }
0x2474   :  { %v2127_v31 = vadd.f32 %v4554_v39, %v2126_v41  ;;  %v2159_v39 = vld [vmem:[#allocation6 + $0x88] sm:$0xff]  ;;  %v3510_v41 = vpack.c.bf16 %v2186_v20, %v2182_v16 }
0x2475   :  { %v3496_v58 = vpack.c.bf16 %v2163_v28, %v2159_v39 }
0x2476   :  { %3779 = vtanh.f32 %v2127_v31 }
0x2477   :  { %v3778_v7 = vpop.eup %3777  ;;  %3497 = vmatprep.subr.bf16.mxu1 %v3496_v58 }
0x2478   :  { %v2072_v29 = vmul.f32 %v3778_v7, %v2060_v50  ;;  %v2170_v50 = vld [vmem:[#allocation6 + $0xe0] sm:$0xff]  ;;  %3499 = vmatpush1.bf16.msra.mxu1 %v3498_v12 }
0x2479   :  { %v3502_v56 = vpack.c.bf16 %v2170_v50, %v2166_v38  ;;  %3501 = vmatprep.subr.bf16.mxu1 %v3500_v18 }
0x247a   :  { %v2073_v11 = vmul.f32 %v2072_v29, %v4335_v15 }
0x247c   :  { %v2074_v62 = vadd.f32 %v2073_v11, %v4337_v21  ;;  %3503 = vmatpush1.bf16.msra.mxu1 %v3502_v56  ;;  %v2135_v11 = vld [vmem:[#allocation3 + $0xc] sm:$0x3] }
0x247d   :  { %3505 = vmatprep.subr.bf16.mxu1 %v3504_v2 }
0x247e   :  { %3781 = vtanh.f32 %v2074_v62 }
0x2480   :  { %v3780_v37 = vpop.eup %3779  ;;  %3507 = vmatpush1.bf16.msra.mxu1 %v3506_v55 }
0x2481   :  { %2130 = vrot.lane.b32.xlu0 %v3780_v37, %s3991_s26  ;;  %3509 = vmatprep.subr.bf16.mxu1 %v3508_v3 }
0x2484   :  { %3511 = vmatpush1.bf16.msra.mxu1 %v3510_v41 }
0x2485   :  { %3537 = vmatprep.subr.bf16.mxu1 %v3488_v4 }
0x2488   :  { %v3782_v32 = vpop.eup %3781 }
0x2489   :  { %2077 = vrot.lane.b32.xlu1 %v3782_v32, %s3991_s26 }
0x24f3   :  { %v2131_v31 = vpop.permute.xlu0 %2130 }
0x24f4   :  { %v2133_v7 = vmul.f32 %v2131_v31, %v4748_v44 }
0x24f6   :  { %2137 = vrot.lane.b32.xlu1 %v2133_v7, %s3999_s3 }
0x24fb   :  { %v2078_v29 = vpop.permute.xlu1 %2077 }
0x24fc   :  { %v4791_v62 = vmul.f32 %v2078_v29, %v4754_v57 }
0x2568   :  { %v2138_v33 = vpop.permute.xlu1 %2137 }
0x2569   :  { %v2140_v40 = vsel %vm85_vm0, %v2135_v11, %v2138_v33 }
0x256a   :  { %v2141_v19 = vsel %vm87_vm1, %v2140_v40, %v4791_v62 }
0x256b   :  { %3194 = vmatmul.mubr.msk.f32.vlgmr.msra.gmra.mrb[10].mxu1 %vm158_vm2, %v2141_v19  ;;  %3195 = vmatmul.mubr.msk.f32.vlgmr.msra.gmra.mrb[12].mxu0 %vm158_vm2, %v2141_v19 }
0x256c   :  { %3539 = vmatpush1.bf16.msra.mxu1 %v3490_v43  ;;  %2621 = vmatprep.mubr.f32.mxu1 %v3998_v0 }
0x256d   :  { %3541 = vmatprep.subr.bf16.mxu1 %v3492_v27  ;;  %2692 = vmatprep.mubr.f32.mxu0 %v3998_v0 }
0x2570   :  { %3543 = vmatpush1.bf16.msra.mxu1 %v3494_v23 }
0x2571   :  { %3545 = vmatprep.subr.bf16.mxu1 %v3496_v58 }
0x2574   :  { %3547 = vmatpush1.bf16.msra.mxu1 %v3498_v12 }
0x2575   :  { %3549 = vmatprep.subr.bf16.mxu1 %v3500_v18 }
0x2578   :  { %3551 = vmatpush1.bf16.msra.mxu1 %v3502_v56 }
0x2579   :  { %3553 = vmatprep.subr.bf16.mxu1 %v3504_v2 }
0x257c   :  { %3555 = vmatpush1.bf16.msra.mxu1 %v3506_v55 }
0x257d   :  { %3557 = vmatprep.subr.bf16.mxu1 %v3508_v3 }
0x2580   :  { %3559 = vmatpush1.bf16.msra.mxu1 %v3510_v41 }
0x263e   :  { %v2259_v44 = vpop.f32.mrb[10].mxu1  ;;  %v2330_v57 = vpop.f32.mrb[12].mxu0 }
0x263f   :  { %v2260_v4 = vadd.f32 %v2259_v44, %v4138_v45  ;;  %v2261_v52 = vpop.f32.mrb[11].mxu1  ;;  %v2332_v54 = vpop.f32.mrb[13].mxu0  ;;  %v2331_v43 = vadd.f32 %v2330_v57, %v4260_v14 }
0x2640   :  { %v2262_v42 = vadd.f32 %v2261_v52, %v4141_v46  ;;  %v2333_v25 = vadd.f32 %v2332_v54, %v4268_v35  ;;  %v4812_v54 = vld [vmem:[#allocation8 + $0x1] ss:$0 sm:$0xff] }
0x2641   :  { %v2335_v27 = vsel %vm233_vm3, %v2260_v4, 0.0  ;;  %v2366_v39 = vsel %vm233_vm3, %v2331_v43, 0.0 }
0x2642   :  { %2336 = vadd.xlane.f32.xlu0 %v2335_v27  ;;  %v2350_v34 = vsel %vm233_vm3, %v2262_v42, 0.0  ;;  %v2381_v28 = vsel %vm233_vm3, %v2333_v25, 0.0  ;;  %v4815_v27 = vld [vmem:[#allocation8 + $0x5] ss:$0 sm:$0xff] }
0x2643   :  { %2351 = vadd.xlane.f32.xlu1 %v2350_v34 }
0x2646   :  { %2367 = vadd.xlane.f32.xlu0 %v2366_v39 }
0x264a   :  { %2382 = vadd.xlane.f32.xlu0 %v2381_v28 }
0x26cf   :  { %v2337_v37 = vpop.xlane.xlu0 %2336 }
0x26d0   :  { %v2338_v23 = vmul.f32 0.0078125, %v2337_v37  ;;  %v2352_v58 = vpop.xlane.xlu1 %2351  ;;  %v4821_v37 = vld [vmem:[#allocation8 + $0x6] ss:$0 sm:$0xff] }
0x26d1   :  { %v2353_v49 = vmul.f32 0.0078125, %v2352_v58 }
0x26d2   :  { %v2339_v63 = vsub.f32 %v2260_v4, %v2338_v23 }
0x26d3   :  { %v2354_v60 = vsub.f32 %v2262_v42, %v2353_v49  ;;  %v2368_v47 = vpop.xlane.xlu0 %2367 }
0x26d4   :  { %v2369_v12 = vmul.f32 0.0078125, %v2368_v47  ;;  %v2340_v18 = vmul.f32 %v2339_v63, %v2339_v63 }
0x26d5   :  { %v2355_v38 = vmul.f32 %v2354_v60, %v2354_v60 }
0x26d6   :  { %v2370_v50 = vsub.f32 %v2331_v43, %v2369_v12  ;;  %v2341_v61 = vsel %vm233_vm3, %v2340_v18, 0.0 }
0x26d7   :  { %2342 = vadd.xlane.f32.xlu0 %v2341_v61  ;;  %v2383_v8 = vpop.xlane.xlu0 %2382  ;;  %v2356_v32 = vsel %vm233_vm3, %v2355_v38, 0.0 }
0x26d8   :  { %v2384_v56 = vmul.f32 0.0078125, %v2383_v8  ;;  %2357 = vadd.xlane.f32.xlu1 %v2356_v32  ;;  %v2371_v2 = vmul.f32 %v2370_v50, %v2370_v50 }
0x26da   :  { %v2385_v26 = vsub.f32 %v2333_v25, %v2384_v56  ;;  %v2372_v36 = vsel %vm233_vm3, %v2371_v2, 0.0  ;;  %v4818_v25 = vld [vmem:[#allocation8 + $0x2] ss:$0 sm:$0xff] }
0x26db   :  { %2373 = vadd.xlane.f32.xlu0 %v2372_v36 }
0x26dc   :  { %v2386_v22 = vmul.f32 %v2385_v26, %v2385_v26 }
0x26de   :  { %v2387_v24 = vsel %vm233_vm3, %v2386_v22, 0.0 }
0x26df   :  { %2388 = vadd.xlane.f32.xlu1 %v2387_v24 }
0x2764   :  { %v2343_v55 = vpop.xlane.xlu0 %2342 }
0x2765   :  { %v2344_v3 = vmul.f32 0.0078125, %v2343_v55  ;;  %v2358_v16 = vpop.xlane.xlu1 %2357 }
0x2766   :  { %v2359_v20 = vmul.f32 0.0078125, %v2358_v16 }
0x2767   :  { %v2345_v41 = vadd.f32 1e-05, %v2344_v3 }
0x2768   :  { %v2360_v31 = vadd.f32 1e-05, %v2359_v20  ;;  %v2374_v7 = vpop.xlane.xlu0 %2373 }
0x2769   :  { %3783 = vrsqrt.f32 %v2345_v41  ;;  %v2375_v29 = vmul.f32 0.0078125, %v2374_v7 }
0x276a   :  { %3785 = vrsqrt.f32 %v2360_v31 }
0x276b   :  { %v2376_v11 = vadd.f32 1e-05, %v2375_v29 }
0x276c   :  { %v2389_v33 = vpop.xlane.xlu1 %2388 }
0x276d   :  { %3787 = vrsqrt.f32 %v2376_v11  ;;  %v2390_v40 = vmul.f32 0.0078125, %v2389_v33 }
0x276f   :  { %v2391_v19 = vadd.f32 1e-05, %v2390_v40 }
0x2771   :  { %3789 = vrsqrt.f32 %v2391_v19 }
0x2773   :  { %v3784_v44 = vpop.eup %3783 }
0x2774   :  { %v3786_v57 = vpop.eup %3785  ;;  %v2347_v4 = vmul.f32 %v3784_v44, %v2339_v63 }
0x2775   :  { %v2362_v52 = vmul.f32 %v3786_v57, %v2354_v60 }
0x2776   :  { %v2348_v42 = vmul.f32 %v4812_v54, %v2347_v4 }
0x2777   :  { %v3788_v43 = vpop.eup %3787  ;;  %v2363_v34 = vmul.f32 %v4815_v27, %v2362_v52 }
0x2778   :  { %v2349_v39 = vadd.f32 %v4818_v25, %v2348_v42  ;;  %v2378_v28 = vmul.f32 %v3788_v43, %v2370_v50 }
0x2779   :  { %v2364_v23 = vadd.f32 %v4821_v37, %v2363_v34 }
0x277a   :  { %v2379_v63 = vmul.f32 %v4649_v53, %v2378_v28 }
0x277b   :  { %v3790_v58 = vpop.eup %3789  ;;  %v2365_v49 = vadd.f32 %v2364_v23, %v2349_v39 }
0x277c   :  { %v2393_v60 = vmul.f32 %v3790_v58, %v2385_v26  ;;  %v2380_v18 = vadd.f32 %v4655_v5, %v2379_v63 }
0x277d   :  { %v3197_v47 = vmul.f32 -1.442695, %v2365_v49 }
0x277e   :  { %v2394_v12 = vmul.f32 %v4652_v17, %v2393_v60 }
0x277f   :  { %3791 = vpow2.f32 %v3197_v47 }
0x2780   :  { %v2395_v38 = vadd.f32 %v4658_v51, %v2394_v12 }
0x2782   :  { %v2396_v61 = vadd.f32 %v2395_v38, %v2380_v18 }
0x2784   :  { %v3196_v8 = vmul.f32 -1.442695, %v2396_v61 }
0x2786   :  { %3793 = vpow2.f32 %v3196_v8  ;;  %v4865_v8 = vld [vmem:[#allocation8 + $0x3] ss:$0 sm:$0xff] }
0x2787   :  { %3795 = vtanh.f32 %v2365_v49 }
0x2789   :  { %v3792_v50 = vpop.eup %3791 }
0x278a   :  { %v2453_v32 = vadd.f32 1.0, %v3792_v50 }
0x278c   :  { %3797 = vrcp.f32 %v2453_v32 }
0x278d   :  { %3799 = vtanh.f32 %v2396_v61 }
0x2790   :  { %v3794_v56 = vpop.eup %3793 }
0x2791   :  { %v2400_v2 = vadd.f32 1.0, %v3794_v56  ;;  %v3796_v53 = vpop.eup %3795 }
0x2793   :  { %3801 = vrcp.f32 %v2400_v2 }
0x2796   :  { %v3798_v26 = vpop.eup %3797 }
0x2797   :  { %v4830_v17 = vsel %vm83_vm4, %v3798_v26, %v3796_v53  ;;  %v3800_v5 = vpop.eup %3799  ;;  %v2509_v26 = vld [vmem:[#allocation6 + $0x18] sm:$0xff] }
0x2798   :  { %2460 = vrot.lane.b32.xlu0 %v4830_v17, %s3991_s26  ;;  %v2458_v16 = vmul.f32 %v4830_v17, %v4764_v48 }
0x279d   :  { %v3802_v51 = vpop.eup %3801 }
0x279e   :  { %v4836_v36 = vsel %vm83_vm4, %v3802_v51, %v3800_v5  ;;  %v2513_v5 = vld [vmem:[#allocation6 + $0x38] sm:$0xff]  ;;  %v2508_v51 = vld [vmem:[#allocation6 + $0x10] sm:$0xff] }
0x279f   :  { %2407 = vrot.lane.b32.xlu1 %v4836_v36, %s3991_s26  ;;  %v2405_v31 = vmul.f32 %v4836_v36, %v4770_v1 }
0x280a   :  { %v2461_v22 = vpop.permute.xlu0 %2460 }
0x280b   :  { %v2463_v24 = vmul.f32 %v2461_v22, %v4830_v17  ;;  %v3560_v22 = vpack.c.bf16 %v2513_v5, %v2509_v26  ;;  %v2499_v26 = vld [vmem:[#allocation3 + $0xe] sm:$0x3] }
0x280d   :  { %2465 = vrot.lane.b32.xlu1 %v2463_v24, %s3991_s26  ;;  %v2512_v24 = vld [vmem:[#allocation6 + $0x30] sm:$0xff]  ;;  %3561 = vmatprep.subr.bf16.mxu0 %v3560_v22 }
0x280e   :  { %3585 = vmatprep.subr.bf16.mxu1 %v3560_v22 }
0x2811   :  { %v2408_v55 = vpop.permute.xlu1 %2407 }
0x2812   :  { %v2410_v3 = vmul.f32 %v2408_v55, %v4836_v36  ;;  %v2517_v55 = vld [vmem:[#allocation6 + $0x58] sm:$0xff] }
0x2814   :  { %2412 = vrot.lane.b32.xlu1 %v2410_v3, %s3991_s26  ;;  %v2521_v3 = vld [vmem:[#allocation6 + $0x78] sm:$0xff] }
0x287f   :  { %v2466_v20 = vpop.permute.xlu1 %2465 }
0x2880   :  { %v4846_v41 = vadd.f32 %v2466_v20, %v2458_v16  ;;  %v3562_v16 = vpack.c.bf16 %v2512_v24, %v2508_v51  ;;  %v3564_v20 = vpack.c.bf16 %v2521_v3, %v2517_v55 }
0x2882   :  { %2470 = vrot.lane.b32.xlu0 %v4846_v41, %s3999_s3  ;;  %3563 = vmatpush1.bf16.msra.mxu0 %v3562_v16 }
0x2883   :  { %3565 = vmatprep.subr.bf16.mxu0 %v3564_v20 }
0x2886   :  { %v2413_v7 = vpop.permute.xlu1 %2412 }
0x2887   :  { %v4852_v29 = vadd.f32 %v2413_v7, %v2405_v31  ;;  %v2516_v31 = vld [vmem:[#allocation6 + $0x50] sm:$0xff] }
0x2888   :  { %v2520_v7 = vld [vmem:[#allocation6 + $0x70] sm:$0xff] }
0x2889   :  { %2417 = vrot.lane.b32.xlu1 %v4852_v29, %s3999_s3 }
0x28f4   :  { %v2471_v11 = vpop.permute.xlu0 %2470 }
0x28f5   :  { %v2473_v33 = vsel %vm305_vm5, %v2471_v11, 0.0  ;;  %v2525_v11 = vld [vmem:[#allocation6 + $0x98] sm:$0xff] }
0x28f6   :  { %2474 = vadd.xlane.f32.xlu0 %v2473_v33  ;;  %v2529_v33 = vld [vmem:[#allocation6 + $0xb8] sm:$0xff] }
0x28fb   :  { %v2418_v48 = vpop.permute.xlu1 %2417 }
0x28fc   :  { %v2420_v40 = vsel %vm305_vm5, %v2418_v48, 0.0  ;;  %v3566_v48 = vpack.c.bf16 %v2520_v7, %v2516_v31 }
0x28fd   :  { %2421 = vadd.xlane.f32.xlu1 %v2420_v40 }
0x28fe   :  { %3567 = vmatpush1.bf16.msra.mxu0 %v3566_v48 }
0x2983   :  { %v2475_v19 = vpop.xlane.xlu0 %2474 }
0x2984   :  { %v2476_v44 = vmul.f32 0.03125, %v2475_v19  ;;  %v3568_v19 = vpack.c.bf16 %v2529_v33, %v2525_v11 }
0x2986   :  { %v2477_v57 = vsub.f32 %v4846_v41, %v2476_v44  ;;  %v2524_v44 = vld [vmem:[#allocation6 + $0x90] sm:$0xff]  ;;  %3569 = vmatprep.subr.bf16.mxu0 %v3568_v19 }
0x2988   :  { %v2478_v4 = vmul.f32 %v2477_v57, %v2477_v57 }
0x298a   :  { %2480 = vrot.lane.b32.xlu0 %v2478_v4, %s3999_s3  ;;  %v2422_v1 = vpop.xlane.xlu1 %2421  ;;  %v2533_v4 = vld [vmem:[#allocation6 + $0xd8] sm:$0xff] }
0x298b   :  { %v2423_v52 = vmul.f32 0.03125, %v2422_v1  ;;  %v2537_v1 = vld [vmem:[#allocation6 + $0xf8] sm:$0xff] }
0x298d   :  { %v2424_v42 = vsub.f32 %v4852_v29, %v2423_v52 }
0x298f   :  { %v2425_v43 = vmul.f32 %v2424_v42, %v2424_v42 }
0x2991   :  { %2427 = vrot.lane.b32.xlu1 %v2425_v43, %s3999_s3  ;;  %v2532_v43 = vld [vmem:[#allocation6 + $0xd0] sm:$0xff] }
0x29fc   :  { %v2481_v34 = vpop.permute.xlu0 %2480 }
0x29fd   :  { %v2483_v39 = vsel %vm305_vm5, %v2481_v34, 0.0  ;;  %v2536_v34 = vld [vmem:[#allocation6 + $0xf0] sm:$0xff] }
0x29fe   :  { %2484 = vadd.xlane.f32.xlu0 %v2483_v39  ;;  %v2541_v39 = vld [vmem:[#allocation6 + $0x118] sm:$0xff] }
0x2a03   :  { %v2428_v28 = vpop.permute.xlu1 %2427 }
0x2a04   :  { %v2430_v23 = vsel %vm305_vm5, %v2428_v28, 0.0  ;;  %v2545_v28 = vld [vmem:[#allocation6 + $0x138] sm:$0xff] }
0x2a05   :  { %2431 = vadd.xlane.f32.xlu1 %v2430_v23 }
0x2a8b   :  { %v2485_v58 = vpop.xlane.xlu0 %2484 }
0x2a8c   :  { %v2486_v49 = vmul.f32 0.03125, %v2485_v58  ;;  %v3574_v58 = vpack.c.bf16 %v2536_v34, %v2532_v43 }
0x2a8e   :  { %v2487_v63 = vadd.f32 1e-05, %v2486_v49  ;;  %v3576_v49 = vpack.c.bf16 %v2545_v28, %v2541_v39 }
0x2a90   :  { %3803 = vrsqrt.f32 %v2487_v63  ;;  %v2540_v63 = vld [vmem:[#allocation6 + $0x110] sm:$0xff] }
0x2a92   :  { %v2432_v60 = vpop.xlane.xlu1 %2431 }
0x2a93   :  { %v2433_v47 = vmul.f32 0.03125, %v2432_v60  ;;  %v2544_v60 = vld [vmem:[#allocation6 + $0x130] sm:$0xff] }
0x2a95   :  { %v2434_v12 = vadd.f32 1e-05, %v2433_v47  ;;  %v2549_v47 = vld [vmem:[#allocation6 + $0x158] sm:$0xff] }
0x2a97   :  { %3805 = vrsqrt.f32 %v2434_v12  ;;  %v2553_v12 = vld [vmem:[#allocation6 + $0x178] sm:$0xff] }
0x2a9a   :  { %v3804_v18 = vpop.eup %3803 }
0x2a9b   :  { %v2489_v38 = vmul.f32 %v3804_v18, %v2477_v57  ;;  %v2528_v57 = vld [vmem:[#allocation6 + $0xb0] sm:$0xff]  ;;  %v3578_v18 = vpack.c.bf16 %v2544_v60, %v2540_v63 }
0x2a9c   :  { %v3570_v52 = vpack.c.bf16 %v2528_v57, %v2524_v44 }
0x2a9d   :  { %v2490_v61 = vmul.f32 %v2489_v38, %v4185_v59  ;;  %v3580_v38 = vpack.c.bf16 %v2553_v12, %v2549_v47 }
0x2a9e   :  { %3571 = vmatpush1.bf16.msra.mxu0 %v3570_v52 }
0x2a9f   :  { %v2491_v50 = vadd.f32 %v4865_v8, %v2490_v61  ;;  %v2548_v61 = vld [vmem:[#allocation6 + $0x150] sm:$0xff] }
0x2aa1   :  { %v3806_v32 = vpop.eup %3805  ;;  %3807 = vtanh.f32 %v2491_v50  ;;  %v2552_v50 = vld [vmem:[#allocation6 + $0x170] sm:$0xff] }
0x2aa2   :  { %v2436_v56 = vmul.f32 %v3806_v32, %v2424_v42  ;;  %v3572_v42 = vpack.c.bf16 %v2537_v1, %v2533_v4  ;;  %v3582_v32 = vpack.c.bf16 %v2552_v50, %v2548_v61 }
0x2aa4   :  { %v2437_v2 = vmul.f32 %v2436_v56, %v4335_v15  ;;  %3573 = vmatprep.subr.bf16.mxu0 %v3572_v42 }
0x2aa5   :  { %3575 = vmatpush1.bf16.msra.mxu0 %v3574_v58 }
0x2aa6   :  { %v2438_v53 = vadd.f32 %v2437_v2, %v4337_v21  ;;  %3577 = vmatprep.subr.bf16.mxu0 %v3576_v49 }
0x2aa8   :  { %3809 = vtanh.f32 %v2438_v53 }
0x2aa9   :  { %3579 = vmatpush1.bf16.msra.mxu0 %v3578_v18 }
0x2aaa   :  { %3581 = vmatprep.subr.bf16.mxu0 %v3580_v38 }
0x2aab   :  { %v3808_v40 = vpop.eup %3807 }
0x2aac   :  { %2494 = vrot.lane.b32.xlu0 %v3808_v40, %s3991_s26 }
0x2aad   :  { %3583 = vmatpush1.bf16.msra.mxu0 %v3582_v32 }
0x2ab2   :  { %v3810_v23 = vpop.eup %3809 }
0x2ab3   :  { %2441 = vrot.lane.b32.xlu1 %v3810_v23, %s3991_s26 }
0x2b1e   :  { %v2495_v56 = vpop.permute.xlu0 %2494 }
0x2b1f   :  { %v2497_v2 = vmul.f32 %v2495_v56, %v4830_v17 }
0x2b21   :  { %2501 = vrot.lane.b32.xlu0 %v2497_v2, %s3999_s3 }
0x2b25   :  { %v2442_v53 = vpop.permute.xlu1 %2441 }
0x2b26   :  { %v4875_v5 = vmul.f32 %v2442_v53, %v4836_v36 }
0x2b93   :  { %v2502_v51 = vpop.permute.xlu0 %2501 }
0x2b94   :  { %v2504_v22 = vsel %vm85_vm0, %v2499_v26, %v2502_v51 }
0x2b95   :  { %v2505_v24 = vsel %vm87_vm1, %v2504_v22, %v4875_v5 }
0x2b96   :  { %3198 = vmatmul.mubr.msk.f32.vlgmr.msra.gmra.mrb[12].mxu1 %vm158_vm2, %v2505_v24  ;;  %3199 = vmatmul.mubr.msk.f32.vlgmr.msra.gmra.mrb[14].mxu0 %vm158_vm2, %v2505_v24 }
0x2b97   :  { %3587 = vmatpush1.bf16.msra.mxu1 %v3562_v16  ;;  %2959 = vmatprep.mubr.f32.mxu1 %v3998_v0 }
0x2b98   :  { %3589 = vmatprep.subr.bf16.mxu1 %v3564_v20 }
0x2b9b   :  { %3591 = vmatpush1.bf16.msra.mxu1 %v3566_v48 }
0x2b9c   :  { %3593 = vmatprep.subr.bf16.mxu1 %v3568_v19 }
0x2b9f   :  { %3595 = vmatpush1.bf16.msra.mxu1 %v3570_v52 }
0x2ba0   :  { %3597 = vmatprep.subr.bf16.mxu1 %v3572_v42 }
0x2ba3   :  { %3599 = vmatpush1.bf16.msra.mxu1 %v3574_v58 }
0x2ba4   :  { %3601 = vmatprep.subr.bf16.mxu1 %v3576_v49 }
0x2ba7   :  { %3603 = vmatpush1.bf16.msra.mxu1 %v3578_v18 }
0x2ba8   :  { %3605 = vmatprep.subr.bf16.mxu1 %v3580_v38 }
0x2bab   :  { %3607 = vmatpush1.bf16.msra.mxu1 %v3582_v32 }
0x2c69   :  { %v2623_v17 = vpop.f32.mrb[12].mxu1  ;;  %v2694_v36 = vpop.f32.mrb[14].mxu0 }
0x2c6a   :  { %v2624_v55 = vadd.f32 %v2623_v17, %v4138_v45  ;;  %v2625_v3 = vpop.f32.mrb[13].mxu1  ;;  %v2696_v31 = vpop.f32.mrb[15].mxu0  ;;  %v2695_v20 = vadd.f32 %v2694_v36, %v4260_v14 }
0x2c6b   :  { %v2626_v16 = vadd.f32 %v2625_v3, %v4141_v46  ;;  %v2697_v11 = vadd.f32 %v2696_v31, %v4268_v35 }
0x2c6c   :  { %v2699_v0 = vsel %vm233_vm3, %v2624_v55, 0.0  ;;  %v2730_v33 = vsel %vm233_vm3, %v2695_v20, 0.0 }
0x2c6d   :  { %2700 = vadd.xlane.f32.xlu1 %v2699_v0  ;;  %v2714_v7 = vsel %vm233_vm3, %v2626_v16, 0.0  ;;  %v2745_v48 = vsel %vm233_vm3, %v2697_v11, 0.0 }
0x2c6e   :  { %2715 = vadd.xlane.f32.xlu0 %v2714_v7 }
0x2c72   :  { %2731 = vadd.xlane.f32.xlu0 %v2730_v33 }
0x2c76   :  { %2746 = vadd.xlane.f32.xlu0 %v2745_v48 }
0x2cfa   :  { %v2701_v45 = vpop.xlane.xlu1 %2700 }
0x2cfb   :  { %v2702_v40 = vmul.f32 0.0078125, %v2701_v45  ;;  %v2716_v19 = vpop.xlane.xlu0 %2715  ;;  %v4899_v45 = vld [vmem:[#allocation8 + $0x9] ss:$0 sm:$0xff] }
0x2cfc   :  { %v2717_v46 = vmul.f32 0.0078125, %v2716_v19 }
0x2cfd   :  { %v2703_v44 = vsub.f32 %v2624_v55, %v2702_v40 }
0x2cfe   :  { %v2718_v57 = vsub.f32 %v2626_v16, %v2717_v46  ;;  %v4902_v46 = vld [vmem:[#allocation8 + $0xd] ss:$0 sm:$0xff] }
0x2cff   :  { %v2732_v4 = vpop.xlane.xlu0 %2731  ;;  %v2704_v1 = vmul.f32 %v2703_v44, %v2703_v44 }
0x2d00   :  { %v2733_v52 = vmul.f32 0.0078125, %v2732_v4  ;;  %v2719_v42 = vmul.f32 %v2718_v57, %v2718_v57 }
0x2d01   :  { %v2705_v43 = vsel %vm233_vm3, %v2704_v1, 0.0 }
0x2d02   :  { %v2734_v34 = vsub.f32 %v2695_v20, %v2733_v52  ;;  %2706 = vadd.xlane.f32.xlu1 %v2705_v43  ;;  %v2720_v39 = vsel %vm233_vm3, %v2719_v42, 0.0 }
0x2d03   :  { %2721 = vadd.xlane.f32.xlu0 %v2720_v39  ;;  %v2747_v28 = vpop.xlane.xlu0 %2746 }
0x2d04   :  { %v2748_v23 = vmul.f32 0.0078125, %v2747_v28  ;;  %v2735_v58 = vmul.f32 %v2734_v34, %v2734_v34 }
0x2d06   :  { %v2749_v49 = vsub.f32 %v2697_v11, %v2748_v23  ;;  %v2736_v63 = vsel %vm233_vm3, %v2735_v58, 0.0 }
0x2d07   :  { %2737 = vadd.xlane.f32.xlu1 %v2736_v63 }
0x2d08   :  { %v2750_v60 = vmul.f32 %v2749_v49, %v2749_v49 }
0x2d0a   :  { %v2751_v47 = vsel %vm233_vm3, %v2750_v60, 0.0 }
0x2d0b   :  { %2752 = vadd.xlane.f32.xlu0 %v2751_v47 }
0x2d8f   :  { %v2707_v12 = vpop.xlane.xlu1 %2706 }
0x2d90   :  { %v2708_v18 = vmul.f32 0.0078125, %v2707_v12  ;;  %v2722_v38 = vpop.xlane.xlu0 %2721 }
0x2d91   :  { %v2723_v61 = vmul.f32 0.0078125, %v2722_v38 }
0x2d92   :  { %v2709_v50 = vadd.f32 1e-05, %v2708_v18 }
0x2d93   :  { %v2724_v32 = vadd.f32 1e-05, %v2723_v61 }
0x2d94   :  { %3811 = vrsqrt.f32 %v2709_v50  ;;  %v2738_v56 = vpop.xlane.xlu1 %2737 }
0x2d95   :  { %3813 = vrsqrt.f32 %v2724_v32  ;;  %v2739_v2 = vmul.f32 0.0078125, %v2738_v56 }
0x2d97   :  { %v2740_v53 = vadd.f32 1e-05, %v2739_v2 }
0x2d98   :  { %v2753_v26 = vpop.xlane.xlu0 %2752 }
0x2d99   :  { %3815 = vrsqrt.f32 %v2740_v53  ;;  %v2754_v51 = vmul.f32 0.0078125, %v2753_v26 }
0x2d9b   :  { %v2755_v22 = vadd.f32 1e-05, %v2754_v51 }
0x2d9d   :  { %3817 = vrsqrt.f32 %v2755_v22 }
0x2d9e   :  { %v3812_v24 = vpop.eup %3811 }
0x2d9f   :  { %v3814_v17 = vpop.eup %3813  ;;  %v2711_v36 = vmul.f32 %v3812_v24, %v2703_v44  ;;  %v4908_v44 = vld [vmem:[#allocation8 + $0xe] ss:$0 sm:$0xff] }
0x2da0   :  { %v2726_v55 = vmul.f32 %v3814_v17, %v2718_v57 }
0x2da1   :  { %v2712_v3 = vmul.f32 %v4812_v54, %v2711_v36 }
0x2da2   :  { %v2727_v31 = vmul.f32 %v4815_v27, %v2726_v55  ;;  %v4905_v27 = vld [vmem:[#allocation8 + $0xa] ss:$0 sm:$0xff] }
0x2da3   :  { %v3816_v16 = vpop.eup %3815  ;;  %v2713_v0 = vadd.f32 %v4818_v25, %v2712_v3 }
0x2da4   :  { %v2728_v20 = vadd.f32 %v4821_v37, %v2727_v31  ;;  %v2742_v7 = vmul.f32 %v3816_v16, %v2734_v34 }
0x2da6   :  { %v2729_v11 = vadd.f32 %v2728_v20, %v2713_v0  ;;  %v2743_v40 = vmul.f32 %v4899_v45, %v2742_v7 }
0x2da7   :  { %v3818_v33 = vpop.eup %3817 }
0x2da8   :  { %v3201_v48 = vmul.f32 -1.442695, %v2729_v11  ;;  %v2757_v19 = vmul.f32 %v3818_v33, %v2749_v49  ;;  %v2744_v25 = vadd.f32 %v4905_v27, %v2743_v40 }
0x2daa   :  { %3819 = vpow2.f32 %v3201_v48  ;;  %v2758_v54 = vmul.f32 %v4902_v46, %v2757_v19 }
0x2dac   :  { %v2759_v37 = vadd.f32 %v4908_v44, %v2758_v54 }
0x2dae   :  { %v2760_v57 = vadd.f32 %v2759_v37, %v2744_v25 }
0x2db0   :  { %v3200_v4 = vmul.f32 -1.442695, %v2760_v57 }
0x2db2   :  { %3821 = vpow2.f32 %v3200_v4 }
0x2db3   :  { %3823 = vtanh.f32 %v2729_v11 }
0x2db4   :  { %v3820_v1 = vpop.eup %3819 }
0x2db5   :  { %v2817_v52 = vadd.f32 1.0, %v3820_v1 }
0x2db7   :  { %3825 = vrcp.f32 %v2817_v52 }
0x2db8   :  { %3827 = vtanh.f32 %v2760_v57 }
0x2dbc   :  { %v3822_v42 = vpop.eup %3821 }
0x2dbd   :  { %v2764_v43 = vadd.f32 1.0, %v3822_v42  ;;  %v3824_v34 = vpop.eup %3823 }
0x2dbf   :  { %3829 = vrcp.f32 %v2764_v43 }
0x2dc1   :  { %v3826_v39 = vpop.eup %3825 }
0x2dc2   :  { %v4913_v28 = vsel %vm83_vm4, %v3826_v39, %v3824_v34  ;;  %v3828_v23 = vpop.eup %3827 }
0x2dc3   :  { %2824 = vrot.lane.b32.xlu1 %v4913_v28, %s3991_s26  ;;  %v2822_v18 = vmul.f32 %v4913_v28, %v4846_v41 }
0x2dc9   :  { %v3830_v58 = vpop.eup %3829 }
0x2dca   :  { %v4919_v49 = vsel %vm83_vm4, %v3830_v58, %v3828_v23 }
0x2dcb   :  { %2771 = vrot.lane.b32.xlu0 %v4919_v49, %s3991_s26  ;;  %v2769_v50 = vmul.f32 %v4919_v49, %v4852_v29 }
0x2e35   :  { %v2825_v63 = vpop.permute.xlu1 %2824 }
0x2e36   :  { %v2827_v60 = vmul.f32 %v2825_v63, %v4913_v28 }
0x2e38   :  { %2829 = vrot.lane.b32.xlu1 %v2827_v60, %s3991_s26 }
0x2e3d   :  { %v2772_v47 = vpop.permute.xlu0 %2771 }
0x2e3e   :  { %v2774_v12 = vmul.f32 %v2772_v47, %v4919_v49 }
0x2e40   :  { %2776 = vrot.lane.b32.xlu1 %v2774_v12, %s3991_s26 }
0x2eaa   :  { %v2830_v38 = vpop.permute.xlu1 %2829 }
0x2eab   :  { %v2832_v61 = vadd.f32 %v2830_v38, %v2822_v18 }
0x2ead   :  { %2834 = vrot.lane.b32.xlu1 %v2832_v61, %s3999_s3 }
0x2eb2   :  { %v2777_v32 = vpop.permute.xlu1 %2776 }
0x2eb3   :  { %v4932_v56 = vadd.f32 %v2777_v32, %v2769_v50 }
0x2eb5   :  { %2781 = vrot.lane.b32.xlu0 %v4932_v56, %s3999_s3 }
0x2f1f   :  { %v2835_v2 = vpop.permute.xlu1 %2834 }
0x2f20   :  { %v2837_v53 = vsel %vm305_vm5, %v2835_v2, 0.0 }
0x2f21   :  { %2838 = vadd.xlane.f32.xlu1 %v2837_v53 }
0x2f27   :  { %v2782_v26 = vpop.permute.xlu0 %2781 }
0x2f28   :  { %v2784_v41 = vsel %vm305_vm5, %v2782_v26, 0.0 }
0x2f29   :  { %2785 = vadd.xlane.f32.xlu0 %v2784_v41 }
0x2fae   :  { %v2839_v51 = vpop.xlane.xlu1 %2838 }
0x2faf   :  { %v2840_v22 = vmul.f32 0.03125, %v2839_v51 }
0x2fb1   :  { %v2841_v24 = vsub.f32 %v2832_v61, %v2840_v22 }
0x2fb3   :  { %v2842_v17 = vmul.f32 %v2841_v24, %v2841_v24 }
0x2fb5   :  { %2844 = vrot.lane.b32.xlu0 %v2842_v17, %s3999_s3 }
0x2fb6   :  { %v2786_v29 = vpop.xlane.xlu0 %2785 }
0x2fb7   :  { %v2787_v36 = vmul.f32 0.03125, %v2786_v29 }
0x2fb9   :  { %v2788_v55 = vsub.f32 %v4932_v56, %v2787_v36 }
0x2fbb   :  { %v2789_v3 = vmul.f32 %v2788_v55, %v2788_v55 }
0x2fbd   :  { %2791 = vrot.lane.b32.xlu1 %v2789_v3, %s3999_s3 }
0x3027   :  { %v2845_v31 = vpop.permute.xlu0 %2844 }
0x3028   :  { %v2847_v16 = vsel %vm305_vm5, %v2845_v31, 0.0 }
0x3029   :  { %2848 = vadd.xlane.f32.xlu1 %v2847_v16 }
0x302f   :  { %v2792_v0 = vpop.permute.xlu1 %2791 }
0x3030   :  { %v2794_v20 = vsel %vm305_vm5, %v2792_v0, 0.0 }
0x3031   :  { %2795 = vadd.xlane.f32.xlu0 %v2794_v20 }
0x30b6   :  { %v2849_v7 = vpop.xlane.xlu1 %2848 }
0x30b7   :  { %v2850_v11 = vmul.f32 0.03125, %v2849_v7 }
0x30b9   :  { %v2851_v33 = vadd.f32 1e-05, %v2850_v11 }
0x30bb   :  { %3831 = vrsqrt.f32 %v2851_v33 }
0x30be   :  { %v2796_v48 = vpop.xlane.xlu0 %2795 }
0x30bf   :  { %v2797_v40 = vmul.f32 0.03125, %v2796_v48 }
0x30c1   :  { %v2798_v19 = vadd.f32 1e-05, %v2797_v40 }
0x30c3   :  { %3833 = vrsqrt.f32 %v2798_v19 }
0x30c5   :  { %v3832_v54 = vpop.eup %3831 }
0x30c6   :  { %v2853_v25 = vmul.f32 %v3832_v54, %v2841_v24 }
0x30c8   :  { %v2854_v37 = vmul.f32 %v2853_v25, %v4185_v59 }
0x30ca   :  { %v2855_v57 = vadd.f32 %v4865_v8, %v2854_v37 }
0x30cc   :  { %3835 = vtanh.f32 %v2855_v57 }
0x30cd   :  { %v3834_v4 = vpop.eup %3833 }
0x30ce   :  { %v2800_v1 = vmul.f32 %v3834_v4, %v2788_v55 }
0x30d0   :  { %v2801_v52 = vmul.f32 %v2800_v1, %v4335_v15 }
0x30d2   :  { %v2802_v42 = vadd.f32 %v2801_v52, %v4337_v21 }
0x30d4   :  { %3837 = vtanh.f32 %v2802_v42 }
0x30d6   :  { %v3836_v43 = vpop.eup %3835 }
0x30d7   :  { %2858 = vrot.lane.b32.xlu0 %v3836_v43, %s3991_s26 }
0x30de   :  { %v3838_v34 = vpop.eup %3837 }
0x30df   :  { %2805 = vrot.lane.b32.xlu1 %v3838_v34, %s3991_s26 }
0x3149   :  { %v2859_v39 = vpop.permute.xlu0 %2858 }
0x314a   :  { %v2861_v23 = vmul.f32 %v2859_v39, %v4913_v28 }
0x314c   :  { %2863 = vrot.lane.b32.xlu1 %v2861_v23, %s3999_s3 }
0x3151   :  { %v2806_v59 = vpop.permute.xlu1 %2805 }
0x3152   :  { %v4952_v8 = vmul.f32 %v2806_v59, %v4919_v49 }
0x31be   :  { %v2864_v58 = vpop.permute.xlu1 %2863 }
0x31bf   :  { %v2866_v63 = vsel %vm85_vm0, 0.0, %v2864_v58 }
0x31c0   :  { %v2867_v60 = vsel %vm87_vm1, %v2866_v63, %v4952_v8 }
0x31c1   :  { %3202 = vmatmul.mubr.msk.f32.vlgmr.msra.gmra.mrb[14].mxu1 %vm158_vm2, %v2867_v60 }
0x3294   :  { %v2961_v47 = vpop.f32.mrb[14].mxu1 }
0x3295   :  { %v2962_v12 = vadd.f32 %v2961_v47, %v4260_v14  ;;  %v2963_v18 = vpop.f32.mrb[15].mxu1 }
0x3296   :  { %v2964_v28 = vadd.f32 %v2963_v18, %v4268_v35 }
0x3297   :  { %v2966_v38 = vsel %vm233_vm3, %v2962_v12, 0.0 }
0x3298   :  { %2967 = vadd.xlane.f32.xlu0 %v2966_v38  ;;  %v2981_v49 = vsel %vm233_vm3, %v2964_v28, 0.0 }
0x3299   :  { %2982 = vadd.xlane.f32.xlu1 %v2981_v49  ;;  %v3055_v49 = vld [vmem:[#allocation9 + $0x18] sm:$0xff] }
0x3325   :  { %v2968_v61 = vpop.xlane.xlu0 %2967 }
0x3326   :  { %v2969_v50 = vmul.f32 0.0078125, %v2968_v61  ;;  %v2983_v32 = vpop.xlane.xlu1 %2982 }
0x3327   :  { %v2984_v2 = vmul.f32 0.0078125, %v2983_v32 }
0x3328   :  { %v2970_v53 = vsub.f32 %v2962_v12, %v2969_v50 }
0x3329   :  { %v2985_v26 = vsub.f32 %v2964_v28, %v2984_v2  ;;  %v3052_v28 = vld [vmem:[#allocation9] sm:$0xff] }
0x332a   :  { %v2971_v41 = vmul.f32 %v2970_v53, %v2970_v53 }
0x332b   :  { %v2986_v22 = vmul.f32 %v2985_v26, %v2985_v26 }
0x332c   :  { %v2972_v51 = vsel %vm233_vm3, %v2971_v41, 0.0  ;;  %v3204_v41 = vld [vmem:[#allocation9 + $0x20] ss:$0 sm:$0xff] }
0x332d   :  { %2973 = vadd.xlane.f32.xlu0 %v2972_v51  ;;  %v2987_v14 = vsel %vm233_vm3, %v2986_v22, 0.0 }
0x3331   :  { %2988 = vadd.xlane.f32.xlu0 %v2987_v14 }
0x33ba   :  { %v2974_v35 = vpop.xlane.xlu0 %2973 }
0x33bb   :  { %v2975_v24 = vmul.f32 0.0078125, %v2974_v35 }
0x33bd   :  { %v2976_v17 = vadd.f32 1e-05, %v2975_v24 }
0x33be   :  { %v2989_v29 = vpop.xlane.xlu0 %2988 }
0x33bf   :  { %3839 = vrsqrt.f32 %v2976_v17  ;;  %v2990_v36 = vmul.f32 0.0078125, %v2989_v29 }
0x33c1   :  { %v2991_v55 = vadd.f32 1e-05, %v2990_v36 }
0x33c3   :  { %3841 = vrsqrt.f32 %v2991_v55 }
0x33c9   :  { %v3840_v3 = vpop.eup %3839 }
0x33ca   :  { %v2978_v31 = vmul.f32 %v3840_v3, %v2970_v53 }
0x33cc   :  { %v2979_v0 = vmul.f32 %v4899_v45, %v2978_v31 }
0x33cd   :  { %v3842_v16 = vpop.eup %3841 }
0x33ce   :  { %v2993_v20 = vmul.f32 %v3842_v16, %v2985_v26  ;;  %v2980_v11 = vadd.f32 %v4905_v27, %v2979_v0 }
0x33d0   :  { %v2994_v7 = vmul.f32 %v4902_v46, %v2993_v20 }
0x33d2   :  { %v2995_v33 = vadd.f32 %v4908_v44, %v2994_v7 }
0x33d4   :  { %v2996_v48 = vadd.f32 %v2995_v33, %v2980_v11 }
0x33d6   :  { %v3203_v40 = vmul.f32 -1.442695, %v2996_v48 }
0x33d8   :  { %3843 = vpow2.f32 %v3203_v40 }
0x33d9   :  { %3845 = vtanh.f32 %v2996_v48 }
0x33e2   :  { %v3844_v19 = vpop.eup %3843 }
0x33e3   :  { %v3000_v54 = vadd.f32 1.0, %v3844_v19  ;;  %v3846_v25 = vpop.eup %3845 }
0x33e5   :  { %3847 = vrcp.f32 %v3000_v54 }
0x33ef   :  { %v3848_v37 = vpop.eup %3847 }
0x33f0   :  { %v3004_v57 = vsel %vm83_vm4, %v3848_v37, %v3846_v25 }
0x33f1   :  { %3007 = vrot.lane.b32.xlu0 %v3004_v57, %s3991_s26  ;;  %v3005_v27 = vmul.f32 %v3004_v57, %v4932_v56 }
0x3463   :  { %v3008_v45 = vpop.permute.xlu0 %3007 }
0x3464   :  { %v3010_v46 = vmul.f32 %v3008_v45, %v3004_v57 }
0x3466   :  { %3012 = vrot.lane.b32.xlu1 %v3010_v46, %s3991_s26 }
0x34d8   :  { %v3013_v44 = vpop.permute.xlu1 %3012 }
0x34d9   :  { %v3015_v4 = vadd.f32 %v3013_v44, %v3005_v27 }
0x34db   :  { %3017 = vrot.lane.b32.xlu1 %v3015_v4, %s3999_s3 }
0x354d   :  { %v3018_v1 = vpop.permute.xlu1 %3017 }
0x354e   :  { %v3020_v52 = vsel %vm305_vm5, %v3018_v1, 0.0 }
0x354f   :  { %3021 = vadd.xlane.f32.xlu1 %v3020_v52 }
0x35dc   :  { %v3022_v42 = vpop.xlane.xlu1 %3021 }
0x35dd   :  { %v3023_v43 = vmul.f32 0.03125, %v3022_v42 }
0x35df   :  { %v3024_v30 = vsub.f32 %v3015_v4, %v3023_v43 }
0x35e1   :  { %v3025_v34 = vmul.f32 %v3024_v30, %v3024_v30 }
0x35e3   :  { %3027 = vrot.lane.b32.xlu0 %v3025_v34, %s3999_s3 }
0x3655   :  { %v3028_v39 = vpop.permute.xlu0 %3027 }
0x3656   :  { %v3030_v23 = vsel %vm305_vm5, %v3028_v39, 0.0 }
0x3657   :  { %3031 = vadd.xlane.f32.xlu0 %v3030_v23 }
0x366d   :  { %626 = vrot.lane.b32.xlu0 %v4346_v13, %s4000_s13 }
0x3671   :  { %1718 = vrot.lane.b32.xlu0 %v4706_v9, %s4000_s13 }
0x3675   :  { %2446 = vrot.lane.b32.xlu0 %v4875_v5, %s4000_s13 }
0x36e4   :  { %v3032_v56 = vpop.xlane.xlu0 %3031 }
0x36e5   :  { %v3033_v59 = vmul.f32 0.03125, %v3032_v56 }
0x36e7   :  { %v3034_v58 = vadd.f32 1e-05, %v3033_v59 }
0x36e8   :  { %v627_v63 = vpop.permute.xlu0 %626 }
0x36e9   :  { %3849 = vrsqrt.f32 %v3034_v58  ;;  %629 = vst.msk [vmem:[#allocation2] sm:$0x3] %vm305_vm5, %v627_v63 }
0x36ec   :  { %v1719_v60 = vpop.permute.xlu0 %1718 }
0x36ed   :  { %1721 = vst.msk [vmem:[#allocation2 + $0x6] sm:$0x3] %vm305_vm5, %v1719_v60 }
0x36f0   :  { %v2447_v47 = vpop.permute.xlu0 %2446 }
0x36f1   :  { %2449 = vst.msk [vmem:[#allocation2 + $0xa] sm:$0x3] %vm305_vm5, %v2447_v47 }
0x36f3   :  { %v3850_v13 = vpop.eup %3849 }
0x36f4   :  { %v3036_v12 = vmul.f32 %v3850_v13, %v3024_v30 }
0x36f6   :  { %v3037_v9 = vmul.f32 %v3036_v12, %v4335_v15  ;;  %v3053_v15 = vld [vmem:[#allocation9 + $0x8] sm:$0xff] }
0x36f7   :  { %v3608_v38 = vpack.c.bf16 %v3053_v15, %v3052_v28 }
0x36f8   :  { %v3038_v18 = vadd.f32 %v3037_v9, %v4337_v21  ;;  %v3054_v21 = vld [vmem:[#allocation9 + $0x10] sm:$0xff] }
0x36f9   :  { %3609 = vmatprep.subr.bf16.mxu0 %v3608_v38  ;;  %v3612_v61 = vpack.c.bf16 %v3055_v49, %v3054_v21 }
0x36fa   :  { %3851 = vtanh.f32 %v3038_v18  ;;  %3611 = vmatpush3.bf16.msra.mxu0 %v3608_v38 }
0x36fb   :  { %3613 = vmatprep.subr.bf16.mxu0 %v3612_v61 }
0x36fe   :  { %3615 = vmatpush3.bf16.msra.mxu0 %v3612_v61 }
0x3704   :  { %v3852_v5 = vpop.eup %3851 }
0x3705   :  { %3041 = vrot.lane.b32.xlu1 %v3852_v5, %s3991_s26  ;;  %s4001_s26 = smov [#allocation11]  }
0x3706   :  { %s3149_s14 = sshll.u32 %s4001_s26, 4  ;;  %s3150_s14 = int_to_ptr.vmem [resolvable:$true] %s3149_s14 }
0x3707   :  { %s3959_s15 = scalar_lea.vmem %s3150_s14, 256  ;;  %p3964_p5 = scmp.lt.s32.totalorder %s3150_s14, %s3150_s14 }
0x3708   :  { %p3960_p4 = scmp.ne.s32.totalorder %s3150_s14, %s3959_s15  ;;  %p3965_p6 = scmp.lt.s32.totalorder %s3959_s15, %s3959_s15 }
0x3709   :  { %990 = vrot.lane.b32.xlu1 %v4468_v10, %s4000_s13 }
0x370a   :  { %p3966_p7 = por %p3965_p6, %p3964_p5 }
0x370c   :  { %p3967_p8 = pnand %p3966_p7, %p3960_p4 }
0x370d   :  { %1354 = vrot.lane.b32.xlu1 %v4601_v6, %s4000_s13 }
0x3711   :  { %2082 = vrot.lane.b32.xlu1 %v4791_v62, %s4000_s13 }
0x3715   :  { %2810 = vrot.lane.b32.xlu1 %v4952_v8, %s4000_s13 }
0x3777   :  { %v3042_v10 = vpop.permute.xlu1 %3041 }
0x3778   :  { %v3044_v50 = vmul.f32 %v3042_v10, %v3004_v57 }
0x377a   :  { %3046 = vrot.lane.b32.xlu0 %v3044_v50, %s4000_s13 }
0x377b   :  { %v991_v6 = vpop.permute.xlu1 %990 }
0x377c   :  { %993 = vst.msk [vmem:[#allocation2 + $0x2] sm:$0x3] %vm305_vm5, %v991_v6 }
0x377f   :  { %v1355_v62 = vpop.permute.xlu1 %1354 }
0x3780   :  { %1357 = vst.msk [vmem:[#allocation2 + $0x4] sm:$0x3] %vm305_vm5, %v1355_v62 }
0x3783   :  { %v2083_v8 = vpop.permute.xlu1 %2082 }
0x3784   :  { %2085 = vst.msk [vmem:[#allocation2 + $0x8] sm:$0x3] %vm305_vm5, %v2083_v8 }
0x3787   :  { %v2811_v32 = vpop.permute.xlu1 %2810  ;;  %v3050_v2 = vld [vmem:[#allocation2] sm:$0xff] }
0x3788   :  { %2813 = vst.msk [vmem:[#allocation2 + $0xc] sm:$0x3] %vm305_vm5, %v2811_v32  ;;  %3221 = vmatprep.mubr.msk.f32.mxu0 %vm85_vm0, %v3050_v2 }
0x37ec   :  { %v3047_v53 = vpop.permute.xlu0 %3046 }
0x37ed   :  { %3049 = vst.msk [vmem:[#allocation2 + $0xe] sm:$0x3] %vm305_vm5, %v3047_v53 }
0x37f4   :  { %v3051_v26 = vld [vmem:[#allocation2 + $0x8] sm:$0xff] }
0x37f5   :  { %3222 = vmatmul.mubr.msk.f32.vlgmr.msra.gmra.mrb[16].mxu0 %vm85_vm0, %v3051_v26 }
0x38c8   :  { %v3223_v51 = vpop.f32.mrb[16].mxu0 }
0x38c9   :  { %v3139_v22 = vadd.f32 %v3223_v51, %v3204_v41  ;;  %v3133_v14 = vpop.f32.mrb[17].mxu0 }
0x38ca   :  { %v3134_v35 = vadd.f32 %v3204_v41, %v3133_v14 }
0x38cb   :  { %3143 = vst [vmem:[#allocation11 + $0x8] sm:$0xff] %v3139_v22 }
0x38cc   :  { %3142 = vst [vmem:[#allocation11] sm:$0xff] %v3134_v35 }
0x38cd   :  { %3970 = shalt.err (!%p3967_p8)
}
0x38ce   :  { %s3971_s18 = scalar_lea.hbm %s5024_s4, 256 }
0x38cf   :  { %p3972_p9 = scmp.ne.s32.totalorder %s5024_s4, %s3971_s18  ;;  %p3975_p10 = scmp.lt.u32.totalorder %s3971_s18, %s5024_s4 }
0x38d1   :  { %p3977_p11 = pnand %p3975_p10, %p3972_p9 }
0x38d3   :  { %3980 = shalt.err (!%p3977_p11)
}
0x38d4   :  { %3155 = dma.vmem_to_hbm [thread:$0]  %s3150_s14, 256, %s5024_s4, [#allocation5], %s3996_s2, %s3996_s2, %s3997_s11  }
0x38d5   :  { %3987 = dma.done.wait [#allocation5], 256  }
0x38d6   :  { %3988 = vsyncadd [#allocation5], 4294967040 }
0x38d7   :  { %3159 = vsyncpa [#allocation4], 1 }
0x38d8   :  { %3160 = vsyncpa [#allocation7], 1 }
0x38d9   :  { %3161 = vsyncpa [#allocation10], 1 }
0x38da   :  { %3162 = vsyncpa [#allocation5], 1 }

</bundles_post_ra>
